<compile_context>
chip_gen: v7x
topology: tpu7x:2x2x1
jax: 0.10.0
libtpu: 0.0.40
codegen_flags: <defaults>
</compile_context>

<pallas_src>
import functools

import jax
import jax.numpy as jnp
from jax.experimental import pallas as pl
from jax.experimental.pallas import tpu as pltpu


def _round_up(x, m):
    return ((x + m - 1) // m) * m


def _use_stacked_conv2():
    """K-stack conv2 only on generations with a 256-deep MXU (v6e / v7x)."""
    try:
        kind = jax.devices()[0].device_kind.lower()
    except Exception:  # pragma: no cover - defensive
        return True
    return not any(tag in kind for tag in ("v2", "v3", "v4", "v5"))


def _decoder_kernel(x_ref, m_ref, w1_ref, b1_ref, w2_ref, b2_ref, w3_ref,
                    b3_ref, o_ref, y1_scr, xstk_scr, ystk_scr=None, *,
                    padded_w, guard_lo, chunk, n_chunks, pp_pad, stack_conv2):
    # x_ref : (1, Cin_pad, PT)  once-padded input, batches folded on lanes + guard
    # m_ref : (1, PP_pad)       1.0 at interior pixels, 0.0 at border/tail lanes
    # w1_ref: (C1, 9*Cin_pad)   conv1 weights, im2col layout
    # w2_ref: (C2, 9*C1) if stack_conv2 else (9, C2, C1)
    # w3_ref: (C2, 1), b*_ref biases
    # o_ref : (1, 1, PP_pad)    density on padded pixel axis (lane dense, 128-mult)
    # y1_scr: (C1, PT)          conv1 output with zero halo
    # xstk_scr: (9*Cin_pad, chunk)   stacked conv1 operand for one lane chunk
    # ystk_scr: (9*C1, chunk)        stacked conv2 operand (only when stacking)
    cin_p = xstk_scr.shape[0] // 9
    c1 = y1_scr.shape[0]
    zeros32 = jnp.float32(0.0)
    offs = [(dy - 1) * padded_w + (dx - 1) for dy in range(3) for dx in range(3)]

    # Hygiene: zero y1's guard bands (only discarded border lanes ever read them).
    y1_scr[:, 0:guard_lo] = jnp.zeros((c1, guard_lo), y1_scr.dtype)
    y1_scr[:, guard_lo + pp_pad:] = jnp.zeros(
        (c1, y1_scr.shape[1] - guard_lo - pp_pad), y1_scr.dtype)

    # ---- Phase A: conv1 (3x3) as a single K=9*Cin_pad matmul per lane chunk ----
    for c in range(n_chunks):
        base = guard_lo + c * chunk
        for tap, off in enumerate(offs):
            xstk_scr[tap * cin_p:(tap + 1) * cin_p, :] = (
                x_ref[0, :, pl.ds(base + off, chunk)])
        y1 = jnp.dot(w1_ref[...], xstk_scr[...],
                     preferred_element_type=jnp.float32)
        y1 = jnp.maximum(y1 + b1_ref[...], zeros32)
        y1 = y1 * m_ref[:, pl.ds(c * chunk, chunk)]       # zero the SAME halo
        y1_scr[:, pl.ds(base, chunk)] = y1

    # ---- Phase B: conv2 (3x3) + ReLU + conv3 (1x1) per lane chunk ----
    for c in range(n_chunks):
        base = guard_lo + c * chunk
        if stack_conv2:
            # v6e/v7x: one K=576 matmul (near-full 256-deep MXU, no VPU adds)
            for tap, off in enumerate(offs):
                ystk_scr[tap * c1:(tap + 1) * c1, :] = (
                    y1_scr[:, pl.ds(base + off, chunk)])
            y2 = jnp.dot(w2_ref[...], ystk_scr[...],
                         preferred_element_type=jnp.float32)
        else:
            # v5e/older: 9 accumulated K=64 matmuls (avoid extra VMEM copies)
            y2 = None
            for tap, off in enumerate(offs):
                part = jnp.dot(w2_ref[tap],
                               y1_scr[:, pl.ds(base + off, chunk)],
                               preferred_element_type=jnp.float32)
                y2 = part if y2 is None else y2 + part
        y2 = jnp.maximum(y2 + b2_ref[...], zeros32)        # (C2, chunk)
        # conv3 (1x1, Cout=1): VPU multiply + sublane reduction
        y3 = jnp.sum(y2 * w3_ref[...], axis=0, keepdims=True) + b3_ref[...]
        o_ref[0, :, pl.ds(c * chunk, chunk)] = y3          # lane-dense store


def _decoder_forward(x_nchw, params):
    """x_nchw: (B, Cin, H, W) float32.  Returns (B, 1, H, W) float32."""
    w1, b1, w2, b2, w3, b3 = params                    # HWIO weights, 1-D biases
    B, Cin, H, W = x_nchw.shape
    C1 = b1.shape[0]
    C2 = b2.shape[0]
    Hp, Wp = H + 2, W + 2                              # "SAME"-padded grid
    Pp = Hp * Wp                                       # padded pixels per image

    # ---- grid / lane-tile heuristic: fold batch onto lanes, keep >=min steps ----
    target_lanes = 8192
    bc = max(1, min(B, target_lanes // Pp))
    min_steps = min(B, 4)                              # pipeline + v7x 2-TC sharding
    while bc > 1 and -(-B // bc) < min_steps:
        bc -= 1
    grid_g = -(-B // bc)
    b_pad = grid_g * bc                                # batch padded to a multiple
    lp = bc * Pp                                       # payload lanes per step

    chunk = min(512, _round_up(lp, 128))               # lane chunk for compute loop
    pp_pad = _round_up(lp, chunk)                      # output lanes (128-multiple)
    n_chunks = pp_pad // chunk

    guard_lo = _round_up(Wp + 1, 128)                  # covers +/-(Wp+1) tap shifts
    guard_hi = _round_up(Wp + 1, 128)
    pt = guard_lo + pp_pad + guard_hi                  # total lane extent per step

    cin_p = _round_up(max(Cin, 8), 8)                  # sublane-aligned channels
    stack_conv2 = _use_stacked_conv2()

    # ---- input prep (all fused under jit): pad batch/channels, SAME pad, fold ----
    x = x_nchw.astype(jnp.float32)
    if b_pad != B:
        x = jnp.pad(x, ((0, b_pad - B), (0, 0), (0, 0), (0, 0)))
    xp = jnp.pad(x, ((0, 0), (0, cin_p - Cin), (1, 1), (1, 1)))   # (b_pad,cin_p,Hp,Wp)
    xg = (xp.reshape(grid_g, bc, cin_p, Pp)
            .transpose(0, 2, 1, 3)
            .reshape(grid_g, cin_p, lp))
    xg = jnp.pad(xg, ((0, 0), (0, 0), (guard_lo, pt - guard_lo - lp)))  # (G,cin_p,PT)

    interior = jnp.zeros((Hp, Wp), jnp.float32).at[1:H + 1, 1:W + 1].set(1.0)
    mask = jnp.tile(interior.reshape(-1), (bc,))
    mask = jnp.pad(mask, (0, pp_pad - lp)).reshape(1, pp_pad)

    # ---- weights into the kernel's (channels-on-sublanes) layouts ----
    w1p = jnp.pad(w1.astype(jnp.float32),
                  ((0, 0), (0, 0), (0, cin_p - Cin), (0, 0)))      # (3,3,cin_p,C1)
    w1s = jnp.transpose(w1p, (3, 0, 1, 2)).reshape(C1, 9 * cin_p)  # [c1, tap*cin_p+c]
    if stack_conv2:
        w2k = jnp.transpose(w2.astype(jnp.float32), (3, 0, 1, 2)).reshape(C2, 9 * C1)
        w2_spec = pl.BlockSpec((C2, 9 * C1), lambda g: (0, 0))
    else:
        w2k = jnp.transpose(w2.astype(jnp.float32), (0, 1, 3, 2)).reshape(9, C2, C1)
        w2_spec = pl.BlockSpec((9, C2, C1), lambda g: (0, 0, 0))
    w3c = w3.astype(jnp.float32).reshape(C2, 1)
    b1c = b1.astype(jnp.float32).reshape(C1, 1)
    b2c = b2.astype(jnp.float32).reshape(C2, 1)
    b3c = b3.astype(jnp.float32).reshape(1, 1)

    scratch = [pltpu.VMEM((C1, pt), jnp.float32),
               pltpu.VMEM((9 * cin_p, chunk), jnp.float32)]
    if stack_conv2:
        scratch.append(pltpu.VMEM((9 * C1, chunk), jnp.float32))

    # Size the scoped VMEM from the actual working set; cap for v7x (64 MiB phys).
    vmem_need = 4 * (2 * cin_p * pt + pp_pad + C1 * pt + 9 * cin_p * chunk
                     + (9 * C1 * chunk if stack_conv2 else 0) + 2 * pp_pad)
    vmem_limit = int(min(48 * 2**20, max(32 * 2**20, 2 * vmem_need)))

    kernel = functools.partial(
        _decoder_kernel, padded_w=Wp, guard_lo=guard_lo, chunk=chunk,
        n_chunks=n_chunks, pp_pad=pp_pad, stack_conv2=stack_conv2)

    grid_spec = pltpu.PrefetchScalarGridSpec(
        num_scalar_prefetch=0,
        grid=(grid_g,),
        in_specs=[
            pl.BlockSpec((1, cin_p, pt), lambda g: (g, 0, 0)),
            pl.BlockSpec((1, pp_pad), lambda g: (0, 0)),       # resident (const map)
            pl.BlockSpec((C1, 9 * cin_p), lambda g: (0, 0)),
            pl.BlockSpec((C1, 1), lambda g: (0, 0)),
            w2_spec,
            pl.BlockSpec((C2, 1), lambda g: (0, 0)),
            pl.BlockSpec((C2, 1), lambda g: (0, 0)),
            pl.BlockSpec((1, 1), lambda g: (0, 0)),
        ],
        out_specs=pl.BlockSpec((1, 1, pp_pad), lambda g: (g, 0, 0)),
        scratch_shapes=scratch,
    )

    out = pl.pallas_call(
        kernel,
        out_shape=jax.ShapeDtypeStruct((grid_g, 1, pp_pad), jnp.float32),
        grid_spec=grid_spec,
        compiler_params=pltpu.CompilerParams(
            dimension_semantics=("parallel",),
            vmem_limit_bytes=vmem_limit),
    )(xg, mask, w1s, b1c, w2k, b2c, w3c, b3c)

    # drop padded-border pixels / tail lanes / padded batches, restore NCHW
    out = out[:, 0, :lp].reshape(b_pad, Hp, Wp)[:B, 1:H + 1, 1:W + 1]
    return out.reshape(B, 1, H, W)


# jit the whole thing: the prep / output-slice ops fuse into one XLA program.
density_regression_decoder = jax.jit(_decoder_forward)


def _reference(x_nchw, params):
    """Plain-JAX reference (same math as the PyTorch module)."""
    w1, b1, w2, b2, w3, b3 = params
    dn = ('NHWC', 'HWIO', 'NHWC')
    x = jnp.transpose(x_nchw, (0, 2, 3, 1))
    y = jax.lax.conv_general_dilated(x, w1, (1, 1), 'SAME', dimension_numbers=dn) + b1
    y = jnp.maximum(y, 0.0)
    y = jax.lax.conv_general_dilated(y, w2, (1, 1), 'SAME', dimension_numbers=dn) + b2
    y = jnp.maximum(y, 0.0)
    y = jax.lax.conv_general_dilated(y, w3, (1, 1), 'SAME', dimension_numbers=dn) + b3
    return jnp.transpose(y, (0, 3, 1, 2))


def _init_params(key, cin=5, c1=64, c2=32):
    """Deterministic synthetic parameters (HWIO weight layout)."""
    ks = jax.random.split(key, 6)
    w1 = jax.random.normal(ks[0], (3, 3, cin, c1), jnp.float32) * (1.0 / (3 * 3 * cin) ** 0.5)
    b1 = jax.random.normal(ks[1], (c1,), jnp.float32) * 0.01
    w2 = jax.random.normal(ks[2], (3, 3, c1, c2), jnp.float32) * (1.0 / (3 * 3 * c1) ** 0.5)
    b2 = jax.random.normal(ks[3], (c2,), jnp.float32) * 0.01
    w3 = jax.random.normal(ks[4], (1, 1, c2, 1), jnp.float32) * (1.0 / c2 ** 0.5)
    b3 = jax.random.normal(ks[5], (1,), jnp.float32) * 0.01
    return (w1, b1, w2, b2, w3, b3)


if __name__ == "__main__":
    key = jax.random.PRNGKey(0)
    k_x, k_p = jax.random.split(key)

    B, Cin, H, W = 2, 5, 16, 16
    x = jax.random.normal(k_x, (B, Cin, H, W), jnp.float32)
    params = _init_params(k_p, cin=Cin)

    out = jax.block_until_ready(density_regression_decoder(x, params))
    ref = jax.block_until_ready(_reference(x, params))

    assert out.shape == (B, 1, H, W), out.shape
    assert jnp.allclose(out, ref, atol=1e-4, rtol=1e-4), float(jnp.max(jnp.abs(out - ref)))

    print("KERNEL_OK")
</pallas_src>

<mosaic_0001>
module attributes {stable_mosaic.version = 11 : i64} {
  func.func @_decoder_kernel(%arg0: i32, %arg1: memref<1x8x640xf32, #tpu.memory_space<vmem>>, %arg2: memref<1x384xf32, #tpu.memory_space<vmem>>, %arg3: memref<64x72xf32, #tpu.memory_space<vmem>>, %arg4: memref<64x1xf32, #tpu.memory_space<vmem>>, %arg5: memref<32x576xf32, #tpu.memory_space<vmem>>, %arg6: memref<32x1xf32, #tpu.memory_space<vmem>>, %arg7: memref<32x1xf32, #tpu.memory_space<vmem>>, %arg8: memref<1x1xf32, #tpu.memory_space<vmem>>, %arg9: memref<1x1x384xf32, #tpu.memory_space<vmem>>, %arg10: memref<64x640xf32, #tpu.memory_space<vmem>>, %arg11: memref<72x384xf32, #tpu.memory_space<vmem>>, %arg12: memref<576x384xf32, #tpu.memory_space<vmem>>) attributes {dimension_semantics = [#tpu.dimension_semantics<parallel>], iteration_bounds = array<i64: 2>, scalar_prefetch = 0 : i64, scratch_operands = 3 : i64, tpu.core_type = #tpu.core_type<tc>, window_params = [{transform_indices = @transform_0, window_bounds = array<i64: 1, 8, 640>}, {pipeline_mode = #tpu.pipeline_mode<synchronous>, transform_indices = @transform_1, window_bounds = array<i64: 1, 384>}, {pipeline_mode = #tpu.pipeline_mode<synchronous>, transform_indices = @transform_2, window_bounds = array<i64: 64, 72>}, {pipeline_mode = #tpu.pipeline_mode<synchronous>, transform_indices = @transform_3, window_bounds = array<i64: 64, 1>}, {pipeline_mode = #tpu.pipeline_mode<synchronous>, transform_indices = @transform_4, window_bounds = array<i64: 32, 576>}, {pipeline_mode = #tpu.pipeline_mode<synchronous>, transform_indices = @transform_5, window_bounds = array<i64: 32, 1>}, {pipeline_mode = #tpu.pipeline_mode<synchronous>, transform_indices = @transform_6, window_bounds = array<i64: 32, 1>}, {pipeline_mode = #tpu.pipeline_mode<synchronous>, transform_indices = @transform_7, window_bounds = array<i64: 1, 1>}, {transform_indices = @transform_8, window_bounds = array<i64: 1, 1, 384>}]} {
    %cst = arith.constant 0.000000e+00 : f32
    %0 = vector.broadcast %cst : f32 to vector<64x128xf32>
    %c0 = arith.constant 0 : index
    %c0_0 = arith.constant 0 : index
    %1 = vector.load %arg10[%c0, %c0_0] : memref<64x640xf32, #tpu.memory_space<vmem>>, vector<64x128xf32>
    tpu.vector_store %arg10[%c0, %c0_0], %0 {strides = array<i32>} : memref<64x640xf32, #tpu.memory_space<vmem>>, vector<64x128xf32>,
    %cst_1 = arith.constant 0.000000e+00 : f32
    %2 = vector.broadcast %cst_1 : f32 to vector<64x128xf32>
    %c0_2 = arith.constant 0 : index
    %c512 = arith.constant 512 : index
    %3 = vector.load %arg10[%c0_2, %c512] : memref<64x640xf32, #tpu.memory_space<vmem>>, vector<64x128xf32>
    tpu.vector_store %arg10[%c0_2, %c512], %2 {strides = array<i32>} : memref<64x640xf32, #tpu.memory_space<vmem>>, vector<64x128xf32>,
    %c0_3 = arith.constant 0 : index
    %c0_4 = arith.constant 0 : index
    %c109 = arith.constant 109 : index
    %4 = vector.load %arg1[%c0_3, %c0_4, %c109] : memref<1x8x640xf32, #tpu.memory_space<vmem>>, vector<1x8x384xf32>
    %5 = vector.shape_cast %4 : vector<1x8x384xf32> to vector<8x384xf32>
    %c0_5 = arith.constant 0 : index
    %c0_6 = arith.constant 0 : index
    %6 = vector.load %arg11[%c0_5, %c0_6] : memref<72x384xf32, #tpu.memory_space<vmem>>, vector<8x384xf32>
    tpu.vector_store %arg11[%c0_5, %c0_6], %5 {strides = array<i32>} : memref<72x384xf32, #tpu.memory_space<vmem>>, vector<8x384xf32>,
    %c0_7 = arith.constant 0 : index
    %c0_8 = arith.constant 0 : index
    %c110 = arith.constant 110 : index
    %7 = vector.load %arg1[%c0_7, %c0_8, %c110] : memref<1x8x640xf32, #tpu.memory_space<vmem>>, vector<1x8x384xf32>
    %8 = vector.shape_cast %7 : vector<1x8x384xf32> to vector<8x384xf32>
    %c8 = arith.constant 8 : index
    %c0_9 = arith.constant 0 : index
    %9 = vector.load %arg11[%c8, %c0_9] : memref<72x384xf32, #tpu.memory_space<vmem>>, vector<8x384xf32>
    tpu.vector_store %arg11[%c8, %c0_9], %8 {strides = array<i32>} : memref<72x384xf32, #tpu.memory_space<vmem>>, vector<8x384xf32>,
    %c0_10 = arith.constant 0 : index
    %c0_11 = arith.constant 0 : index
    %c111 = arith.constant 111 : index
    %10 = vector.load %arg1[%c0_10, %c0_11, %c111] : memref<1x8x640xf32, #tpu.memory_space<vmem>>, vector<1x8x384xf32>
    %11 = vector.shape_cast %10 : vector<1x8x384xf32> to vector<8x384xf32>
    %c16 = arith.constant 16 : index
    %c0_12 = arith.constant 0 : index
    %12 = vector.load %arg11[%c16, %c0_12] : memref<72x384xf32, #tpu.memory_space<vmem>>, vector<8x384xf32>
    tpu.vector_store %arg11[%c16, %c0_12], %11 {strides = array<i32>} : memref<72x384xf32, #tpu.memory_space<vmem>>, vector<8x384xf32>,
    %c0_13 = arith.constant 0 : index
    %c0_14 = arith.constant 0 : index
    %c127 = arith.constant 127 : index
    %13 = vector.load %arg1[%c0_13, %c0_14, %c127] : memref<1x8x640xf32, #tpu.memory_space<vmem>>, vector<1x8x384xf32>
    %14 = vector.shape_cast %13 : vector<1x8x384xf32> to vector<8x384xf32>
    %c24 = arith.constant 24 : index
    %c0_15 = arith.constant 0 : index
    %15 = vector.load %arg11[%c24, %c0_15] : memref<72x384xf32, #tpu.memory_space<vmem>>, vector<8x384xf32>
    tpu.vector_store %arg11[%c24, %c0_15], %14 {strides = array<i32>} : memref<72x384xf32, #tpu.memory_space<vmem>>, vector<8x384xf32>,
    %c0_16 = arith.constant 0 : index
    %c0_17 = arith.constant 0 : index
    %c128 = arith.constant 128 : index
    %16 = vector.load %arg1[%c0_16, %c0_17, %c128] : memref<1x8x640xf32, #tpu.memory_space<vmem>>, vector<1x8x384xf32>
    %17 = vector.shape_cast %16 : vector<1x8x384xf32> to vector<8x384xf32>
    %c32 = arith.constant 32 : index
    %c0_18 = arith.constant 0 : index
    %18 = vector.load %arg11[%c32, %c0_18] : memref<72x384xf32, #tpu.memory_space<vmem>>, vector<8x384xf32>
    tpu.vector_store %arg11[%c32, %c0_18], %17 {strides = array<i32>} : memref<72x384xf32, #tpu.memory_space<vmem>>, vector<8x384xf32>,
    %c0_19 = arith.constant 0 : index
    %c0_20 = arith.constant 0 : index
    %c129 = arith.constant 129 : index
    %19 = vector.load %arg1[%c0_19, %c0_20, %c129] : memref<1x8x640xf32, #tpu.memory_space<vmem>>, vector<1x8x384xf32>
    %20 = vector.shape_cast %19 : vector<1x8x384xf32> to vector<8x384xf32>
    %c40 = arith.constant 40 : index
    %c0_21 = arith.constant 0 : index
    %21 = vector.load %arg11[%c40, %c0_21] : memref<72x384xf32, #tpu.memory_space<vmem>>, vector<8x384xf32>
    tpu.vector_store %arg11[%c40, %c0_21], %20 {strides = array<i32>} : memref<72x384xf32, #tpu.memory_space<vmem>>, vector<8x384xf32>,
    %c0_22 = arith.constant 0 : index
    %c0_23 = arith.constant 0 : index
    %c145 = arith.constant 145 : index
    %22 = vector.load %arg1[%c0_22, %c0_23, %c145] : memref<1x8x640xf32, #tpu.memory_space<vmem>>, vector<1x8x384xf32>
    %23 = vector.shape_cast %22 : vector<1x8x384xf32> to vector<8x384xf32>
    %c48 = arith.constant 48 : index
    %c0_24 = arith.constant 0 : index
    %24 = vector.load %arg11[%c48, %c0_24] : memref<72x384xf32, #tpu.memory_space<vmem>>, vector<8x384xf32>
    tpu.vector_store %arg11[%c48, %c0_24], %23 {strides = array<i32>} : memref<72x384xf32, #tpu.memory_space<vmem>>, vector<8x384xf32>,
    %c0_25 = arith.constant 0 : index
    %c0_26 = arith.constant 0 : index
    %c146 = arith.constant 146 : index
    %25 = vector.load %arg1[%c0_25, %c0_26, %c146] : memref<1x8x640xf32, #tpu.memory_space<vmem>>, vector<1x8x384xf32>
    %26 = vector.shape_cast %25 : vector<1x8x384xf32> to vector<8x384xf32>
    %c56 = arith.constant 56 : index
    %c0_27 = arith.constant 0 : index
    %27 = vector.load %arg11[%c56, %c0_27] : memref<72x384xf32, #tpu.memory_space<vmem>>, vector<8x384xf32>
    tpu.vector_store %arg11[%c56, %c0_27], %26 {strides = array<i32>} : memref<72x384xf32, #tpu.memory_space<vmem>>, vector<8x384xf32>,
    %c0_28 = arith.constant 0 : index
    %c0_29 = arith.constant 0 : index
    %c147 = arith.constant 147 : index
    %28 = vector.load %arg1[%c0_28, %c0_29, %c147] : memref<1x8x640xf32, #tpu.memory_space<vmem>>, vector<1x8x384xf32>
    %29 = vector.shape_cast %28 : vector<1x8x384xf32> to vector<8x384xf32>
    %c64 = arith.constant 64 : index
    %c0_30 = arith.constant 0 : index
    %30 = vector.load %arg11[%c64, %c0_30] : memref<72x384xf32, #tpu.memory_space<vmem>>, vector<8x384xf32>
    tpu.vector_store %arg11[%c64, %c0_30], %29 {strides = array<i32>} : memref<72x384xf32, #tpu.memory_space<vmem>>, vector<8x384xf32>,
    %c0_31 = arith.constant 0 : index
    %c0_32 = arith.constant 0 : index
    %31 = vector.load %arg3[%c0_31, %c0_32] : memref<64x72xf32, #tpu.memory_space<vmem>>, vector<64x72xf32>
    %c0_33 = arith.constant 0 : index
    %c0_34 = arith.constant 0 : index
    %32 = vector.load %arg11[%c0_33, %c0_34] : memref<72x384xf32, #tpu.memory_space<vmem>>, vector<72x384xf32>
    %cst_35 = arith.constant dense<0.000000e+00> : vector<64x384xf32>
    %33 = tpu.matmul %31, %32, %cst_35 {dimension_numbers = #tpu.dot_dimension_numbers<[1], [0], [0], [1], [0, 0, 1, 1], [], []>} : vector<64x72xf32>, vector<72x384xf32>, vector<64x384xf32> -> vector<64x384xf32>
    %c0_36 = arith.constant 0 : index
    %c0_37 = arith.constant 0 : index
    %34 = vector.load %arg4[%c0_36, %c0_37] : memref<64x1xf32, #tpu.memory_space<vmem>>, vector<64x1xf32>
    %35 = vector.broadcast %34 : vector<64x1xf32> to vector<64x384xf32>
    %36 = arith.addf %33, %35 : vector<64x384xf32>
    %cst_38 = arith.constant 0.000000e+00 : f32
    %37 = vector.broadcast %cst_38 : f32 to vector<64x384xf32>
    %38 = arith.maximumf %36, %37 : vector<64x384xf32>
    %c0_39 = arith.constant 0 : index
    %c0_40 = arith.constant 0 : index
    %39 = vector.load %arg2[%c0_39, %c0_40] : memref<1x384xf32, #tpu.memory_space<vmem>>, vector<1x384xf32>
    %40 = vector.broadcast %39 : vector<1x384xf32> to vector<64x384xf32>
    %41 = arith.mulf %38, %40 : vector<64x384xf32>
    %c0_41 = arith.constant 0 : index
    %c128_42 = arith.constant 128 : index
    %42 = vector.load %arg10[%c0_41, %c128_42] : memref<64x640xf32, #tpu.memory_space<vmem>>, vector<64x384xf32>
    tpu.vector_store %arg10[%c0_41, %c128_42], %41 {strides = array<i32>} : memref<64x640xf32, #tpu.memory_space<vmem>>, vector<64x384xf32>,
    %c0_43 = arith.constant 0 : index
    %c109_44 = arith.constant 109 : index
    %43 = vector.load %arg10[%c0_43, %c109_44] : memref<64x640xf32, #tpu.memory_space<vmem>>, vector<64x384xf32>
    %c0_45 = arith.constant 0 : index
    %c0_46 = arith.constant 0 : index
    %44 = vector.load %arg12[%c0_45, %c0_46] : memref<576x384xf32, #tpu.memory_space<vmem>>, vector<64x384xf32>
    tpu.vector_store %arg12[%c0_45, %c0_46], %43 {strides = array<i32>} : memref<576x384xf32, #tpu.memory_space<vmem>>, vector<64x384xf32>,
    %c0_47 = arith.constant 0 : index
    %c110_48 = arith.constant 110 : index
    %45 = vector.load %arg10[%c0_47, %c110_48] : memref<64x640xf32, #tpu.memory_space<vmem>>, vector<64x384xf32>
    %c64_49 = arith.constant 64 : index
    %c0_50 = arith.constant 0 : index
    %46 = vector.load %arg12[%c64_49, %c0_50] : memref<576x384xf32, #tpu.memory_space<vmem>>, vector<64x384xf32>
    tpu.vector_store %arg12[%c64_49, %c0_50], %45 {strides = array<i32>} : memref<576x384xf32, #tpu.memory_space<vmem>>, vector<64x384xf32>,
    %c0_51 = arith.constant 0 : index
    %c111_52 = arith.constant 111 : index
    %47 = vector.load %arg10[%c0_51, %c111_52] : memref<64x640xf32, #tpu.memory_space<vmem>>, vector<64x384xf32>
    %c128_53 = arith.constant 128 : index
    %c0_54 = arith.constant 0 : index
    %48 = vector.load %arg12[%c128_53, %c0_54] : memref<576x384xf32, #tpu.memory_space<vmem>>, vector<64x384xf32>
    tpu.vector_store %arg12[%c128_53, %c0_54], %47 {strides = array<i32>} : memref<576x384xf32, #tpu.memory_space<vmem>>, vector<64x384xf32>,
    %c0_55 = arith.constant 0 : index
    %c127_56 = arith.constant 127 : index
    %49 = vector.load %arg10[%c0_55, %c127_56] : memref<64x640xf32, #tpu.memory_space<vmem>>, vector<64x384xf32>
    %c192 = arith.constant 192 : index
    %c0_57 = arith.constant 0 : index
    %50 = vector.load %arg12[%c192, %c0_57] : memref<576x384xf32, #tpu.memory_space<vmem>>, vector<64x384xf32>
    tpu.vector_store %arg12[%c192, %c0_57], %49 {strides = array<i32>} : memref<576x384xf32, #tpu.memory_space<vmem>>, vector<64x384xf32>,
    %c0_58 = arith.constant 0 : index
    %c128_59 = arith.constant 128 : index
    %51 = vector.load %arg10[%c0_58, %c128_59] : memref<64x640xf32, #tpu.memory_space<vmem>>, vector<64x384xf32>
    %c256 = arith.constant 256 : index
    %c0_60 = arith.constant 0 : index
    %52 = vector.load %arg12[%c256, %c0_60] : memref<576x384xf32, #tpu.memory_space<vmem>>, vector<64x384xf32>
    tpu.vector_store %arg12[%c256, %c0_60], %51 {strides = array<i32>} : memref<576x384xf32, #tpu.memory_space<vmem>>, vector<64x384xf32>,
    %c0_61 = arith.constant 0 : index
    %c129_62 = arith.constant 129 : index
    %53 = vector.load %arg10[%c0_61, %c129_62] : memref<64x640xf32, #tpu.memory_space<vmem>>, vector<64x384xf32>
    %c320 = arith.constant 320 : index
    %c0_63 = arith.constant 0 : index
    %54 = vector.load %arg12[%c320, %c0_63] : memref<576x384xf32, #tpu.memory_space<vmem>>, vector<64x384xf32>
    tpu.vector_store %arg12[%c320, %c0_63], %53 {strides = array<i32>} : memref<576x384xf32, #tpu.memory_space<vmem>>, vector<64x384xf32>,
    %c0_64 = arith.constant 0 : index
    %c145_65 = arith.constant 145 : index
    %55 = vector.load %arg10[%c0_64, %c145_65] : memref<64x640xf32, #tpu.memory_space<vmem>>, vector<64x384xf32>
    %c384 = arith.constant 384 : index
    %c0_66 = arith.constant 0 : index
    %56 = vector.load %arg12[%c384, %c0_66] : memref<576x384xf32, #tpu.memory_space<vmem>>, vector<64x384xf32>
    tpu.vector_store %arg12[%c384, %c0_66], %55 {strides = array<i32>} : memref<576x384xf32, #tpu.memory_space<vmem>>, vector<64x384xf32>,
    %c0_67 = arith.constant 0 : index
    %c146_68 = arith.constant 146 : index
    %57 = vector.load %arg10[%c0_67, %c146_68] : memref<64x640xf32, #tpu.memory_space<vmem>>, vector<64x384xf32>
    %c448 = arith.constant 448 : index
    %c0_69 = arith.constant 0 : index
    %58 = vector.load %arg12[%c448, %c0_69] : memref<576x384xf32, #tpu.memory_space<vmem>>, vector<64x384xf32>
    tpu.vector_store %arg12[%c448, %c0_69], %57 {strides = array<i32>} : memref<576x384xf32, #tpu.memory_space<vmem>>, vector<64x384xf32>,
    %c0_70 = arith.constant 0 : index
    %c147_71 = arith.constant 147 : index
    %59 = vector.load %arg10[%c0_70, %c147_71] : memref<64x640xf32, #tpu.memory_space<vmem>>, vector<64x384xf32>
    %c512_72 = arith.constant 512 : index
    %c0_73 = arith.constant 0 : index
    %60 = vector.load %arg12[%c512_72, %c0_73] : memref<576x384xf32, #tpu.memory_space<vmem>>, vector<64x384xf32>
    tpu.vector_store %arg12[%c512_72, %c0_73], %59 {strides = array<i32>} : memref<576x384xf32, #tpu.memory_space<vmem>>, vector<64x384xf32>,
    %c0_74 = arith.constant 0 : index
    %c0_75 = arith.constant 0 : index
    %61 = vector.load %arg5[%c0_74, %c0_75] : memref<32x576xf32, #tpu.memory_space<vmem>>, vector<32x576xf32>
    %c0_76 = arith.constant 0 : index
    %c0_77 = arith.constant 0 : index
    %62 = vector.load %arg12[%c0_76, %c0_77] : memref<576x384xf32, #tpu.memory_space<vmem>>, vector<576x384xf32>
    %cst_78 = arith.constant dense<0.000000e+00> : vector<32x384xf32>
    %63 = tpu.matmul %61, %62, %cst_78 {dimension_numbers = #tpu.dot_dimension_numbers<[1], [0], [0], [1], [0, 0, 1, 1], [], []>} : vector<32x576xf32>, vector<576x384xf32>, vector<32x384xf32> -> vector<32x384xf32>
    %c0_79 = arith.constant 0 : index
    %c0_80 = arith.constant 0 : index
    %64 = vector.load %arg6[%c0_79, %c0_80] : memref<32x1xf32, #tpu.memory_space<vmem>>, vector<32x1xf32>
    %65 = vector.broadcast %64 : vector<32x1xf32> to vector<32x384xf32>
    %66 = arith.addf %63, %65 : vector<32x384xf32>
    %cst_81 = arith.constant 0.000000e+00 : f32
    %67 = vector.broadcast %cst_81 : f32 to vector<32x384xf32>
    %68 = arith.maximumf %66, %67 : vector<32x384xf32>
    %c0_82 = arith.constant 0 : index
    %c0_83 = arith.constant 0 : index
    %69 = vector.load %arg7[%c0_82, %c0_83] : memref<32x1xf32, #tpu.memory_space<vmem>>, vector<32x1xf32>
    %70 = vector.broadcast %69 : vector<32x1xf32> to vector<32x384xf32>
    %71 = arith.mulf %68, %70 : vector<32x384xf32>
    %cst_84 = arith.constant dense<0.000000e+00> : vector<384xf32>
    %72 = vector.multi_reduction <add>, %71, %cst_84 [0] : vector<32x384xf32> to vector<384xf32>
    %73 = vector.shape_cast %72 : vector<384xf32> to vector<1x384xf32>
    %c0_85 = arith.constant 0 : index
    %c0_86 = arith.constant 0 : index
    %74 = vector.load %arg8[%c0_85, %c0_86] : memref<1x1xf32, #tpu.memory_space<vmem>>, vector<1x1xf32>
    %75 = vector.broadcast %74 : vector<1x1xf32> to vector<1x384xf32>
    %76 = arith.addf %73, %75 : vector<1x384xf32>
    %c0_87 = arith.constant 0 : index
    %c0_88 = arith.constant 0 : index
    %c0_89 = arith.constant 0 : index
    %77 = vector.load %arg9[%c0_87, %c0_88, %c0_89] : memref<1x1x384xf32, #tpu.memory_space<vmem>>, vector<1x1x384xf32>
    %78 = vector.shape_cast %77 : vector<1x1x384xf32> to vector<1x384xf32>
    %79 = vector.shape_cast %76 : vector<1x384xf32> to vector<1x1x384xf32>
    tpu.vector_store %arg9[%c0_87, %c0_88, %c0_89], %79 {strides = array<i32>} : memref<1x1x384xf32, #tpu.memory_space<vmem>>, vector<1x1x384xf32>,
    return
  }
  func.func @transform_0(%arg0: i32) -> (i32, i32, i32) {
    %c0_i32 = arith.constant 0 : i32
    %c0_i32_0 = arith.constant 0 : i32
    %c0_i32_1 = arith.constant 0 : i32
    return %arg0, %c0_i32, %c0_i32_0 : i32, i32, i32
  }
  func.func @transform_1(%arg0: i32) -> (i32, i32) {
    %c0_i32 = arith.constant 0 : i32
    %c0_i32_0 = arith.constant 0 : i32
    %c0_i32_1 = arith.constant 0 : i32
    return %c0_i32, %c0_i32_0 : i32, i32
  }
  func.func @transform_2(%arg0: i32) -> (i32, i32) {
    %c0_i32 = arith.constant 0 : i32
    %c0_i32_0 = arith.constant 0 : i32
    %c0_i32_1 = arith.constant 0 : i32
    return %c0_i32, %c0_i32_0 : i32, i32
  }
  func.func @transform_3(%arg0: i32) -> (i32, i32) {
    %c0_i32 = arith.constant 0 : i32
    %c0_i32_0 = arith.constant 0 : i32
    %c0_i32_1 = arith.constant 0 : i32
    return %c0_i32, %c0_i32_0 : i32, i32
  }
  func.func @transform_4(%arg0: i32) -> (i32, i32) {
    %c0_i32 = arith.constant 0 : i32
    %c0_i32_0 = arith.constant 0 : i32
    %c0_i32_1 = arith.constant 0 : i32
    return %c0_i32, %c0_i32_0 : i32, i32
  }
  func.func @transform_5(%arg0: i32) -> (i32, i32) {
    %c0_i32 = arith.constant 0 : i32
    %c0_i32_0 = arith.constant 0 : i32
    %c0_i32_1 = arith.constant 0 : i32
    return %c0_i32, %c0_i32_0 : i32, i32
  }
  func.func @transform_6(%arg0: i32) -> (i32, i32) {
    %c0_i32 = arith.constant 0 : i32
    %c0_i32_0 = arith.constant 0 : i32
    %c0_i32_1 = arith.constant 0 : i32
    return %c0_i32, %c0_i32_0 : i32, i32
  }
  func.func @transform_7(%arg0: i32) -> (i32, i32) {
    %c0_i32 = arith.constant 0 : i32
    %c0_i32_0 = arith.constant 0 : i32
    %c0_i32_1 = arith.constant 0 : i32
    return %c0_i32, %c0_i32_0 : i32, i32
  }
  func.func @transform_8(%arg0: i32) -> (i32, i32, i32) {
    %c0_i32 = arith.constant 0 : i32
    %c0_i32_0 = arith.constant 0 : i32
    %c0_i32_1 = arith.constant 0 : i32
    return %arg0, %c0_i32, %c0_i32_0 : i32, i32, i32
  }
}

</mosaic_0001>

<bundles_post_ra>
// kernel: squeeze.1
= control target key start
LH: loop header
LB: loop body
LE: loop exit
PB: predicated region body
PF: predicated region fallthrough
CT: control target
= control target key end

     0   :  { %s127_s12 = smov 3  ;;  %s19_s13 = smov 3  ;;  %vm16_vm0 = vcmask 146432   ;;  %vm132_vm1 = vcmask 1014784   ;;  %vm145_vm2 = vcmask 1031168   ;;  %vm136_vm3 = vcmask 31744   ;;  %s306_s0 = inlined_call_operand.vmem [shape: f32[2,324], index: 0, kind: input, shape index: {}]   ;;  %s307_s1 = inlined_call_operand.vmem [shape: f32[2,18,18], index: 1, kind: output, shape index: {}]  }
   0x1   :  { %v13_v0 = vld [vmem:[%s306_s0] sm:$0x3]  ;;  %v156_v1 = vld [vmem:[%s306_s0 + $0x4] sm:$0x3]  ;;  %v157_v2 = vld [vmem:[%s306_s0 + $0x2] sm:$0x3] }
   0x2   :  { %14 = vst [vmem:[#allocation0] sm:$0x3] %v13_v0  ;;  %8 = vst [vmem:[#allocation0 + $0x10] sm:$0x3] %v156_v1  ;;  %s130_s0 = smov 3  ;;  %s27_s14 = smov 3 }
   0x3   :  { %12 = vst [vmem:[#allocation0 + $0x8] sm:$0x3] %v157_v2  ;;  %s194_s15 = smov 110   ;;  %s195_s18 = smov 114   ;;  %vm139_vm4 = vcmask 146464   ;;  %vm149_vm5 = vcmask 15360  }
   0x4   :  { %s41_s19 = smov 3  ;;  %s196_s20 = smov 4   ;;  %vm152_vm6 = vcmask 146448  }
   0x5   :  { %s197_s21 = smov 112   ;;  %s49_s22 = smov 3 }
   0x6   :  { %s198_s23 = smov 2   ;;  %s199_s24 = smov 96  }
   0x7   :  { %s63_s25 = smov 3  ;;  %s71_s26 = smov 3 }
   0x8   :  { %s200_s27 = smov 94   ;;  %s201_s28 = smov 92  }
   0x9   :  { %v34_v3 = vld [vmem:[#allocation0] sm:$0x3]   ;;  %v131_v5 = vld [vmem:[#allocation0 + $0x11] ss:$-1 sm:%s130_s0]   ;;  %s85_s29 = smov 3  ;;  %s202_s30 = smov 78  }
   0xa   :  { %v15_v4 = vld [vmem:[#allocation0] sm:$0x3]   ;;  %35 = vrot.lane.b32.xlu0 %v34_v3, %s194_s15  ;;  %v128_v6 = vld [vmem:[#allocation0 + $0x9] ss:$-1 sm:%s127_s12]   ;;  %v20_v7 = vld [vmem:[#allocation0 + $0x11] ss:$-1 sm:%s19_s13]  }
   0xb   :  { %17 = vst.msk [vmem:[%s307_s1] ss:$24 sm:$0x3] %vm16_vm0, %v15_v4   ;;  %v133_v8 = vsel %vm132_vm1, %v131_v5, %v128_v6  ;;  %21 = vrot.lane.b32.xlu1 %v20_v7, %s195_s18  ;;  %v142_v9 = vld [vmem:[#allocation0] sm:$0x3]   ;;  %s203_s2 = smov 76  }
   0xc   :  { %v144_v10 = vld [vmem:[#allocation0 + $0x8] sm:$0x3]   ;;  %v42_v13 = vld [vmem:[#allocation0 + $0x11] ss:$-1 sm:%s41_s19]   ;;  %v56_v15 = vld [vmem:[#allocation0] sm:$0x3]  }
   0xd   :  { %v28_v11 = vld [vmem:[#allocation0 + $0x9] ss:$-1 sm:%s27_s14]   ;;  %v146_v12 = vsel %vm145_vm2, %v144_v10, %v142_v9  ;;  %v64_v16 = vld [vmem:[#allocation0 + $0x11] ss:$-1 sm:%s63_s25]   ;;  %v78_v18 = vld [vmem:[#allocation0] sm:$0x3]  }
   0xe   :  { %134 = vrot.lane.b32.xlu0 %v133_v8, %s196_s20  ;;  %v50_v14 = vld [vmem:[#allocation0 + $0x9] ss:$-1 sm:%s49_s22]   ;;  %s99_s3 = smov 3  ;;  %s204_s4 = smov 74   ;;  %v92_v20 = vld [vmem:[#allocation0] sm:$0x3]  }
   0xf   :  { %29 = vrot.lane.b32.xlu1 %v28_v11, %s197_s21  ;;  %v72_v17 = vld [vmem:[#allocation0 + $0x9] ss:$-1 sm:%s71_s26]   ;;  %s205_s5 = smov 58   ;;  %s113_s6 = smov 3  ;;  %v106_v22 = vld [vmem:[#allocation0] sm:$0x3]  }
  0x10   :  { %v86_v19 = vld [vmem:[#allocation0 + $0x9] ss:$-1 sm:%s85_s29]   ;;  %s206_s7 = smov 56   ;;  %s207_s8 = smov 40   ;;  %v120_v24 = vld [vmem:[#allocation0] sm:$0x3]  }
  0x11   :  { %v100_v21 = vld [vmem:[#allocation0 + $0x9] ss:$-1 sm:%s99_s3]   ;;  %s208_s9 = smov 38   ;;  %s209_s10 = smov 22  }
  0x12   :  { %147 = vrot.lane.b32.xlu0 %v146_v12, %s198_s23  ;;  %v114_v23 = vld [vmem:[#allocation0 + $0x9] ss:$-1 sm:%s113_s6]   ;;  %s210_s11 = smov 20  }
  0x13   :  { %43 = vrot.lane.b32.xlu1 %v42_v13, %s199_s24 }
  0x16   :  { %51 = vrot.lane.b32.xlu0 %v50_v14, %s200_s27 }
  0x17   :  { %57 = vrot.lane.b32.xlu1 %v56_v15, %s201_s28 }
  0x1a   :  { %65 = vrot.lane.b32.xlu0 %v64_v16, %s202_s30 }
  0x1b   :  { %73 = vrot.lane.b32.xlu1 %v72_v17, %s203_s2 }
  0x1e   :  { %79 = vrot.lane.b32.xlu0 %v78_v18, %s204_s4 }
  0x1f   :  { %87 = vrot.lane.b32.xlu1 %v86_v19, %s205_s5 }
  0x22   :  { %93 = vrot.lane.b32.xlu0 %v92_v20, %s206_s7 }
  0x23   :  { %101 = vrot.lane.b32.xlu1 %v100_v21, %s207_s8 }
  0x26   :  { %107 = vrot.lane.b32.xlu0 %v106_v22, %s208_s9 }
  0x27   :  { %115 = vrot.lane.b32.xlu1 %v114_v23, %s209_s10 }
  0x2a   :  { %121 = vrot.lane.b32.xlu0 %v120_v24, %s210_s11 }
  0x7c   :  { %v36_v25 = vpop.permute.xlu0 %35  }
  0x7d   :  { %160 = vst.msk [vmem:[%s307_s1 + $0x1] ss:$24 sm:$0x3] %vm16_vm0, %v36_v25   ;;  %v22_v26 = vpop.permute.xlu1 %21  }
  0x7e   :  { %158 = vst.msk [vmem:[%s307_s1 + $0x27] ss:$-24 sm:$0x3] %vm16_vm0, %v22_v26  }
  0x80   :  { %v135_v27 = vpop.permute.xlu0 %134  }
  0x81   :  { %173 = vst.msk [vmem:[%s307_s1 + $0x26] ss:$-24 sm:$0x3] %vm136_vm3, %v135_v27   ;;  %v30_v28 = vpop.permute.xlu1 %29  }
  0x82   :  { %174 = vst.msk [vmem:[%s307_s1 + $0x26] ss:$-24 sm:$0x3] %vm139_vm4, %v135_v27  }
  0x83   :  { %159 = vst.msk [vmem:[%s307_s1 + $0x20] ss:$-24 sm:$0x3] %vm16_vm0, %v30_v28  }
  0x84   :  { %v148_v29 = vpop.permute.xlu0 %147  }
  0x85   :  { %175 = vst.msk [vmem:[%s307_s1 + $0x7] ss:$24 sm:$0x3] %vm149_vm5, %v148_v29   ;;  %v44_v30 = vpop.permute.xlu1 %43  }
  0x86   :  { %176 = vst.msk [vmem:[%s307_s1 + $0x7] ss:$24 sm:$0x3] %vm152_vm6, %v148_v29  }
  0x87   :  { %161 = vst.msk [vmem:[%s307_s1 + $0x28] ss:$-24 sm:$0x3] %vm16_vm0, %v44_v30  }
  0x88   :  { %v52_v31 = vpop.permute.xlu0 %51  }
  0x89   :  { %162 = vst.msk [vmem:[%s307_s1 + $0x21] ss:$-24 sm:$0x3] %vm16_vm0, %v52_v31   ;;  %v58_v32 = vpop.permute.xlu1 %57  }
  0x8a   :  { %163 = vst.msk [vmem:[%s307_s1 + $0x2] ss:$24 sm:$0x3] %vm16_vm0, %v58_v32  }
  0x8c   :  { %v66_v33 = vpop.permute.xlu0 %65  }
  0x8d   :  { %164 = vst.msk [vmem:[%s307_s1 + $0x29] ss:$-24 sm:$0x3] %vm16_vm0, %v66_v33   ;;  %v74_v34 = vpop.permute.xlu1 %73  }
  0x8e   :  { %165 = vst.msk [vmem:[%s307_s1 + $0x22] ss:$-24 sm:$0x3] %vm16_vm0, %v74_v34  }
  0x90   :  { %v80_v35 = vpop.permute.xlu0 %79  }
  0x91   :  { %166 = vst.msk [vmem:[%s307_s1 + $0x3] ss:$24 sm:$0x3] %vm16_vm0, %v80_v35   ;;  %v88_v36 = vpop.permute.xlu1 %87  }
  0x92   :  { %167 = vst.msk [vmem:[%s307_s1 + $0x23] ss:$-24 sm:$0x3] %vm16_vm0, %v88_v36  }
  0x94   :  { %v94_v37 = vpop.permute.xlu0 %93  }
  0x95   :  { %168 = vst.msk [vmem:[%s307_s1 + $0x4] ss:$24 sm:$0x3] %vm16_vm0, %v94_v37   ;;  %v102_v38 = vpop.permute.xlu1 %101  }
  0x96   :  { %169 = vst.msk [vmem:[%s307_s1 + $0x24] ss:$-24 sm:$0x3] %vm16_vm0, %v102_v38  }
  0x98   :  { %v108_v39 = vpop.permute.xlu0 %107  }
  0x99   :  { %170 = vst.msk [vmem:[%s307_s1 + $0x5] ss:$24 sm:$0x3] %vm16_vm0, %v108_v39   ;;  %v116_v40 = vpop.permute.xlu1 %115  }
  0x9a   :  { %171 = vst.msk [vmem:[%s307_s1 + $0x25] ss:$-24 sm:$0x3] %vm16_vm0, %v116_v40  }
  0x9c   :  { %v122_v41 = vpop.permute.xlu0 %121  }
  0x9d   :  { %172 = vst.msk [vmem:[%s307_s1 + $0x6] ss:$24 sm:$0x3] %vm16_vm0, %v122_v41  }

// kernel: _decoder_forward.1
= control target key start
LH: loop header
LB: loop body
LE: loop exit
PB: predicated region body
PF: predicated region fallthrough
CT: control target
= control target key end

     0   :  { %s4857_s29 = smov 0   ;;  %s6688_s0 = inlined_call_operand.vmem [shape: f32[2,8,640], index: 0, kind: input, shape index: {}]   ;;  %s6689_s1 = inlined_call_operand.vmem [shape: f32[1,384], index: 1, kind: input, shape index: {}]   ;;  %s6690_s2 = inlined_call_operand.vmem [shape: f32[64,72], index: 2, kind: input, shape index: {}]   ;;  %s6691_s3 = inlined_call_operand.vmem [shape: f32[64,1], index: 3, kind: input, shape index: {}]   ;;  %s6692_s4 = inlined_call_operand.vmem [shape: f32[32,576], index: 4, kind: input, shape index: {}]   ;;  %s6693_s5 = inlined_call_operand.vmem [shape: f32[32,1], index: 5, kind: input, shape index: {}]   ;;  %s6694_s6 = inlined_call_operand.vmem [shape: f32[32,1], index: 6, kind: input, shape index: {}]   ;;  %s6695_s7 = inlined_call_operand.<no memory space> [shape: f32[1,1], index: 7, kind: input, shape index: {}]   ;;  %s6696_s8 = inlined_call_operand.vmem [shape: f32[2,1,384], index: 8, kind: output, shape index: {}]  }
   0x1   :  { %v13_v0 = vstv %s6695_s7 }
   0x2   :  { %14 = vst [vmem:[#allocation5] sm:$0x1] %v13_v0 }
   0x3 LB: > { %s3567_s30 = sadd.s32 4294967295, %s4796_s29   ;;  %p3571_p0 = scmp.ge.s32.totalorder %s4796_s29, 1  ;;  %s4796_s29 = sphi %s4857_s29, %s20_s29  }
   0x4   : > { %p264_p1 = scmp.lt.s32.totalorder %s4796_s29, 3 }
   0x6   : > { %p265_p2 = pnand %p3571_p0, %p264_p1 }
   0x8   : > { %268 = sbr.rel (%p265_p2) target bundleno = 1024 (0x400), region = 52 }
   0xf   : > { %p297_p3 = scmp.lt.s32.totalorder %s3567_s30, 1  ;;  %s4798_s12 = smov 19   ;;  %v6699_v10 = vmov 0.0   ;;  %v571_v11 = vld [vmem:[%s6691_s3] sm:$0xff]  ;;  %v572_v12 = vld [vmem:[%s6691_s3 + $0x8] sm:$0xff]  ;;  %v4807_v13 = vmov 0  }
  0x10   : > { %s4799_s13 = smov 18   ;;  %s4800_s14 = smov 17   ;;  %708 = vmatprep.mubr.f32.mxu1 %v6699_v10  ;;  %4148 = vset.pattern.permute.xlu1 %v4807_v13  ;;  %v574_v14 = vld [vmem:[%s6691_s3 + $0x18] sm:$0xff]  ;;  %v573_v15 = vld [vmem:[%s6691_s3 + $0x10] sm:$0xff]  ;;  %v576_v16 = vld [vmem:[%s6691_s3 + $0x28] sm:$0xff]  ;;  %vm338_vm0 = vcmask 154624  }
  0x11   : > { %s7021_s30 = smov (!%p297_p3, %s3567_s30), 1  ;;  %s4801_s15 = smov 1   ;;  %4147 = vset.pattern.permute.xlu0 %v4807_v13  ;;  %v575_v17 = vld [vmem:[%s6691_s3 + $0x20] sm:$0xff]  ;;  %v578_v18 = vld [vmem:[%s6691_s3 + $0x38] sm:$0xff]  ;;  %v577_v19 = vld [vmem:[%s6691_s3 + $0x30] sm:$0xff]  ;;  %vm364_vm1 = vcmask 146432  }
  0x12   : > { %s4056_s7 = smul.u32 40, %s7021_s30  ;;  %s4802_s16 = smov 127   ;;  %vm390_vm2 = vcmask 138240   ;;  %vm416_vm3 = vcmask 7168   ;;  %vm448_vm4 = vcmask 1039360   ;;  %vm474_vm5 = vcmask 908288  }
  0x13   : > { %s4803_s17 = smov 111   ;;  %s4804_s18 = smov 110   ;;  %vm500_vm6 = vcmask 900096   ;;  %vm526_vm7 = vcmask 891904   ;;  %vm619_vm8 = vcmask 588800   ;;  %vm2859_vm9 = vcmask 523264  }
  0x14   : > { %s301_s11 = scalar_lea.vmem %s6688_s0, %s4056_s7  ;;  %s4806_s19 = smov 109  }
  0x15   : > { %v4871_v1 = vld [vmem:[%s301_s11 + $0x8] sm:$0xff]  ;;  %v4873_v2 = vld [vmem:[%s301_s11 + $0x10] sm:$0xff]  ;;  %v322_v3 = vld [vmem:[%s301_s11] sm:$0xff]  ;;  %s4057_s23 = smul.u32 3, %s7021_s30 }
  0x16   : > { %v4077_v4 = vpack.i.bf16 %v4873_v2, %v4871_v1  ;;  %v4877_v5 = vld [vmem:[%s301_s11 + $0x18] sm:$0xff]  ;;  %v435_v7 = vld [vmem:[%s301_s11 + $0x20] sm:$0xff] }
  0x17   : > { %v4087_v6 = vpack.i.bf16 %v4877_v5, %v322_v3  ;;  %v4117_v8 = vpack.i.bf16 %v4877_v5, %v4873_v2  ;;  %v4122_v9 = vpack.i.bf16 %v435_v7, %v4871_v1  ;;  %s305_s26 = scalar_lea.vmem %s6696_s8, %s4057_s23 }
  0x18   : > { %4078 = vrot.lane.b32.xlu0 %v4077_v4, %s4798_s12 }
  0x19   : > { %4088 = vrot.lane.b32.xlu1 %v4087_v6, %s4798_s12 }
  0x1c   : > { %4083 = vrot.lane.b32.xlu0 %v4077_v4, %s4799_s13 }
  0x1d   : > { %4093 = vrot.lane.b32.xlu1 %v4087_v6, %s4799_s13 }
  0x20   : > { %4098 = vrot.lane.b32.xlu0 %v4077_v4, %s4800_s14 }
  0x21   : > { %4103 = vrot.lane.b32.xlu1 %v4077_v4, %s4801_s15 }
  0x24   : > { %4108 = vrot.lane.b32.xlu0 %v4087_v6, %s4800_s14 }
  0x25   : > { %4113 = vrot.lane.b32.xlu1 %v4087_v6, %s4801_s15 }
  0x28   : > { %4118 = vrot.lane.b32.xlu0 %v4117_v8, %s4802_s16 }
  0x29   : > { %4123 = vrot.lane.b32.xlu1 %v4122_v9, %s4802_s16 }
  0x2c   : > { %4128 = vrot.lane.b32.xlu0 %v4117_v8, %s4803_s17 }
  0x2d   : > { %4133 = vrot.lane.b32.xlu1 %v4117_v8, %s4804_s18 }
  0x30   : > { %4138 = vrot.lane.b32.xlu0 %v4122_v9, %s4803_s17 }
  0x31   : > { %4143 = vrot.lane.b32.xlu1 %v4122_v9, %s4804_s18 }
  0x34   : > { %520 = vrot.lane.b32.xlu0 %v4873_v2, %s4806_s19 }
  0x35   : > { %522 = vrot.lane.b32.xlu1 %v4877_v5, %s4806_s19 }
  0x38   : > { %518 = vrot.lane.b32.xlu0 %v4871_v1, %s4806_s19 }
  0x39   : > { %524 = vrot.lane.b32.xlu1 %v435_v7, %s4806_s19 }
  0x3c   : > { %581 = vperm.xlu0 %4147, %v571_v11  }
  0x3d   : > { %586 = vperm.xlu1 %4148, %v572_v12  }
  0x40   : > { %596 = vperm.xlu0 %4147, %v574_v14  }
  0x41   : > { %591 = vperm.xlu1 %4148, %v573_v15  }
  0x44   : > { %606 = vperm.xlu0 %4147, %v576_v16  }
  0x45   : > { %601 = vperm.xlu1 %4148, %v575_v17  }
  0x48   : > { %616 = vperm.xlu0 %4147, %v578_v18  }
  0x49   : > { %611 = vperm.xlu1 %4148, %v577_v19  }
  0x4c   : > { %4150 = vrot.lane.b32.xlu0 %v6699_v10, %s4800_s14 }
  0x4d   : > { %4155 = vrot.lane.b32.xlu1 %v6699_v10, %s4800_s14 }
  0x50   : > { %4160 = vrot.lane.b32.xlu0 %v6699_v10, %s4800_s14 }
  0x51   : > { %4165 = vrot.lane.b32.xlu1 %v6699_v10, %s4801_s15 }
  0x55   : > { %4170 = vrot.lane.b32.xlu1 %v6699_v10, %s4801_s15 }
  0x59   : > { %4175 = vrot.lane.b32.xlu1 %v6699_v10, %s4801_s15 }
  0x5d   : > { %4180 = vrot.lane.b32.xlu1 %v6699_v10, %s4801_s15 }
  0x8a   : > { %v4935_v20 = vpop.permute.xlu0 %4078 }
  0x8b   : > { %v4937_v21 = vpop.permute.xlu1 %4088  ;;  %v4081_v22 = vunpack.i.h.bf16 %v4935_v20  ;;  %v4080_v23 = vunpack.i.l.bf16 %v4935_v20 }
  0x8c   : > { %v4090_v24 = vunpack.i.l.bf16 %v4937_v21 }
  0x8d   : > { %v340_v30 = vsel %vm338_vm0, %v4080_v23, %v4081_v22 }
  0x8e   : > { %v4942_v25 = vpop.permute.xlu0 %4083  ;;  %v339_v34 = vsel %vm338_vm0, %v4090_v24, %v4080_v23 }
  0x8f   : > { %v4086_v26 = vunpack.i.h.bf16 %v4942_v25  ;;  %v4085_v27 = vunpack.i.l.bf16 %v4942_v25  ;;  %v4946_v28 = vpop.permute.xlu1 %4093 }
  0x90   : > { %v4095_v29 = vunpack.i.l.bf16 %v4946_v28  ;;  %v4096_v13 = vunpack.i.h.bf16 %v4946_v28 }
  0x91   : > { %v366_v31 = vsel %vm364_vm1, %v4085_v27, %v4086_v26 }
  0x92   : > { %v4955_v32 = vpop.permute.xlu0 %4098  ;;  %v3768_v33 = vpack.c.bf16 %v366_v31, %v340_v30  ;;  %v365_v35 = vsel %vm364_vm1, %v4095_v29, %v4085_v27  ;;  %v367_v27 = vsel %vm364_vm1, %v4086_v26, %v4096_v13  ;;  %v536_v31 = vld [vmem:[%s6690_s2] sm:$0xff] }
  0x93   : > { %v4101_v36 = vunpack.i.h.bf16 %v4955_v32  ;;  %v4100_v37 = vunpack.i.l.bf16 %v4955_v32  ;;  %v4961_v38 = vpop.permute.xlu1 %4103  ;;  %v3770_v39 = vpack.c.bf16 %v365_v35, %v339_v34  ;;  %v537_v32 = vld [vmem:[%s6690_s2 + $0x8] sm:$0xff] }
  0x94   : > { %v4106_v40 = vunpack.i.h.bf16 %v4961_v38  ;;  %v4105_v41 = vunpack.i.l.bf16 %v4961_v38  ;;  %3769 = vmatprep.subr.bf16.mxu1 %v3768_v33 }
  0x95   : > { %3771 = vmatpush1.bf16.msra.mxu1 %v3770_v39  ;;  %v392_v42 = vsel %vm390_vm2, %v4100_v37, %v4101_v36 }
  0x96   : > { %v4109_v43 = vpop.permute.xlu0 %4108  ;;  %v418_v44 = vsel %vm416_vm3, %v4105_v41, %v4106_v40 }
  0x97   : > { %v4110_v45 = vunpack.i.l.bf16 %v4109_v43  ;;  %v4114_v46 = vpop.permute.xlu1 %4113  ;;  %v3772_v47 = vpack.c.bf16 %v418_v44, %v392_v42  ;;  %v4111_v17 = vunpack.i.h.bf16 %v4109_v43  ;;  %v540_v43 = vld [vmem:[%s6690_s2 + $0x20] sm:$0xff]  ;;  %v541_v44 = vld [vmem:[%s6690_s2 + $0x28] sm:$0xff] }
  0x98   : > { %v4115_v48 = vunpack.i.l.bf16 %v4114_v46  ;;  %v4116_v18 = vunpack.i.h.bf16 %v4114_v46  ;;  %v543_v46 = vld [vmem:[%s6690_s2 + $0x38] sm:$0xff] }
  0x99   : > { %3773 = vmatprep.subr.bf16.mxu1 %v3772_v47  ;;  %v391_v49 = vsel %vm390_vm2, %v4110_v45, %v4100_v37  ;;  %v393_v25 = vsel %vm390_vm2, %v4101_v36, %v4111_v17  ;;  %v538_v37 = vld [vmem:[%s6690_s2 + $0x10] sm:$0xff]  ;;  %v6697_v47 = vlaneseq }
  0x9a   : > { %v4972_v50 = vpop.permute.xlu0 %4118  ;;  %v417_v51 = vsel %vm416_vm3, %v4115_v48, %v4105_v41  ;;  %v419_v26 = vsel %vm416_vm3, %v4106_v40, %v4116_v18  ;;  %v542_v45 = vld [vmem:[%s6690_s2 + $0x30] sm:$0xff] }
  0x9b   : > { %v4121_v52 = vunpack.i.h.bf16 %v4972_v50  ;;  %v4120_v53 = vunpack.i.l.bf16 %v4972_v50  ;;  %v4124_v54 = vpop.permute.xlu1 %4123  ;;  %v3774_v55 = vpack.c.bf16 %v417_v51, %v391_v49  ;;  %v3788_v20 = vpack.c.bf16 %v419_v26, %v393_v25  ;;  %v5069_v50 = vld [vmem:[%s6689_s1] sm:$0x7] }
  0x9c   : > { %v4125_v56 = vunpack.i.l.bf16 %v4124_v54  ;;  %v4126_v29 = vunpack.i.h.bf16 %v4124_v54  ;;  %v5063_v48 = vshrl.u32 %v6697_v47, 7 }
  0x9d   : > { %3775 = vmatpush1.bf16.msra.mxu1 %v3774_v55  ;;  %v450_v57 = vsel %vm448_vm4, %v4120_v53, %v4121_v52 }
  0x9e   : > { %v4129_v58 = vpop.permute.xlu0 %4128  ;;  %v3776_v59 = vpack.c.bf16 %v450_v57, %v4873_v2  ;;  %v449_v60 = vsel %vm448_vm4, %v4125_v56, %v4120_v53  ;;  %v451_v35 = vsel %vm448_vm4, %v4121_v52, %v4126_v29  ;;  %6794 = vst [vmem:[#allocation6_spill] sm:$0xff] %v5063_v48  ;;  %v6698_v49 = vsub.s32 0, %v5063_v48 }
  0x9f   : > { %v4131_v61 = vunpack.i.h.bf16 %v4129_v58  ;;  %v4130_v62 = vunpack.i.l.bf16 %v4129_v58  ;;  %v4134_v63 = vpop.permute.xlu1 %4133  ;;  %v3778_v0 = vpack.c.bf16 %v449_v60, %v4871_v1  ;;  %v4091_v1 = vunpack.i.h.bf16 %v4937_v21 }
  0xa0   : > { %v4136_v3 = vunpack.i.h.bf16 %v4134_v63  ;;  %v4135_v4 = vunpack.i.l.bf16 %v4134_v63  ;;  %3777 = vmatprep.subr.bf16.mxu1 %v3776_v59  ;;  %v3792_v36 = vpack.c.bf16 %v451_v35, %v4877_v5  ;;  %v539_v5 = vld [vmem:[%s6690_s2 + $0x18] sm:$0xff]  ;;  %v894_v51 = vsub.s32 1, %v5063_v48 }
  0xa1   : > { %3779 = vmatpush1.bf16.msra.mxu1 %v3778_v0  ;;  %v476_v6 = vsel %vm474_vm5, %v4130_v62, %v4131_v61  ;;  %v341_v21 = vsel %vm338_vm0, %v4081_v22, %v4091_v1  ;;  %v5078_v55 = vrot.slane %v5069_v50, %v6698_v49 }
  0xa2   : > { %v4139_v7 = vpop.permute.xlu0 %4138  ;;  %v502_v8 = vsel %vm500_vm6, %v4135_v4, %v4136_v3  ;;  %v3784_v33 = vpack.c.bf16 %v367_v27, %v341_v21  ;;  %v5084_v59 = vrot.slane %v5069_v50, %v894_v51 }
  0xa3   : > { %v4140_v9 = vunpack.i.l.bf16 %v4139_v7  ;;  %v4144_v2 = vpop.permute.xlu1 %4143  ;;  %v3780_v11 = vpack.c.bf16 %v502_v8, %v476_v6  ;;  %v4141_v22 = vunpack.i.h.bf16 %v4139_v7 }
  0xa4   : > { %v4145_v12 = vunpack.i.l.bf16 %v4144_v2  ;;  %v4146_v34 = vunpack.i.h.bf16 %v4144_v2 }
  0xa5   : > { %3781 = vmatprep.subr.bf16.mxu1 %v3780_v11  ;;  %v475_v14 = vsel %vm474_vm5, %v4140_v9, %v4130_v62  ;;  %v477_v38 = vsel %vm474_vm5, %v4131_v61, %v4141_v22 }
  0xa6   : > { %v521_v15 = vpop.permute.xlu0 %520  ;;  %v501_v16 = vsel %vm500_vm6, %v4145_v12, %v4135_v4  ;;  %v503_v39 = vsel %vm500_vm6, %v4136_v3, %v4146_v34 }
  0xa7   : > { %v523_v19 = vpop.permute.xlu1 %522  ;;  %v3782_v23 = vpack.c.bf16 %v501_v16, %v475_v14  ;;  %v3796_v40 = vpack.c.bf16 %v503_v39, %v477_v38 }
  0xa8   : > { %v528_v24 = vsel %vm526_vm7, %v521_v15, %v523_v19 }
  0xa9   : > { %3783 = vmatpush1.bf16.msra.mxu1 %v3782_v23 }
  0xaa   : > { %660 = vmatprep.subr.mxu1 %v528_v24  ;;  %v519_v28 = vpop.permute.xlu0 %518 }
  0xab   : > { %v527_v30 = vsel %vm526_vm7, %v519_v28, %v521_v15  ;;  %v525_v41 = vpop.permute.xlu1 %524 }
  0xac   : > { %v529_v42 = vsel %vm526_vm7, %v523_v19, %v525_v41 }
  0xad   : > { %661 = vmatpush1.msra.mxu1 %v527_v30 }
  0xae   : > { %3573 = vmatmul.mubr.msk.f32.vlgmr.msra.gmra.mrb[0].mxu1 %vm619_vm8, %v536_v31  ;;  %3785 = vmatprep.subr.bf16.mxu1 %v3784_v33 }
  0xaf   : > { %3787 = vmatpush3.bf16.msra.mxu1 %v3784_v33  ;;  %714 = vmatprep.mubr.f32.mxu1 %v6699_v10 }
  0xb0   : > { %3789 = vmatprep.subr.bf16.mxu1 %v3788_v20 }
  0xb2   : > { %3574 = vmatmul.mubr.msk.f32.gmra.mrb[2].mxu1 %vm619_vm8, %v537_v32 }
  0xb3   : > { %3791 = vmatpush3.bf16.msra.mxu1 %v3788_v20  ;;  %720 = vmatprep.mubr.f32.mxu1 %v6699_v10 }
  0xb4   : > { %3793 = vmatprep.subr.bf16.mxu1 %v3792_v36 }
  0xb6   : > { %3575 = vmatmul.mubr.msk.f32.gmra.mrb[4].mxu1 %vm619_vm8, %v538_v37 }
  0xb7   : > { %3795 = vmatpush3.bf16.msra.mxu1 %v3792_v36  ;;  %726 = vmatprep.mubr.f32.mxu1 %v6699_v10 }
  0xb8   : > { %3797 = vmatprep.subr.bf16.mxu1 %v3796_v40 }
  0xba   : > { %3576 = vmatmul.mubr.msk.f32.gmra.mrb[6].mxu1 %vm619_vm8, %v539_v5 }
  0xbb   : > { %3799 = vmatpush3.bf16.msra.mxu1 %v3796_v40  ;;  %732 = vmatprep.mubr.f32.mxu1 %v6699_v10  ;;  %v5072_v52 = vpop.permute.xlu0 %581 }
  0xbc   : > { %3732 = vmatprep.subr.mxu1 %v529_v42  ;;  %v5080_v57 = vpop.permute.xlu1 %586 }
  0xbe   : > { %3577 = vmatmul.mubr.msk.f32.gmra.mrb[8].mxu1 %vm619_vm8, %v540_v43 }
  0xbf   : > { %3733 = vmatpush3.msra.mxu1 %v529_v42  ;;  %738 = vmatprep.mubr.f32.mxu1 %v6699_v10  ;;  %v5115_v23 = vpop.permute.xlu0 %596 }
  0xc0   : > { %v5096_v9 = vpop.permute.xlu1 %591 }
  0xc2   : > { %3578 = vmatmul.mubr.msk.f32.gmra.mrb[10].mxu1 %vm619_vm8, %v541_v44 }
  0xc3   : > { %744 = vmatprep.mubr.f32.mxu1 %v6699_v10  ;;  %v5154_v42 = vpop.permute.xlu0 %606 }
  0xc4   : > { %v5131_v20 = vpop.permute.xlu1 %601 }
  0xc6   : > { %3579 = vmatmul.mubr.msk.f32.gmra.mrb[12].mxu1 %vm619_vm8, %v542_v45 }
  0xc7   : > { %750 = vmatprep.mubr.f32.mxu1 %v6699_v10 }
  0xca   : > { %3580 = vmatmul.mubr.msk.f32.gmra.mrb[14].mxu1 %vm619_vm8, %v543_v46 }
  0xcb   : > { %3734 = vmatprep.mubr.msk.f32.mxu1 %vm619_vm8, %v536_v31 }
  0xce   : > { %3735 = vmatmul.mubr.msk.f32.vlgmr.msra.gmra.mrb[16].mxu1 %vm619_vm8, %v537_v32 }
  0xcf   : > { %3737 = vmatprep.mubr.msk.f32.mxu1 %vm619_vm8, %v538_v37 }
  0xd2   : > { %3738 = vmatmul.mubr.msk.f32.gmra.mrb[18].mxu1 %vm619_vm8, %v539_v5 }
  0xd3   : > { %3740 = vmatprep.mubr.msk.f32.mxu1 %vm619_vm8, %v540_v43 }
  0xd6   : > { %3741 = vmatmul.mubr.msk.f32.gmra.mrb[20].mxu1 %vm619_vm8, %v541_v44 }
  0xd7   : > { %3743 = vmatprep.mubr.msk.f32.mxu1 %vm619_vm8, %v542_v45 }
  0xda   : > { %3744 = vmatmul.mubr.msk.f32.gmra.mrb[22].mxu1 %vm619_vm8, %v543_v46 }
  0xdb   : > { %3114 = vmatprep.mubr.f32.mxu1 %v6699_v10 }
 0x181   : > { %v710_v53 = vpop.f32.mrb[0].mxu1 }
 0x182   : > { %v711_v54 = vadd.f32 %v710_v53, %v5072_v52  ;;  %v712_v56 = vpop.f32.mrb[1].mxu1 }
 0x183   : > { %v713_v58 = vadd.f32 %v712_v56, %v5072_v52 }
 0x184   : > { %v862_v60 = vmax.f32 %v711_v54, 0.0 }
 0x185   : > { %v863_v61 = vmax.f32 %v713_v58, 0.0  ;;  %v716_v62 = vpop.f32.mrb[2].mxu1 }
 0x186   : > { %v5087_v63 = vmul.f32 %v5078_v55, %v862_v60  ;;  %v717_v0 = vadd.f32 %v716_v62, %v5080_v57  ;;  %v718_v3 = vpop.f32.mrb[3].mxu1 }
 0x187   : > { %v5091_v4 = vmul.f32 %v5084_v59, %v863_v61  ;;  %v719_v6 = vadd.f32 %v718_v3, %v5080_v57 }
 0x188   : > { %6795 = vst [vmem:[#allocation7_spill] sm:$0xff] %v5087_v63  ;;  %v865_v7 = vmax.f32 %v717_v0, 0.0  ;;  %v4184_v8 = vpack.i.bf16 %v5087_v63, %v6699_v10  ;;  %v5176_v0 = vpop.permute.xlu1 %611 }
 0x189   : > { %6796 = vst [vmem:[#allocation8_spill] sm:$0xff] %v5091_v4  ;;  %v866_v2 = vmax.f32 %v719_v6, 0.0  ;;  %v722_v11 = vpop.f32.mrb[4].mxu1  ;;  %v4199_v12 = vpack.i.bf16 %v5091_v4, %v5087_v63 }
 0x18a   : > { %v5101_v13 = vmul.f32 %v5078_v55, %v865_v7  ;;  %v723_v14 = vadd.f32 %v722_v11, %v5096_v9  ;;  %v724_v1 = vpop.f32.mrb[5].mxu1  ;;  %4185 = vrot.lane.b32.xlu1 %v4184_v8, %s4798_s12 }
 0x18b   : > { %v5106_v15 = vmul.f32 %v5084_v59, %v866_v2  ;;  %v725_v16 = vadd.f32 %v724_v1, %v5096_v9 }
 0x18c   : > { %6797 = vst [vmem:[#allocation9_spill] sm:$0xff] %v5101_v13  ;;  %v868_v17 = vmax.f32 %v723_v14, 0.0  ;;  %v4214_v18 = vpack.i.bf16 %v5101_v13, %v5091_v4  ;;  %v5113_v19 = vpack.i.bf16 %v5101_v13, %v5087_v63  ;;  %v4204_v61 = vpack.i.bf16 %v5101_v13, %v6699_v10 }
 0x18d   : > { %6798 = vst [vmem:[#allocation10_spill] sm:$0xff] %v5106_v15  ;;  %v869_v24 = vmax.f32 %v725_v16, 0.0  ;;  %v728_v27 = vpop.f32.mrb[6].mxu1  ;;  %v4229_v28 = vpack.i.bf16 %v5106_v15, %v5101_v13 }
 0x18e   : > { %v5120_v21 = vmul.f32 %v5078_v55, %v868_v17  ;;  %v729_v29 = vadd.f32 %v728_v27, %v5115_v23  ;;  %v730_v30 = vpop.f32.mrb[7].mxu1  ;;  %4215 = vrot.lane.b32.xlu0 %v4214_v18, %s4800_s14  ;;  %4190 = vrot.lane.b32.xlu1 %v4184_v8, %s4799_s13  ;;  %v617_v17 = vpop.permute.xlu0 %616 }
 0x18f   : > { %v5126_v31 = vmul.f32 %v5084_v59, %v869_v24  ;;  %v731_v25 = vadd.f32 %v730_v30, %v5115_v23 }
 0x190   : > { %6799 = vst [vmem:[#allocation11_spill] sm:$0xff] %v5120_v21  ;;  %v871_v26 = vmax.f32 %v729_v29, 0.0 }
 0x191   : > { %6800 = vst [vmem:[#allocation12_spill] sm:$0xff] %v5126_v31  ;;  %v872_v22 = vmax.f32 %v731_v25, 0.0  ;;  %v734_v34 = vpop.f32.mrb[8].mxu1  ;;  %v5135_v32 = vpack.i.bf16 %v5126_v31, %v5120_v21  ;;  %v898_v25 = vsub.s32 2, %v5063_v48 }
 0x192   : > { %v5140_v36 = vmul.f32 %v5078_v55, %v871_v26  ;;  %v735_v37 = vadd.f32 %v734_v34, %v5131_v20  ;;  %v736_v38 = vpop.f32.mrb[9].mxu1  ;;  %4220 = vrot.lane.b32.xlu0 %v5113_v19, %s4806_s19  ;;  %4195 = vrot.lane.b32.xlu1 %v4184_v8, %s4800_s14 }
 0x193   : > { %v5147_v39 = vmul.f32 %v5084_v59, %v872_v22  ;;  %v737_v40 = vadd.f32 %v736_v38, %v5131_v20  ;;  %v4224_v38 = vpack.i.bf16 %v6699_v10, %v5106_v15 }
 0x194   : > { %6801 = vst [vmem:[#allocation13_spill] sm:$0xff] %v5140_v36  ;;  %v874_v5 = vmax.f32 %v735_v37, 0.0  ;;  %v5152_v41 = vpack.i.bf16 %v5140_v36, %v5120_v21 }
 0x195   : > { %6802 = vst [vmem:[#allocation14_spill] sm:$0xff] %v5147_v39  ;;  %v875_v43 = vmax.f32 %v737_v40, 0.0  ;;  %v740_v44 = vpop.f32.mrb[10].mxu1  ;;  %v5158_v45 = vpack.i.bf16 %v5147_v39, %v5140_v36 }
 0x196   : > { %v5161_v46 = vmul.f32 %v5078_v55, %v874_v5  ;;  %v741_v51 = vadd.f32 %v740_v44, %v5154_v42  ;;  %v742_v53 = vpop.f32.mrb[11].mxu1  ;;  %4230 = vrot.lane.b32.xlu0 %v4229_v28, %s4801_s15  ;;  %4200 = vrot.lane.b32.xlu1 %v4199_v12, %s4801_s15 }
 0x197   : > { %v5167_v54 = vmul.f32 %v5084_v59, %v875_v43  ;;  %v743_v56 = vadd.f32 %v742_v53, %v5154_v42 }
 0x198   : > { %6803 = vst [vmem:[#allocation15_spill] sm:$0xff] %v5161_v46  ;;  %v877_v60 = vmax.f32 %v741_v51, 0.0 }
 0x199   : > { %6804 = vst [vmem:[#allocation16_spill] sm:$0xff] %v5167_v54  ;;  %v878_v3 = vmax.f32 %v743_v56, 0.0  ;;  %v746_v6 = vpop.f32.mrb[12].mxu1  ;;  %v5180_v7 = vpack.i.bf16 %v5167_v54, %v5161_v46  ;;  %v899_v56 = vrot.slane %v5069_v50, %v898_v25 }
 0x19a   : > { %v5183_v8 = vmul.f32 %v5078_v55, %v877_v60  ;;  %v747_v2 = vadd.f32 %v746_v6, %v5176_v0  ;;  %v748_v11 = vpop.f32.mrb[13].mxu1  ;;  %4245 = vrot.lane.b32.xlu0 %v5135_v32, %s4800_s14  ;;  %4205 = vrot.lane.b32.xlu1 %v4204_v61, %s4798_s12  ;;  %v4234_v6 = vpack.i.bf16 %v5120_v21, %v6699_v10 }
 0x19b   : > { %v5190_v12 = vmul.f32 %v5084_v59, %v878_v3  ;;  %v749_v14 = vadd.f32 %v748_v11, %v5176_v0 }
 0x19c   : > { %6805 = vst [vmem:[#allocation17_spill] sm:$0xff] %v5183_v8  ;;  %v880_v1 = vmax.f32 %v747_v2, 0.0  ;;  %v5195_v16 = vpack.i.bf16 %v5183_v8, %v5161_v46 }
 0x19d   : > { %6806 = vst [vmem:[#allocation18_spill] sm:$0xff] %v5190_v12  ;;  %v881_v18 = vmax.f32 %v749_v14, 0.0  ;;  %v752_v24 = vpop.f32.mrb[14].mxu1  ;;  %v4314_v27 = vpack.i.bf16 %v5190_v12, %v5183_v8 }
 0x19e   : > { %v5200_v28 = vmul.f32 %v5078_v55, %v880_v1  ;;  %v753_v29 = vadd.f32 %v752_v24, %v617_v17  ;;  %v754_v30 = vpop.f32.mrb[15].mxu1  ;;  %4265 = vrot.lane.b32.xlu0 %v5152_v41, %s4806_s19  ;;  %4210 = vrot.lane.b32.xlu1 %v4204_v61, %s4799_s13 }
 0x19f   : > { %v5207_v26 = vmul.f32 %v5084_v59, %v881_v18  ;;  %v755_v22 = vadd.f32 %v754_v30, %v617_v17 }
 0x1a0   : > { %6807 = vst [vmem:[#allocation19_spill] sm:$0xff] %v5200_v28  ;;  %v883_v37 = vmax.f32 %v753_v29, 0.0 }
 0x1a1   : > { %6808 = vst [vmem:[#allocation20_spill] sm:$0xff] %v5207_v26  ;;  %v884_v5 = vmax.f32 %v755_v22, 0.0  ;;  %v3736_v43 = vpop.f32.mrb[16].mxu1  ;;  %v5217_v44 = vpack.i.bf16 %v5207_v26, %v5200_v28 }
 0x1a2   : > { %v5220_v51 = vmul.f32 %v5078_v55, %v883_v37  ;;  %v829_v53 = vadd.f32 %v3736_v43, %v5080_v57  ;;  %v823_v60 = vpop.f32.mrb[17].mxu1  ;;  %4275 = vrot.lane.b32.xlu0 %v5158_v45, %s4801_s15  ;;  %4225 = vrot.lane.b32.xlu1 %v4224_v38, %s4800_s14  ;;  %v4254_v57 = vpack.i.bf16 %v5140_v36, %v6699_v10 }
 0x1a3   : > { %v5228_v61 = vmul.f32 %v5084_v59, %v884_v5  ;;  %v824_v3 = vadd.f32 %v823_v60, %v5072_v52 }
 0x1a4   : > { %6809 = vst [vmem:[#allocation21_spill] sm:$0xff] %v5220_v51  ;;  %v867_v55 = vmax.f32 %v829_v53, 0.0  ;;  %v5237_v50 = vpack.i.bf16 %v5220_v51, %v5200_v28 }
 0x1a5   : > { %6810 = vst [vmem:[#allocation22_spill] sm:$0xff] %v5228_v61  ;;  %v864_v2 = vmax.f32 %v824_v3, 0.0  ;;  %v3739_v11 = vpop.f32.mrb[18].mxu1  ;;  %v5241_v14 = vpack.i.bf16 %v5228_v61, %v5220_v51 }
 0x1a6   : > { %v5243_v59 = vmul.f32 %v899_v56, %v867_v55  ;;  %v839_v52 = vadd.f32 %v3739_v11, %v5115_v23  ;;  %v833_v1 = vpop.f32.mrb[19].mxu1  ;;  %4310 = vrot.lane.b32.xlu0 %v5195_v16, %s4806_s19  ;;  %4235 = vrot.lane.b32.xlu1 %v4234_v6, %s4798_s12 }
 0x1a7   : > { %v5249_v18 = vmul.f32 %v899_v56, %v864_v2  ;;  %v834_v24 = vadd.f32 %v833_v1, %v5096_v9 }
 0x1a8   : > { %6811 = vst [vmem:[#allocation23_spill] sm:$0xff] %v5243_v59  ;;  %v873_v30 = vmax.f32 %v839_v52, 0.0  ;;  %v5256_v25 = vpack.i.bf16 %v5243_v59, %v5106_v15 }
 0x1a9   : > { %6812 = vst [vmem:[#allocation24_spill] sm:$0xff] %v5249_v18  ;;  %v870_v22 = vmax.f32 %v834_v24, 0.0  ;;  %v3742_v23 = vpop.f32.mrb[20].mxu1  ;;  %v5260_v37 = vpack.i.bf16 %v5249_v18, %v5091_v4  ;;  %v5269_v9 = vpack.i.bf16 %v5243_v59, %v5249_v18 }
 0x1aa   : > { %v5262_v38 = vmul.f32 %v899_v56, %v873_v30  ;;  %v849_v5 = vadd.f32 %v3742_v23, %v5154_v42  ;;  %v843_v43 = vpop.f32.mrb[21].mxu1  ;;  %4315 = vrot.lane.b32.xlu0 %v4314_v27, %s4800_s14  ;;  %4240 = vrot.lane.b32.xlu1 %v4234_v6, %s4799_s13 }
 0x1ab   : > { %v5271_v53 = vmul.f32 %v899_v56, %v870_v22  ;;  %v844_v60 = vadd.f32 %v843_v43, %v5131_v20 }
 0x1ac   : > { %6813 = vst [vmem:[#allocation25_spill] sm:$0xff] %v5262_v38  ;;  %v879_v3 = vmax.f32 %v849_v5, 0.0  ;;  %v5276_v55 = vpack.i.bf16 %v5262_v38, %v5147_v39 }
 0x1ad   : > { %6814 = vst [vmem:[#allocation26_spill] sm:$0xff] %v5271_v53  ;;  %v876_v2 = vmax.f32 %v844_v60, 0.0  ;;  %v3745_v42 = vpop.f32.mrb[22].mxu1  ;;  %v5280_v11 = vpack.i.bf16 %v5271_v53, %v5126_v31  ;;  %v5289_v20 = vpack.i.bf16 %v5262_v38, %v5271_v53  ;;  %v6826_v38 = vmov 0.0  }
 0x1ae   : > { %v5282_v6 = vmul.f32 %v899_v56, %v879_v3  ;;  %v859_v52 = vadd.f32 %v3745_v42, %v617_v17  ;;  %v853_v1 = vpop.f32.mrb[23].mxu1  ;;  %4320 = vrot.lane.b32.xlu0 %v4314_v27, %s4801_s15  ;;  %4250 = vrot.lane.b32.xlu1 %v5135_v32, %s4801_s15 }
 0x1af   : > { %v5291_v24 = vmul.f32 %v899_v56, %v876_v2  ;;  %v854_v30 = vadd.f32 %v853_v1, %v5176_v0 }
 0x1b0   : > { %6815 = vst [vmem:[#allocation27_spill] sm:$0xff] %v5282_v6  ;;  %v885_v22 = vmax.f32 %v859_v52, 0.0  ;;  %v5296_v23 = vpack.i.bf16 %v5282_v6, %v5190_v12 }
 0x1b1   : > { %6816 = vst [vmem:[#allocation28_spill] sm:$0xff] %v5291_v24  ;;  %v882_v17 = vmax.f32 %v854_v30, 0.0  ;;  %v5300_v27 = vpack.i.bf16 %v5291_v24, %v5167_v54  ;;  %v5309_v32 = vpack.i.bf16 %v5282_v6, %v5291_v24  ;;  %v4324_v30 = vpack.i.bf16 %v5200_v28, %v6699_v10 }
 0x1b2   : > { %v5302_v5 = vmul.f32 %v899_v56, %v885_v22  ;;  %4335 = vrot.lane.b32.xlu0 %v5217_v44, %s4800_s14  ;;  %4255 = vrot.lane.b32.xlu1 %v4254_v57, %s4798_s12  ;;  %v4344_v22 = vpack.i.bf16 %v5220_v51, %v6699_v10 }
 0x1b3   : > { %v5311_v0 = vmul.f32 %v899_v56, %v882_v17  ;;  %v4279_v56 = vpack.i.bf16 %v5161_v46, %v6699_v10 }
 0x1b4   : > { %6817 = vst [vmem:[#allocation29_spill] sm:$0xff] %v5302_v5  ;;  %v5315_v43 = vpack.i.bf16 %v5302_v5, %v5228_v61 }
 0x1b5   : > { %6818 = vst [vmem:[#allocation30_spill] sm:$0xff] %v5311_v0  ;;  %v5319_v60 = vpack.i.bf16 %v5311_v0, %v5207_v26  ;;  %v5326_v3 = vpack.i.bf16 %v5302_v5, %v5311_v0  ;;  %v2600_v26 = vld [vmem:[%s6692_s4 + $0x8] sm:$0xff] }
 0x1b6   : > { %4355 = vrot.lane.b32.xlu0 %v5237_v50, %s4806_s19  ;;  %4260 = vrot.lane.b32.xlu1 %v4254_v57, %s4799_s13 }
 0x1b7   : > { %2936 = vmatprep.mubr.f32.mxu0 %v2600_v26 }
 0x1ba   : > { %4365 = vrot.lane.b32.xlu0 %v5241_v14, %s4801_s15  ;;  %4270 = vrot.lane.b32.xlu1 %v5158_v45, %s4800_s14  ;;  %v4299_v45 = vpack.i.bf16 %v5183_v8, %v6699_v10 }
 0x1be   : > { %4370 = vrot.lane.b32.xlu0 %v5256_v25, %s4798_s12  ;;  %4280 = vrot.lane.b32.xlu1 %v4279_v56, %s4798_s12 }
 0x1c2   : > { %4375 = vrot.lane.b32.xlu0 %v5256_v25, %s4799_s13  ;;  %4285 = vrot.lane.b32.xlu1 %v4279_v56, %s4799_s13 }
 0x1c6   : > { %4385 = vrot.lane.b32.xlu0 %v5260_v37, %s4798_s12  ;;  %4290 = vrot.lane.b32.xlu1 %v5180_v7, %s4800_s14 }
 0x1ca   : > { %4390 = vrot.lane.b32.xlu0 %v5260_v37, %s4799_s13  ;;  %4295 = vrot.lane.b32.xlu1 %v5180_v7, %s4801_s15  ;;  %v5378_v7 = vpop.permute.xlu1 %4155 }
 0x1ce   : > { %4395 = vrot.lane.b32.xlu0 %v5260_v37, %s4806_s19  ;;  %4300 = vrot.lane.b32.xlu1 %v4299_v45, %s4798_s12  ;;  %v5385_v17 = vpop.permute.xlu1 %4165 }
 0x1d2   : > { %4410 = vrot.lane.b32.xlu0 %v5276_v55, %s4798_s12  ;;  %4305 = vrot.lane.b32.xlu1 %v4299_v45, %s4799_s13  ;;  %v5406_v45 = vpop.permute.xlu0 %4150 }
 0x1d6   : > { %4415 = vrot.lane.b32.xlu0 %v5276_v55, %s4799_s13  ;;  %4325 = vrot.lane.b32.xlu1 %v4324_v30, %s4798_s12 }
 0x1da   : > { %4425 = vrot.lane.b32.xlu0 %v5280_v11, %s4798_s12  ;;  %4330 = vrot.lane.b32.xlu1 %v4324_v30, %s4799_s13  ;;  %v5418_v30 = vpop.permute.xlu0 %4160 }
 0x1de   : > { %4430 = vrot.lane.b32.xlu0 %v5280_v11, %s4799_s13  ;;  %4340 = vrot.lane.b32.xlu1 %v5217_v44, %s4801_s15  ;;  %v5394_v44 = vpop.permute.xlu1 %4170 }
 0x1df   : > { %6819 = vst [vmem:[#allocation31_spill] sm:$0xff] %v5394_v44 }
 0x1e2   : > { %4435 = vrot.lane.b32.xlu0 %v5280_v11, %s4806_s19  ;;  %4345 = vrot.lane.b32.xlu1 %v4344_v22, %s4798_s12  ;;  %v5400_v56 = vpop.permute.xlu1 %4175 }
 0x1e3   : > { %6820 = vst [vmem:[#allocation32_spill] sm:$0xff] %v5400_v56 }
 0x1e6   : > { %4440 = vrot.lane.b32.xlu0 %v5289_v20, %s4800_s14  ;;  %4350 = vrot.lane.b32.xlu1 %v4344_v22, %s4799_s13 }
 0x1ea   : > { %4445 = vrot.lane.b32.xlu0 %v5296_v23, %s4798_s12  ;;  %4360 = vrot.lane.b32.xlu1 %v5241_v14, %s4800_s14  ;;  %v5412_v14 = vpop.permute.xlu1 %4180 }
 0x1eb   : > { %6821 = vst [vmem:[#allocation33_spill] sm:$0xff] %v5412_v14 }
 0x1ee   : > { %4450 = vrot.lane.b32.xlu0 %v5296_v23, %s4799_s13  ;;  %4380 = vrot.lane.b32.xlu1 %v5256_v25, %s4806_s19 }
 0x1f2   : > { %4460 = vrot.lane.b32.xlu0 %v5300_v27, %s4798_s12  ;;  %4400 = vrot.lane.b32.xlu1 %v5269_v9, %s4800_s14 }
 0x1f6   : > { %4465 = vrot.lane.b32.xlu0 %v5300_v27, %s4799_s13  ;;  %4405 = vrot.lane.b32.xlu1 %v5260_v37, %s4802_s16 }
 0x1fa   : > { %4470 = vrot.lane.b32.xlu0 %v5300_v27, %s4806_s19  ;;  %4420 = vrot.lane.b32.xlu1 %v5276_v55, %s4806_s19 }
 0x1fc   : > { %v5420_v22 = vpop.permute.xlu1 %4185 }
 0x1fd   : > { %v4188_v36 = vunpack.i.h.bf16 %v5420_v22  ;;  %v4187_v31 = vunpack.i.l.bf16 %v5420_v22 }
 0x1fe   : > { %4480 = vrot.lane.b32.xlu0 %v5315_v43, %s4798_s12  ;;  %4455 = vrot.lane.b32.xlu1 %v5296_v23, %s4806_s19 }
 0x200   : > { %v5426_v47 = vpop.permute.xlu0 %4215  ;;  %v5428_v49 = vpop.permute.xlu1 %4190 }
 0x202   : > { %4485 = vrot.lane.b32.xlu0 %v5315_v43, %s4799_s13  ;;  %4475 = vrot.lane.b32.xlu1 %v5309_v32, %s4800_s14 }
 0x204   : > { %v5434_v1 = vpop.permute.xlu0 %4220  ;;  %v5436_v52 = vpop.permute.xlu1 %4195 }
 0x206   : > { %4495 = vrot.lane.b32.xlu0 %v5319_v60, %s4798_s12  ;;  %4490 = vrot.lane.b32.xlu1 %v5315_v43, %s4806_s19 }
 0x208   : > { %v5442_v57 = vpop.permute.xlu0 %4230  ;;  %v5444_v42 = vpop.permute.xlu1 %4200 }
 0x20a   : > { %4500 = vrot.lane.b32.xlu0 %v5256_v25, %s4802_s16  ;;  %4505 = vrot.lane.b32.xlu1 %v5113_v19, %s4802_s16 }
 0x20c   : > { %v5450_v2 = vpop.permute.xlu0 %4245  ;;  %v4206_v29 = vpop.permute.xlu1 %4205 }
 0x20d   : > { %v4208_v61 = vunpack.i.h.bf16 %v4206_v29  ;;  %v4207_v46 = vunpack.i.l.bf16 %v4206_v29 }
 0x20e   : > { %4510 = vrot.lane.b32.xlu0 %v5269_v9, %s4801_s15  ;;  %4515 = vrot.lane.b32.xlu1 %v5280_v11, %s4802_s16 }
 0x20f   : > { %v1082_v29 = vsel %vm338_vm0, %v4207_v46, %v4208_v61 }
 0x210   : > { %v5456_v40 = vpop.permute.xlu0 %4265  ;;  %v5458_v34 = vpop.permute.xlu1 %4210 }
 0x212   : > { %4520 = vrot.lane.b32.xlu0 %v5276_v55, %s4802_s16  ;;  %4525 = vrot.lane.b32.xlu1 %v5152_v41, %s4802_s16 }
 0x214   : > { %v5464_v62 = vpop.permute.xlu0 %4275  ;;  %v5466_v58 = vpop.permute.xlu1 %4225 }
 0x215   : > { %6822 = vst [vmem:[#allocation34_spill] sm:$0xff] %v5464_v62 }
 0x216   : > { %4530 = vrot.lane.b32.xlu0 %v5319_v60, %s4799_s13  ;;  %4540 = vrot.lane.b32.xlu1 %v5300_v27, %s4802_s16 }
 0x218   : > { %v5472_v9 = vpop.permute.xlu0 %4310  ;;  %v5474_v35 = vpop.permute.xlu1 %4235 }
 0x21a   : > { %4535 = vrot.lane.b32.xlu0 %v5289_v20, %s4801_s15  ;;  %4550 = vrot.lane.b32.xlu1 %v5195_v16, %s4802_s16 }
 0x21c   : > { %v5480_v33 = vpop.permute.xlu0 %4315  ;;  %v5482_v10 = vpop.permute.xlu1 %4240 }
 0x21e   : > { %4545 = vrot.lane.b32.xlu0 %v5296_v23, %s4802_s16  ;;  %4565 = vrot.lane.b32.xlu1 %v5237_v50, %s4802_s16 }
 0x220   : > { %v5488_v48 = vpop.permute.xlu0 %4320  ;;  %v5490_v0 = vpop.permute.xlu1 %4250 }
 0x221   : > { %6823 = vst [vmem:[#allocation35_spill] sm:$0xff] %v5488_v48 }
 0x222   : > { %4555 = vrot.lane.b32.xlu0 %v5309_v32, %s4801_s15  ;;  %4570 = vrot.lane.b32.xlu1 %v5260_v37, %s4803_s17 }
 0x224   : > { %v5496_v20 = vpop.permute.xlu0 %4335  ;;  %v5498_v5 = vpop.permute.xlu1 %4255 }
 0x226   : > { %4560 = vrot.lane.b32.xlu0 %v5315_v43, %s4802_s16  ;;  %4580 = vrot.lane.b32.xlu1 %v5113_v19, %s4803_s17 }
 0x228   : > { %v5504_v24 = vpop.permute.xlu0 %4355  ;;  %v5506_v6 = vpop.permute.xlu1 %4260 }
 0x229   : > { %6824 = vst [vmem:[#allocation36_spill] sm:$0xff] %v5504_v24 }
 0x22a   : > { %4575 = vrot.lane.b32.xlu0 %v5256_v25, %s4803_s17  ;;  %4590 = vrot.lane.b32.xlu1 %v5280_v11, %s4803_s17 }
 0x22c   : > { %v5512_v32 = vpop.permute.xlu0 %4365  ;;  %v5514_v53 = vpop.permute.xlu1 %4270 }
 0x22d   : > { %6825 = vst [vmem:[#allocation37_spill] sm:$0xff] %v5512_v32  ;;  %v4257_v32 = vunpack.i.l.bf16 %v5498_v5 }
 0x22e   : > { %4585 = vrot.lane.b32.xlu0 %v6826_v38, %s4803_s17  ;;  %4600 = vrot.lane.b32.xlu1 %v5152_v41, %s4803_s17 }
 0x230   : > { %v4371_v18 = vpop.permute.xlu0 %4370  ;;  %v5520_v59 = vpop.permute.xlu1 %4280 }
 0x231   : > { %v4373_v8 = vunpack.i.h.bf16 %v4371_v18  ;;  %v4372_v54 = vunpack.i.l.bf16 %v4371_v18 }
 0x232   : > { %4595 = vrot.lane.b32.xlu0 %v5276_v55, %s4803_s17  ;;  %4615 = vrot.lane.b32.xlu1 %v5300_v27, %s4803_s17 }
 0x233   : > { %v5542_v26 = vsel %vm338_vm0, %v4372_v54, %v4373_v8  ;;  %v1083_v18 = vsel %vm338_vm0, %v4208_v61, %v4372_v54  ;;  %v1079_v61 = vsel %vm338_vm0, %v4187_v31, %v4188_v36 }
 0x234   : > { %v5526_v28 = vpop.permute.xlu0 %4375  ;;  %v5528_v51 = vpop.permute.xlu1 %4285  ;;  %6827 = vst [vmem:[#allocation38_spill] sm:$0xff] %v5542_v26 }
 0x235   : > { %v4378_v13 = vunpack.i.h.bf16 %v5526_v28  ;;  %v6729_v4 = vunpack.i.l.bf16 %v5526_v28 }
 0x236   : > { %4605 = vrot.lane.b32.xlu0 %v5319_v60, %s4806_s19  ;;  %4625 = vrot.lane.b32.xlu1 %v5195_v16, %s4803_s17 }
 0x238   : > { %v4386_v12 = vpop.permute.xlu0 %4385  ;;  %v5537_v21 = vpop.permute.xlu1 %4290 }
 0x239   : > { %v4388_v39 = vunpack.i.h.bf16 %v4386_v12  ;;  %v4387_v63 = vunpack.i.l.bf16 %v4386_v12 }
 0x23a   : > { %4610 = vrot.lane.b32.xlu0 %v6826_v38, %s4803_s17  ;;  %4645 = vrot.lane.b32.xlu1 %v5237_v50, %s4803_s17 }
 0x23b   : > { %v5553_v22 = vsel %vm338_vm0, %v4387_v63, %v4388_v39  ;;  %v1080_v8 = vsel %vm338_vm0, %v4188_v36, %v4387_v63  ;;  %v3802_v63 = vpack.c.bf16 %v1082_v29, %v1079_v61  ;;  %v5572_v39 = vsel %vm364_vm1, %v6729_v4, %v4378_v13 }
 0x23c   : > { %6828 = vst [vmem:[#allocation39_spill] sm:$0xff] %v5553_v22  ;;  %v5556_v12 = vpop.permute.xlu0 %4390  ;;  %v5558_v15 = vpop.permute.xlu1 %4295  ;;  %v3800_v24 = vpack.c.bf16 %v1083_v18, %v1080_v8  ;;  %6830 = vst [vmem:[#allocation41_spill] sm:$0xff] %v5572_v39  ;;  %v4237_v39 = vunpack.i.l.bf16 %v5474_v35 }
 0x23d   : > { %6829 = vst [vmem:[#allocation40_spill] sm:$0xff] %v5558_v15  ;;  %v4393_v54 = vunpack.i.h.bf16 %v5556_v12  ;;  %v6730_v46 = vunpack.i.l.bf16 %v5556_v12  ;;  %v4283_v15 = vunpack.i.h.bf16 %v5520_v59 }
 0x23e   : > { %4620 = vrot.lane.b32.xlu0 %v5296_v23, %s4803_s17  ;;  %4655 = vrot.lane.b32.xlu1 %v5260_v37, %s4804_s18 }
 0x23f   : > { %v5577_v18 = vsel %vm364_vm1, %v6730_v46, %v4393_v54  ;;  %3801 = vmatprep.subr.bf16.mxu0 %v3800_v24 }
 0x240   : > { %6831 = vst [vmem:[#allocation42_spill] sm:$0xff] %v5577_v18  ;;  %3803 = vmatpush1.bf16.msra.mxu0 %v3802_v63  ;;  %v5579_v31 = vpop.permute.xlu0 %4395  ;;  %v5581_v36 = vpop.permute.xlu1 %4300  ;;  %v4238_v18 = vunpack.i.h.bf16 %v5474_v35 }
 0x241   : > { %6832 = vst [vmem:[#allocation43_spill] sm:$0xff] %v5579_v31 }
 0x242   : > { %4630 = vrot.lane.b32.xlu0 %v6826_v38, %s4803_s17  ;;  %4665 = vrot.lane.b32.xlu1 %v5113_v19, %s4804_s18 }
 0x244   : > { %v4411_v13 = vpop.permute.xlu0 %4410  ;;  %v5589_v29 = vpop.permute.xlu1 %4305 }
 0x245   : > { %v4413_v8 = vunpack.i.h.bf16 %v4411_v13  ;;  %v4412_v54 = vunpack.i.l.bf16 %v4411_v13  ;;  %v4258_v13 = vunpack.i.h.bf16 %v5498_v5 }
 0x246   : > { %4635 = vrot.lane.b32.xlu0 %v5326_v3, %s4800_s14  ;;  %4670 = vrot.lane.b32.xlu1 %v5319_v60, %s4802_s16 }
 0x247   : > { %v5596_v24 = vsel %vm338_vm0, %v4412_v54, %v4413_v8  ;;  %v1088_v14 = vsel %vm338_vm0, %v4257_v32, %v4258_v13 }
 0x248   : > { %6833 = vst [vmem:[#allocation44_spill] sm:$0xff] %v5596_v24  ;;  %v5598_v61 = vpop.permute.xlu0 %4415  ;;  %v5600_v63 = vpop.permute.xlu1 %4325 }
 0x249   : > { %v4418_v19 = vunpack.i.h.bf16 %v5598_v61  ;;  %v6735_v37 = vunpack.i.l.bf16 %v5598_v61 }
 0x24a   : > { %4640 = vrot.lane.b32.xlu0 %v5315_v43, %s4803_s17  ;;  %4685 = vrot.lane.b32.xlu1 %v6826_v38, %s4802_s16 }
 0x24b   : > { %v5613_v8 = vsel %vm364_vm1, %v6735_v37, %v4418_v19  ;;  %v1089_v37 = vsel %vm338_vm0, %v4258_v13, %v4412_v54 }
 0x24c   : > { %6834 = vst [vmem:[#allocation45_spill] sm:$0xff] %v5613_v8  ;;  %v4426_v4 = vpop.permute.xlu0 %4425  ;;  %v5615_v46 = vpop.permute.xlu1 %4330  ;;  %v6842_v8 = vunpack.i.h.bf16 %v5579_v31 }
 0x24d   : > { %v4428_v22 = vunpack.i.h.bf16 %v4426_v4  ;;  %v4427_v26 = vunpack.i.l.bf16 %v4426_v4 }
 0x24e   : > { %4650 = vrot.lane.b32.xlu0 %v6826_v38, %s4803_s17  ;;  %4695 = vrot.lane.b32.xlu1 %v5276_v55, %s4804_s18 }
 0x24f   : > { %v5624_v5 = vsel %vm338_vm0, %v4427_v26, %v4428_v22  ;;  %v1086_v19 = vsel %vm338_vm0, %v4238_v18, %v4427_v26  ;;  %v1085_v22 = vsel %vm338_vm0, %v4237_v39, %v4238_v18 }
 0x250   : > { %6835 = vst [vmem:[#allocation46_spill] sm:$0xff] %v5624_v5  ;;  %v5631_v56 = vpop.permute.xlu0 %4430  ;;  %v5633_v4 = vpop.permute.xlu1 %4340  ;;  %v3804_v48 = vpack.c.bf16 %v1089_v37, %v1086_v19  ;;  %v3806_v32 = vpack.c.bf16 %v1088_v14, %v1085_v22  ;;  %v4223_v22 = vunpack.i.h.bf16 %v5434_v1 }
 0x251   : > { %6836 = vst [vmem:[#allocation47_spill] sm:$0xff] %v5633_v4  ;;  %v4433_v44 = vunpack.i.h.bf16 %v5631_v56  ;;  %v6740_v55 = vunpack.i.l.bf16 %v5631_v56 }
 0x252   : > { %4660 = vrot.lane.b32.xlu0 %v5256_v25, %s4804_s18  ;;  %4705 = vrot.lane.b32.xlu1 %v6826_v38, %s4804_s18 }
 0x253   : > { %v5645_v26 = vsel %vm364_vm1, %v6740_v55, %v4433_v44  ;;  %3805 = vmatprep.subr.bf16.mxu0 %v3804_v48 }
 0x254   : > { %6837 = vst [vmem:[#allocation48_spill] sm:$0xff] %v5645_v26  ;;  %3807 = vmatpush1.bf16.msra.mxu0 %v3806_v32  ;;  %v5649_v54 = vpop.permute.xlu0 %4435  ;;  %v5651_v39 = vpop.permute.xlu1 %4345  ;;  %v4222_v32 = vunpack.i.l.bf16 %v5434_v1  ;;  %v4302_v26 = vunpack.i.l.bf16 %v5581_v36 }
 0x255   : > { %6838 = vst [vmem:[#allocation49_spill] sm:$0xff] %v5649_v54 }
 0x256   : > { %4675 = vrot.lane.b32.xlu0 %v5326_v3, %s4801_s15  ;;  %4715 = vrot.lane.b32.xlu1 %v5300_v27, %s4804_s18  ;;  %v4397_v3 = vunpack.i.l.bf16 %v5579_v31 }
 0x258   : > { %v5657_v25 = vpop.permute.xlu0 %4440  ;;  %v5659_v14 = vpop.permute.xlu1 %4350  ;;  %v2527_v27 = vsel %vm526_vm7, %v4222_v32, %v4397_v3  ;;  %v2528_v32 = vsel %vm526_vm7, %v4397_v3, %v6842_v8 }
 0x259   : > { %6839 = vst [vmem:[#allocation50_spill] sm:$0xff] %v5657_v25 }
 0x25a   : > { %4680 = vrot.lane.b32.xlu0 %v6826_v38, %s4804_s18  ;;  %4725 = vrot.lane.b32.xlu1 %v5319_v60, %s4803_s17 }
 0x25c   : > { %v4446_v48 = vpop.permute.xlu0 %4445  ;;  %v5665_v44 = vpop.permute.xlu1 %4360 }
 0x25d   : > { %v4448_v18 = vunpack.i.h.bf16 %v4446_v48  ;;  %v4447_v13 = vunpack.i.l.bf16 %v4446_v48 }
 0x25e   : > { %4690 = vrot.lane.b32.xlu0 %v5280_v11, %s4804_s18  ;;  %4730 = vrot.lane.b32.xlu1 %v5195_v16, %s4804_s18 }
 0x25f   : > { %v5674_v19 = vsel %vm338_vm0, %v4447_v13, %v4448_v18  ;;  %v4303_v18 = vunpack.i.h.bf16 %v5581_v36 }
 0x260   : > { %v5678_v37 = vpop.permute.xlu0 %4450  ;;  %v5680_v48 = vpop.permute.xlu1 %4380 }
 0x261   : > { %6840 = vst [vmem:[#allocation51_spill] sm:$0xff] %v5680_v48  ;;  %v4453_v35 = vunpack.i.h.bf16 %v5678_v37  ;;  %v6748_v11 = vunpack.i.l.bf16 %v5678_v37  ;;  %v4382_v16 = vunpack.i.l.bf16 %v5680_v48  ;;  %v6843_v5 = vunpack.i.h.bf16 %v5680_v48 }
 0x262   : > { %4700 = vrot.lane.b32.xlu0 %v5152_v41, %s4804_s18  ;;  %4740 = vrot.lane.b32.xlu1 %v6826_v38, %s4802_s16  ;;  %v1094_v3 = vsel %vm338_vm0, %v4302_v26, %v4303_v18  ;;  %v6755_v26 = vunpack.i.h.bf16 %v5649_v54 }
 0x263   : > { %v5696_v1 = vsel %vm364_vm1, %v6748_v11, %v4453_v35  ;;  %v2530_v55 = vsel %vm526_vm7, %v4223_v22, %v4382_v16  ;;  %v2531_v36 = vsel %vm526_vm7, %v4382_v16, %v6843_v5  ;;  %v4282_v35 = vunpack.i.l.bf16 %v5520_v59 }
 0x264   : > { %6841 = vst [vmem:[#allocation52_spill] sm:$0xff] %v5696_v1  ;;  %v3930_v24 = vpack.c.bf16 %v2530_v55, %v2527_v27  ;;  %v4461_v41 = vpop.permute.xlu0 %4460  ;;  %v5705_v25 = vpop.permute.xlu1 %4400  ;;  %v3928_v4 = vpack.c.bf16 %v2531_v36, %v2528_v32  ;;  %v1095_v55 = vsel %vm338_vm0, %v4303_v18, %v4447_v13  ;;  %v4267_v18 = vunpack.i.l.bf16 %v5456_v40 }
 0x265   : > { %v4463_v11 = vunpack.i.h.bf16 %v4461_v41  ;;  %v4462_v62 = vunpack.i.l.bf16 %v4461_v41  ;;  %v4268_v36 = vunpack.i.h.bf16 %v5456_v40 }
 0x266   : > { %4710 = vrot.lane.b32.xlu0 %v6826_v38, %s4802_s16  ;;  %4745 = vrot.lane.b32.xlu1 %v5315_v43, %s4804_s18 }
 0x267   : > { %v5714_v8 = vsel %vm338_vm0, %v4462_v62, %v4463_v11  ;;  %3929 = vmatprep.subr.bf16.mxu1 %v3928_v4  ;;  %v1092_v5 = vsel %vm338_vm0, %v4283_v15, %v4462_v62  ;;  %v1091_v4 = vsel %vm338_vm0, %v4282_v35, %v4283_v15  ;;  %v4437_v62 = vunpack.i.l.bf16 %v5649_v54 }
 0x268   : > { %3931 = vmatpush1.bf16.msra.mxu1 %v3930_v24  ;;  %v5721_v27 = vpop.permute.xlu0 %4465  ;;  %v5723_v22 = vpop.permute.xlu1 %4405  ;;  %v3808_v16 = vpack.c.bf16 %v1095_v55, %v1092_v5  ;;  %v3810_v24 = vpack.c.bf16 %v1094_v3, %v1091_v4  ;;  %v4313_v4 = vunpack.i.h.bf16 %v5472_v9 }
 0x269   : > { %v4468_v43 = vunpack.i.h.bf16 %v5721_v27  ;;  %v6750_v11 = vunpack.i.l.bf16 %v5721_v27  ;;  %v2533_v5 = vsel %vm526_vm7, %v4267_v18, %v4437_v62  ;;  %v2534_v40 = vsel %vm526_vm7, %v4437_v62, %v6755_v26 }
 0x26a   : > { %4720 = vrot.lane.b32.xlu0 %v5296_v23, %s4804_s18  ;;  %4755 = vrot.lane.b32.xlu1 %v6826_v38, %s4804_s18 }
 0x26b   : > { %v5737_v13 = vsel %vm364_vm1, %v6750_v11, %v4468_v43  ;;  %3809 = vmatprep.subr.bf16.mxu0 %v3808_v16 }
 0x26c   : > { %6844 = vst [vmem:[#allocation53_spill] sm:$0xff] %v5737_v13  ;;  %3811 = vmatpush1.bf16.msra.mxu0 %v3810_v24  ;;  %v5742_v32 = vpop.permute.xlu0 %4470  ;;  %v5744_v23 = vpop.permute.xlu1 %4420  ;;  %v4312_v24 = vunpack.i.l.bf16 %v5472_v9 }
 0x26d   : > { %6845 = vst [vmem:[#allocation54_spill] sm:$0xff] %v5742_v32  ;;  %6846 = vst [vmem:[#allocation55_spill] sm:$0xff] %v5744_v23  ;;  %v6754_v41 = vunpack.i.h.bf16 %v5744_v23  ;;  %v4422_v35 = vunpack.i.l.bf16 %v5744_v23  ;;  %v4472_v55 = vunpack.i.l.bf16 %v5742_v32  ;;  %v6864_v23 = vld [vmem:[#allocation40_spill] sm:$0xff] }
 0x26e   : > { %4735 = vrot.lane.b32.xlu0 %v6826_v38, %s4804_s18  ;;  %4770 = vrot.lane.b32.xlu1 %v6826_v38, %s4806_s19 }
 0x26f   : > { %v2536_v16 = vsel %vm526_vm7, %v4268_v36, %v4422_v35  ;;  %v2537_v43 = vsel %vm526_vm7, %v4422_v35, %v6754_v41  ;;  %v2539_v62 = vsel %vm526_vm7, %v4312_v24, %v4472_v55 }
 0x270   : > { %v3934_v18 = vpack.c.bf16 %v2536_v16, %v2533_v5  ;;  %v4481_v15 = vpop.permute.xlu0 %4480  ;;  %v5765_v59 = vpop.permute.xlu1 %4455  ;;  %v3932_v11 = vpack.c.bf16 %v2537_v43, %v2534_v40  ;;  %v6848_v5 = vunpack.i.h.bf16 %v5742_v32  ;;  %v4192_v32 = vunpack.i.l.bf16 %v5428_v49 }
 0x271   : > { %6847 = vst [vmem:[#allocation56_spill] sm:$0xff] %v5765_v59  ;;  %v4483_v3 = vunpack.i.h.bf16 %v4481_v15  ;;  %v4482_v48 = vunpack.i.l.bf16 %v4481_v15  ;;  %v6753_v36 = vunpack.i.h.bf16 %v5765_v59  ;;  %v4457_v54 = vunpack.i.l.bf16 %v5765_v59  ;;  %v2835_v15 = vld [vmem:[%s6693_s5] sm:$0xff] }
 0x272   : > { %4750 = vrot.lane.b32.xlu0 %v5237_v50, %s4804_s18  ;;  %4780 = vrot.lane.b32.xlu1 %v6826_v38, %s4806_s19  ;;  %v2540_v16 = vsel %vm526_vm7, %v4472_v55, %v6848_v5  ;;  %v4348_v55 = vunpack.i.h.bf16 %v5651_v39  ;;  %v4347_v5 = vunpack.i.l.bf16 %v5651_v39 }
 0x273   : > { %v5775_v9 = vsel %vm338_vm0, %v4482_v48, %v4483_v3  ;;  %v2542_v35 = vsel %vm526_vm7, %v4313_v4, %v4457_v54  ;;  %3933 = vmatprep.subr.bf16.mxu1 %v3932_v11  ;;  %v2543_v50 = vsel %vm526_vm7, %v4457_v54, %v6753_v36  ;;  %v3406_v36 = vld [vmem:[%s6694_s6] sm:$0xff] }
 0x274   : > { %v3938_v40 = vpack.c.bf16 %v2542_v35, %v2539_v62  ;;  %3935 = vmatpush1.bf16.msra.mxu1 %v3934_v18  ;;  %v5787_v43 = vpop.permute.xlu0 %4485  ;;  %v5789_v3 = vpop.permute.xlu1 %4475  ;;  %v3936_v4 = vpack.c.bf16 %v2543_v50, %v2540_v16  ;;  %v2837_v18 = vld [vmem:[%s6693_s5 + $0x10] sm:$0xff]  ;;  %v4193_v50 = vunpack.i.h.bf16 %v5428_v49  ;;  %v1100_v41 = vsel %vm338_vm0, %v4347_v5, %v4348_v55 }
 0x275   : > { %v4488_v11 = vunpack.i.h.bf16 %v5787_v43  ;;  %v6756_v24 = vunpack.i.l.bf16 %v5787_v43  ;;  %v6852_v5 = vunpack.i.l.bf16 %v5526_v28  ;;  %v3408_v49 = vld [vmem:[%s6694_s6 + $0x10] sm:$0xff]  ;;  %v6853_v28 = vunpack.i.l.bf16 %v5631_v56 }
 0x276   : > { %4760 = vrot.lane.b32.xlu0 %v5319_v60, %s4804_s18  ;;  %2841 = vperm.xlu1 %4148, %v2835_v15   ;;  %v4328_v60 = vunpack.i.h.bf16 %v5600_v63  ;;  %v4327_v15 = vunpack.i.l.bf16 %v5600_v63  ;;  %v4308_v56 = vunpack.i.h.bf16 %v5589_v29 }
 0x277   : > { %v5800_v54 = vsel %vm364_vm1, %v6756_v24, %v4488_v11  ;;  %3937 = vmatprep.subr.bf16.mxu1 %v3936_v4  ;;  %v4213_v11 = vunpack.i.h.bf16 %v5458_v34  ;;  %v4212_v4 = vunpack.i.l.bf16 %v5458_v34 }
 0x278   : > { %6849 = vst [vmem:[#allocation57_spill] sm:$0xff] %v5800_v54  ;;  %3939 = vmatpush1.bf16.msra.mxu1 %v3938_v40  ;;  %v4496_v62 = vpop.permute.xlu0 %4495  ;;  %v5805_v35 = vpop.permute.xlu1 %4490  ;;  %v6871_v54 = vld [vmem:[#allocation32_spill] sm:$0xff] }
 0x279   : > { %6850 = vst [vmem:[#allocation58_spill] sm:$0xff] %v5805_v35  ;;  %v4498_v16 = vunpack.i.h.bf16 %v4496_v62  ;;  %v4497_v39 = vunpack.i.l.bf16 %v4496_v62  ;;  %v1101_v62 = vsel %vm338_vm0, %v4348_v55, %v4482_v48  ;;  %v4243_v48 = vunpack.i.h.bf16 %v5482_v10 }
 0x27a   : > { %4765 = vrot.lane.b32.xlu0 %v6826_v38, %s4802_s16  ;;  %2851 = vperm.xlu1 %4148, %v2837_v18   ;;  %v1283_v34 = vsel %vm364_vm1, %v4213_v11, %v6852_v5  ;;  %v4177_v13 = vunpack.i.l.bf16 %v6871_v54 }
 0x27b   : > { %v5815_v40 = vsel %vm338_vm0, %v4497_v39, %v4498_v16  ;;  %v1098_v63 = vsel %vm338_vm0, %v4328_v60, %v4497_v39  ;;  %v6851_v16 = vunpack.i.l.bf16 %v5556_v12  ;;  %v1097_v39 = vsel %vm338_vm0, %v4327_v15, %v4328_v60 }
 0x27c   : > { %v5825_v26 = vpop.permute.xlu0 %4500  ;;  %v5827_v24 = vpop.permute.xlu1 %4505  ;;  %v3812_v18 = vpack.c.bf16 %v1101_v62, %v1098_v63  ;;  %v3814_v55 = vpack.c.bf16 %v1100_v41, %v1097_v39  ;;  %v4263_v63 = vunpack.i.h.bf16 %v5506_v6  ;;  %v4262_v12 = vunpack.i.l.bf16 %v5506_v6 }
 0x27d   : > { %v1280_v59 = vsel %vm364_vm1, %v4193_v50, %v6851_v16  ;;  %v1282_v60 = vsel %vm364_vm1, %v4212_v4, %v4213_v11  ;;  %v4242_v16 = vunpack.i.l.bf16 %v5482_v10  ;;  %v1279_v6 = vsel %vm364_vm1, %v4192_v32, %v4193_v50  ;;  %v2836_v10 = vld [vmem:[%s6693_s5 + $0x8] sm:$0xff]  ;;  %v3469_v32 = vld [vmem:[#allocation5] sm:$0x1] }
 0x27e   : > { %4775 = vrot.lane.b32.xlu0 %v6826_v38, %s4806_s19  ;;  %3412 = vperm.xlu1 %4148, %v3406_v36   ;;  %v3816_v62 = vpack.c.bf16 %v1283_v34, %v1280_v59  ;;  %v1286_v36 = vsel %vm364_vm1, %v4243_v48, %v6853_v28  ;;  %v4288_v59 = vunpack.i.h.bf16 %v5528_v51  ;;  %v3818_v11 = vpack.c.bf16 %v1282_v60, %v1279_v6 }
 0x27f   : > { %3813 = vmatprep.subr.bf16.mxu0 %v3812_v18  ;;  %v6854_v4 = vunpack.i.l.bf16 %v5598_v61  ;;  %v4307_v18 = vunpack.i.l.bf16 %v5589_v29  ;;  %v1288_v50 = vsel %vm364_vm1, %v4262_v12, %v4263_v63  ;;  %v1285_v29 = vsel %vm364_vm1, %v4242_v16, %v4243_v48 }
 0x280   : > { %3815 = vmatpush1.bf16.msra.mxu0 %v3814_v55  ;;  %v5846_v15 = vpop.permute.xlu0 %4510  ;;  %v5848_v41 = vpop.permute.xlu1 %4515  ;;  %v4287_v55 = vunpack.i.l.bf16 %v5528_v51  ;;  %v6762_v60 = vunpack.i.l.bf16 %v5466_v58  ;;  %v3822_v28 = vpack.c.bf16 %v1288_v50, %v1285_v29  ;;  %v4353_v12 = vunpack.i.h.bf16 %v5659_v14 }
 0x281   : > { %3817 = vmatprep.subr.bf16.mxu0 %v3816_v62  ;;  %v1289_v34 = vsel %vm364_vm1, %v4263_v63, %v6854_v4  ;;  %v6855_v62 = vunpack.i.l.bf16 %v5721_v27  ;;  %v6856_v63 = vunpack.i.l.bf16 %v5678_v37  ;;  %v2838_v27 = vld [vmem:[%s6693_s5 + $0x18] sm:$0xff]  ;;  %v1294_v48 = vsel %vm364_vm1, %v4307_v18, %v4308_v56 }
 0x282   : > { %4785 = vrot.lane.b32.xlu0 %v6826_v38, %s4806_s19  ;;  %3422 = vperm.xlu1 %4148, %v3408_v49   ;;  %v3820_v39 = vpack.c.bf16 %v1289_v34, %v1286_v36  ;;  %v4352_v36 = vunpack.i.l.bf16 %v5659_v14  ;;  %v4218_v16 = vunpack.i.h.bf16 %v5426_v47  ;;  %v1291_v34 = vsel %vm364_vm1, %v4287_v55, %v4288_v59 }
 0x283   : > { %v1292_v49 = vsel %vm364_vm1, %v4288_v59, %v6855_v62  ;;  %v1295_v51 = vsel %vm364_vm1, %v4308_v56, %v6856_v63  ;;  %v4332_v14 = vunpack.i.l.bf16 %v5615_v46  ;;  %v4198_v50 = vunpack.i.h.bf16 %v5436_v52 }
 0x284   : > { %3819 = vmatpush1.bf16.msra.mxu0 %v3818_v11  ;;  %v5868_v5 = vpop.permute.xlu0 %4520  ;;  %v5870_v61 = vpop.permute.xlu1 %4525  ;;  %v3824_v6 = vpack.c.bf16 %v1295_v51, %v1292_v49  ;;  %v6764_v11 = vunpack.i.l.bf16 %v5426_v47  ;;  %v4228_v56 = vunpack.i.h.bf16 %v5466_v58  ;;  %v3826_v18 = vpack.c.bf16 %v1294_v48, %v1291_v34 }
 0x285   : > { %3821 = vmatprep.subr.bf16.mxu0 %v3820_v39  ;;  %v4333_v39 = vunpack.i.h.bf16 %v5615_v46  ;;  %v1483_v62 = vsel %vm390_vm2, %v4218_v16, %v6762_v60  ;;  %v3407_v46 = vld [vmem:[%s6694_s6 + $0x8] sm:$0xff]  ;;  %v6859_v55 = vunpack.i.l.bf16 %v5787_v43  ;;  %v6759_v63 = vunpack.i.h.bf16 %v5514_v53 }
 0x286   : > { %2846 = vperm.xlu0 %4147, %v2836_v10   ;;  %3472 = vperm.xlu1 %4148, %v3469_v32   ;;  %v4272_v51 = vunpack.i.l.bf16 %v5514_v53  ;;  %v4197_v34 = vunpack.i.l.bf16 %v5436_v52  ;;  %v1482_v52 = vsel %vm390_vm2, %v4228_v56, %v4218_v16  ;;  %v6763_v16 = vunpack.i.h.bf16 %v5480_v33 }
 0x287   : > { %v1301_v29 = vsel %vm364_vm1, %v4353_v12, %v6859_v55  ;;  %v1297_v43 = vsel %vm364_vm1, %v4332_v14, %v4333_v39  ;;  %v4292_v14 = vunpack.i.l.bf16 %v5537_v21  ;;  %v4317_v56 = vunpack.i.l.bf16 %v5480_v33 }
 0x288   : > { %3823 = vmatpush1.bf16.msra.mxu0 %v3822_v28  ;;  %v4531_v4 = vpop.permute.xlu0 %4530  ;;  %v5888_v37 = vpop.permute.xlu1 %4540  ;;  %v1300_v28 = vsel %vm364_vm1, %v4352_v36, %v4353_v12  ;;  %v4247_v12 = vunpack.i.l.bf16 %v5450_v2 }
 0x289   : > { %6857 = vst [vmem:[#allocation59_spill] sm:$0xff] %v5888_v37  ;;  %v4533_v10 = vunpack.i.h.bf16 %v4531_v4  ;;  %v4532_v32 = vunpack.i.l.bf16 %v4531_v4  ;;  %3825 = vmatprep.subr.bf16.mxu0 %v3824_v6  ;;  %v3830_v36 = vpack.c.bf16 %v1300_v28, %v1297_v43  ;;  %v1479_v28 = vsel %vm390_vm2, %v4197_v34, %v4198_v50 }
 0x28a   : > { %2856 = vperm.xlu0 %4147, %v2838_v27  }
 0x28b   : > { %v5899_v49 = vsel %vm364_vm1, %v4532_v32, %v4533_v10  ;;  %v1298_v59 = vsel %vm364_vm1, %v4333_v39, %v4532_v32  ;;  %v6760_v10 = vunpack.i.h.bf16 %v5450_v2  ;;  %v1480_v32 = vsel %vm390_vm2, %v4198_v50, %v6764_v11 }
 0x28c   : > { %6858 = vst [vmem:[#allocation60_spill] sm:$0xff] %v5899_v49  ;;  %3827 = vmatpush1.bf16.msra.mxu0 %v3826_v18  ;;  %v5913_v27 = vpop.permute.xlu0 %4535  ;;  %v5915_v48 = vpop.permute.xlu1 %4550  ;;  %v3828_v4 = vpack.c.bf16 %v1301_v29, %v1298_v59  ;;  %v3832_v18 = vpack.c.bf16 %v1483_v62, %v1480_v32  ;;  %v3409_v59 = vld [vmem:[%s6694_s6 + $0x18] sm:$0xff]  ;;  %v6761_v39 = vunpack.i.h.bf16 %v5537_v21  ;;  %v1489_v29 = vsel %vm390_vm2, %v4272_v51, %v6759_v63 }
 0x28d   : > { %v4153_v62 = vunpack.i.h.bf16 %v5406_v45  ;;  %v1486_v43 = vsel %vm390_vm2, %v4247_v12, %v6760_v10  ;;  %v6765_v63 = vunpack.i.h.bf16 %v5665_v44 }
 0x28e   : > { %3417 = vperm.xlu0 %4147, %v3407_v46   ;;  %3829 = vmatprep.subr.bf16.mxu0 %v3828_v4  ;;  %v3834_v4 = vpack.c.bf16 %v1482_v52, %v1479_v28  ;;  %v3836_v32 = vpack.c.bf16 %v1489_v29, %v1486_v43  ;;  %v4157_v52 = vunpack.i.l.bf16 %v5378_v7  ;;  %v4337_v29 = vunpack.i.l.bf16 %v5496_v20 }
 0x28f   : > { %v1488_v6 = vsel %vm390_vm2, %v4153_v62, %v4272_v51  ;;  %v6766_v51 = vunpack.i.h.bf16 %v5496_v20  ;;  %v1495_v28 = vsel %vm390_vm2, %v4317_v56, %v6763_v16  ;;  %v4252_v43 = vunpack.i.l.bf16 %v5490_v0 }
 0x290   : > { %3831 = vmatpush1.bf16.msra.mxu0 %v3830_v36  ;;  %v5930_v55 = vpop.permute.xlu0 %4545  ;;  %v5932_v46 = vpop.permute.xlu1 %4565  ;;  %v4152_v36 = vunpack.i.l.bf16 %v5406_v45 }
 0x291   : > { %3833 = vmatprep.subr.bf16.mxu0 %v3832_v18  ;;  %v4362_v18 = vunpack.i.l.bf16 %v5665_v44 }
 0x292   : > { %3427 = vperm.xlu0 %4147, %v3409_v59   ;;  %v1492_v59 = vsel %vm390_vm2, %v4292_v14, %v6761_v39  ;;  %v1485_v45 = vsel %vm390_vm2, %v4152_v36, %v4247_v12  ;;  %v1491_v39 = vsel %vm390_vm2, %v4157_v52, %v4292_v14  ;;  %v6767_v12 = vunpack.i.h.bf16 %v5444_v42 }
 0x293   : > { %v3838_v62 = vpack.c.bf16 %v1488_v6, %v1485_v45  ;;  %v3840_v10 = vpack.c.bf16 %v1495_v28, %v1492_v59  ;;  %v4202_v36 = vunpack.i.l.bf16 %v5444_v42  ;;  %v4163_v45 = vunpack.i.h.bf16 %v5418_v30 }
 0x294   : > { %3835 = vmatpush1.bf16.msra.mxu0 %v3834_v4  ;;  %v5948_v50 = vpop.permute.xlu0 %4555  ;;  %v5950_v34 = vpop.permute.xlu1 %4570  ;;  %v4158_v4 = vunpack.i.h.bf16 %v5378_v7  ;;  %v1501_v7 = vsel %vm390_vm2, %v4362_v18, %v6765_v63  ;;  %v1498_v52 = vsel %vm390_vm2, %v4337_v29, %v6766_v51 }
 0x295   : > { %3837 = vmatprep.subr.bf16.mxu0 %v3836_v32  ;;  %v4232_v32 = vunpack.i.l.bf16 %v5442_v57  ;;  %v3844_v28 = vpack.c.bf16 %v1501_v7, %v1498_v52  ;;  %v1500_v16 = vsel %vm390_vm2, %v4163_v45, %v4362_v18  ;;  %v4167_v18 = vunpack.i.l.bf16 %v5385_v17  ;;  %v6863_v45 = vld [vmem:[#allocation34_spill] sm:$0xff] }
 0x296   : > { %v1494_v14 = vsel %vm390_vm2, %v4158_v4, %v4317_v56  ;;  %v6862_v56 = vunpack.i.h.bf16 %v5442_v57  ;;  %v4168_v4 = vunpack.i.h.bf16 %v5385_v17 }
 0x297   : > { %v3842_v59 = vpack.c.bf16 %v1494_v14, %v1491_v39  ;;  %v1680_v39 = vsel %vm416_vm3, %v4202_v36, %v6767_v12  ;;  %v6777_v14 = vunpack.i.h.bf16 %v6863_v45  ;;  %v1679_v11 = vsel %vm416_vm3, %v4167_v18, %v4202_v36  ;;  %v6869_v36 = vld [vmem:[#allocation35_spill] sm:$0xff] }
 0x298   : > { %3839 = vmatpush1.bf16.msra.mxu0 %v3838_v62  ;;  %v5968_v60 = vpop.permute.xlu0 %4560  ;;  %v5970_v6 = vpop.permute.xlu1 %4580  ;;  %v4162_v62 = vunpack.i.l.bf16 %v5418_v30  ;;  %v1683_v30 = vsel %vm416_vm3, %v4232_v32, %v6862_v56  ;;  %v1682_v12 = vsel %vm416_vm3, %v4168_v4, %v4232_v32  ;;  %v4297_v56 = vunpack.i.l.bf16 %v6864_v23  ;;  %v6870_v4 = vld [vmem:[#allocation47_spill] sm:$0xff] }
 0x299   : > { %6860 = vst [vmem:[#allocation61_spill] sm:$0xff] %v5968_v60  ;;  %3841 = vmatprep.subr.bf16.mxu0 %v3840_v10  ;;  %v3848_v51 = vpack.c.bf16 %v1683_v30, %v1680_v39  ;;  %v4322_v32 = vunpack.i.l.bf16 %v6869_v36  ;;  %v6872_v30 = vld [vmem:[#allocation33_spill] sm:$0xff] }
 0x29a   : > { %v1497_v7 = vsel %vm390_vm2, %v4162_v62, %v4337_v29  ;;  %v6867_v29 = vunpack.i.h.bf16 %v5490_v0 }
 0x29b   : > { %v3846_v52 = vpack.c.bf16 %v1500_v16, %v1497_v7  ;;  %v4342_v7 = vunpack.i.l.bf16 %v6870_v4 }
 0x29c   : > { %3843 = vmatpush1.bf16.msra.mxu0 %v3842_v59  ;;  %v5984_v63 = vpop.permute.xlu0 %4575  ;;  %v5986_v10 = vpop.permute.xlu1 %4590  ;;  %v4277_v59 = vunpack.i.l.bf16 %v6863_v45  ;;  %v1686_v62 = vsel %vm416_vm3, %v4252_v43, %v6867_v29  ;;  %v4178_v29 = vunpack.i.h.bf16 %v6871_v54  ;;  %v4182_v54 = vunpack.i.l.bf16 %v6872_v30 }
 0x29d   : > { %6861 = vst [vmem:[#allocation62_spill] sm:$0xff] %v5986_v10  ;;  %3845 = vmatprep.subr.bf16.mxu0 %v3844_v28  ;;  %v6868_v28 = vld [vmem:[#allocation31_spill] sm:$0xff] }
 0x29e   : > { %v4173_v16 = vunpack.i.h.bf16 %v6868_v28  ;;  %v4172_v39 = vunpack.i.l.bf16 %v6868_v28  ;;  %v1689_v31 = vsel %vm416_vm3, %v4277_v59, %v6777_v14 }
 0x29f   : > { %v3852_v1 = vpack.c.bf16 %v1689_v31, %v1686_v62 }
 0x2a0   : > { %3847 = vmatpush1.bf16.msra.mxu0 %v3846_v52  ;;  %v6003_v49 = vpop.permute.xlu0 %4585  ;;  %v6005_v17 = vpop.permute.xlu1 %4600  ;;  %v3850_v52 = vpack.c.bf16 %v1682_v12, %v1679_v11  ;;  %v1685_v28 = vsel %vm416_vm3, %v4172_v39, %v4252_v43  ;;  %v6876_v12 = vunpack.i.h.bf16 %v6864_v23  ;;  %v1688_v31 = vsel %vm416_vm3, %v4173_v16, %v4277_v59 }
 0x2a1   : > { %6865 = vst [vmem:[#allocation34_spill] sm:$0xff] %v6003_v49  ;;  %6866 = vst [vmem:[#allocation40_spill] sm:$0xff] %v6005_v17  ;;  %3849 = vmatprep.subr.bf16.mxu0 %v3848_v51  ;;  %v4183_v17 = vunpack.i.h.bf16 %v6872_v30  ;;  %v6873_v49 = vld [vmem:[#allocation37_spill] sm:$0xff]  ;;  %v6877_v43 = vunpack.i.h.bf16 %v6869_v36  ;;  %v1691_v39 = vsel %vm416_vm3, %v4177_v13, %v4297_v56  ;;  %v4402_v51 = vunpack.i.l.bf16 %v5705_v25  ;;  %v6879_v36 = vld [vmem:[#allocation36_spill] sm:$0xff] }
 0x2a2   : > { %v4367_v18 = vunpack.i.l.bf16 %v6873_v49  ;;  %v1692_v14 = vsel %vm416_vm3, %v4297_v56, %v6876_v12  ;;  %v1694_v16 = vsel %vm416_vm3, %v4178_v29, %v4322_v32  ;;  %v4357_v13 = vunpack.i.l.bf16 %v6879_v36 }
 0x2a3   : > { %v1695_v62 = vsel %vm416_vm3, %v4322_v32, %v6877_v43  ;;  %v4358_v43 = vunpack.i.h.bf16 %v6879_v36  ;;  %v1697_v29 = vsel %vm416_vm3, %v4182_v54, %v4342_v7  ;;  %v6887_v54 = vunpack.i.h.bf16 %v5805_v35 }
 0x2a4   : > { %3851 = vmatpush1.bf16.msra.mxu0 %v3850_v52  ;;  %v6025_v10 = vpop.permute.xlu0 %4595  ;;  %v6027_v11 = vpop.permute.xlu1 %4615  ;;  %v4403_v52 = vunpack.i.h.bf16 %v5705_v25  ;;  %v3856_v59 = vpack.c.bf16 %v1695_v62, %v1692_v14  ;;  %v6883_v62 = vld [vmem:[#allocation50_spill] sm:$0xff] }
 0x2a5   : > { %6874 = vst [vmem:[#allocation31_spill] sm:$0xff] %v6025_v10  ;;  %6875 = vst [vmem:[#allocation32_spill] sm:$0xff] %v6027_v11  ;;  %3853 = vmatprep.subr.bf16.mxu0 %v3852_v1  ;;  %v3854_v11 = vpack.c.bf16 %v1688_v31, %v1685_v28  ;;  %v6878_v10 = vunpack.i.h.bf16 %v6870_v4  ;;  %v4492_v1 = vunpack.i.l.bf16 %v5805_v35  ;;  %v3858_v28 = vpack.c.bf16 %v1694_v16, %v1691_v39 }
 0x2a6   : > { %v6882_v31 = vunpack.i.h.bf16 %v6873_v49  ;;  %v4443_v36 = vunpack.i.h.bf16 %v6883_v62  ;;  %v6884_v4 = vunpack.i.l.bf16 %v5426_v47  ;;  %v6885_v16 = vunpack.i.l.bf16 %v5466_v58 }
 0x2a7   : > { %v1698_v12 = vsel %vm416_vm3, %v4342_v7, %v6878_v10  ;;  %v2548_v30 = vsel %vm526_vm7, %v4358_v43, %v4492_v1 }
 0x2a8   : > { %3855 = vmatpush1.bf16.msra.mxu0 %v3854_v11  ;;  %v6048_v56 = vpop.permute.xlu0 %4605  ;;  %v6050_v25 = vpop.permute.xlu1 %4625  ;;  %v1701_v10 = vsel %vm416_vm3, %v4367_v18, %v6882_v31  ;;  %v4442_v11 = vunpack.i.l.bf16 %v6883_v62  ;;  %v1481_v39 = vsel %vm390_vm2, %v6884_v4, %v4402_v51  ;;  %v1484_v31 = vsel %vm390_vm2, %v6885_v16, %v4403_v52 }
 0x2a9   : > { %6880 = vst [vmem:[#allocation33_spill] sm:$0xff] %v6048_v56  ;;  %6881 = vst [vmem:[#allocation37_spill] sm:$0xff] %v6050_v25  ;;  %v4607_v14 = vunpack.i.l.bf16 %v6048_v56  ;;  %3857 = vmatprep.subr.bf16.mxu0 %v3856_v59  ;;  %v3860_v32 = vpack.c.bf16 %v1701_v10, %v1698_v12  ;;  %v6886_v12 = vunpack.i.h.bf16 %v6048_v56  ;;  %v2549_v59 = vsel %vm526_vm7, %v4492_v1, %v6887_v54  ;;  %v6895_v54 = vld [vmem:[#allocation39_spill] sm:$0xff]  ;;  %v6962_v56 = vld [vmem:[#allocation52_spill] sm:$0xff] }
 0x2aa   : > { %v1700_v51 = vsel %vm416_vm3, %v4183_v17, %v4367_v18  ;;  %v3944_v43 = vpack.c.bf16 %v1484_v31, %v1481_v39  ;;  %v6889_v1 = vunpack.i.h.bf16 %v5514_v53  ;;  %v4508_v17 = vunpack.i.h.bf16 %v5827_v24  ;;  %v6092_v18 = vld [vmem:[%s6692_s4 + $0x20] sm:$0xff] }
 0x2ab   : > { %v2545_v25 = vsel %vm526_vm7, %v4357_v13, %v4607_v14  ;;  %v2546_v7 = vsel %vm526_vm7, %v4607_v14, %v6886_v12  ;;  %v3862_v52 = vpack.c.bf16 %v1700_v51, %v1697_v29  ;;  %v6888_v13 = vunpack.i.h.bf16 %v5450_v2  ;;  %6890 = vst [vmem:[#allocation36_spill] sm:$0xff] %v6092_v18 }
 0x2ac   : > { %v3942_v10 = vpack.c.bf16 %v2548_v30, %v2545_v25  ;;  %3859 = vmatpush1.bf16.msra.mxu0 %v3858_v28  ;;  %v6074_v47 = vpop.permute.xlu0 %4610  ;;  %v6076_v4 = vpop.permute.xlu1 %4645  ;;  %v3940_v58 = vpack.c.bf16 %v2549_v59, %v2546_v7  ;;  %v1490_v30 = vsel %vm390_vm2, %v6889_v1, %v4443_v36  ;;  %v4478_v25 = vunpack.i.h.bf16 %v5789_v3  ;;  %v6891_v36 = vld [vmem:[#allocation10_spill] sm:$0xff] }
 0x2ad   : > { %3861 = vmatprep.subr.bf16.mxu0 %v3860_v32  ;;  %v1487_v14 = vsel %vm390_vm2, %v6888_v13, %v4442_v11  ;;  %v4477_v28 = vunpack.i.l.bf16 %v5789_v3  ;;  %v4502_v32 = vunpack.i.l.bf16 %v5825_v26  ;;  %v6783_v2 = vunpack.i.h.bf16 %v5825_v26  ;;  %v6103_v3 = vld [vmem:[%s6692_s4] sm:$0xff]  ;;  %v6892_v11 = vld [vmem:[#allocation8_spill] sm:$0xff] }
 0x2ae   : > { %3941 = vmatprep.subr.bf16.mxu1 %v3940_v58  ;;  %v4507_v53 = vunpack.i.l.bf16 %v5827_v24  ;;  %v6893_v39 = vpack.c.bf16 %v6891_v36, %v6892_v11  ;;  %v4407_v16 = vunpack.i.l.bf16 %v5723_v22  ;;  %v3948_v24 = vpack.c.bf16 %v1490_v30, %v1487_v14  ;;  %v6894_v7 = vld [vmem:[#allocation38_spill] sm:$0xff]  ;;  %v6900_v30 = vld [vmem:[#allocation9_spill] sm:$0xff] }
 0x2af   : > { %3943 = vmatpush1.bf16.msra.mxu1 %v3942_v10  ;;  %v6784_v31 = vunpack.i.h.bf16 %v5723_v22  ;;  %v6113_v12 = vsel %vm448_vm4, %v4508_v17, %v4502_v32  ;;  %v6896_v59 = vpack.c.bf16 %v6894_v7, %v6895_v54  ;;  %v6897_v10 = vunpack.i.h.bf16 %v5537_v21  ;;  %v6901_v21 = vld [vmem:[#allocation7_spill] sm:$0xff]  ;;  %v6904_v7 = vld [vmem:[#allocation12_spill] sm:$0xff] }
 0x2b0   : > { %3863 = vmatpush1.bf16.msra.mxu0 %v3862_v52  ;;  %v6096_v29 = vpop.permute.xlu0 %4620  ;;  %v6098_v62 = vpop.permute.xlu1 %4655  ;;  %3945 = vmatprep.subr.bf16.mxu1 %v3944_v43  ;;  %v6898_v51 = vunpack.i.h.bf16 %v5480_v33  ;;  %v6128_v43 = vld [vmem:[%s6692_s4 + $0x48] sm:$0xff]  ;;  %v6131_v13 = vsel %vm448_vm4, %v4507_v53, %v4407_v16  ;;  %v4513_v14 = vunpack.i.h.bf16 %v5846_v15  ;;  %v4512_v1 = vunpack.i.l.bf16 %v5846_v15 }
 0x2b1   : > { %3865 = vmatprep.subr.bf16.mxu0 %v6893_v39  ;;  %v1493_v58 = vsel %vm390_vm2, %v6897_v10, %v4477_v28  ;;  %6899 = vst [vmem:[#allocation50_spill] sm:$0xff] %v6128_v43  ;;  %v6902_v17 = vpack.c.bf16 %v6900_v30, %v6901_v21  ;;  %v4517_v36 = vunpack.i.l.bf16 %v5848_v41  ;;  %v4522_v15 = vunpack.i.l.bf16 %v5868_v5  ;;  %v6903_v39 = vld [vmem:[#allocation14_spill] sm:$0xff]  ;;  %v6906_v21 = vld [vmem:[#allocation44_spill] sm:$0xff] }
 0x2b2   : > { %3589 = vmatmul.mubr.msk.f32.vlgmr.msra.gmra.mrb[24].mxu1 %vm2859_vm9, %v6092_v18  ;;  %v1496_v52 = vsel %vm390_vm2, %v6898_v51, %v4478_v25  ;;  %v6145_v25 = vsel %vm448_vm4, %v4502_v32, %v6783_v2  ;;  %v4528_v11 = vunpack.i.h.bf16 %v5870_v61  ;;  %v6905_v54 = vpack.c.bf16 %v6903_v39, %v6904_v7 }
 0x2b3   : > { %2937 = vmatmul.mubr.f32.vlgmr.msra.gmra.mrb[0].mxu0 %v6103_v3  ;;  %3947 = vmatpush3.bf16.msra.mxu1 %v6896_v59  ;;  %v4527_v59 = vunpack.i.l.bf16 %v5870_v61  ;;  %v3952_v10 = vpack.c.bf16 %v1496_v52, %v1493_v58  ;;  %v4537_v30 = vunpack.i.l.bf16 %v5913_v27  ;;  %v6174_v7 = vsel %vm448_vm4, %v4407_v16, %v6784_v31  ;;  %v6180_v61 = vld [vmem:[%s6692_s4 + $0x70] sm:$0xff]  ;;  %v6910_v52 = vld [vmem:[#allocation13_spill] sm:$0xff] }
 0x2b4   : > { %3867 = vmatpush1.bf16.msra.mxu0 %v6902_v17  ;;  %v6138_v28 = vpop.permute.xlu0 %4630  ;;  %v6140_v33 = vpop.permute.xlu1 %4665  ;;  %3949 = vmatprep.subr.bf16.mxu1 %v3948_v24  ;;  %v6158_v24 = vld [vmem:[%s6692_s4 + $0x30] sm:$0xff]  ;;  %v6907_v17 = vld [vmem:[#allocation46_spill] sm:$0xff]  ;;  %6909 = vst [vmem:[#allocation10_spill] sm:$0xff] %v6180_v61  ;;  %v4538_v58 = vunpack.i.h.bf16 %v5913_v27  ;;  %v6915_v51 = vunpack.i.h.bf16 %v5442_v57  ;;  %v6951_v18 = vunpack.i.h.bf16 %v5968_v60 }
 0x2b5   : > { %3869 = vmatprep.subr.bf16.mxu0 %v6905_v54  ;;  %3120 = vmatprep.mubr.f32.mxu1 %v6826_v38  ;;  %v6908_v39 = vpack.c.bf16 %v6906_v21, %v6907_v17  ;;  %v6911_v54 = vld [vmem:[#allocation11_spill] sm:$0xff]  ;;  %v6917_v16 = vld [vmem:[#allocation16_spill] sm:$0xff] }
 0x2b6   : > { %3590 = vmatmul.mubr.msk.f32.gmra.mrb[26].mxu1 %vm2859_vm9, %v6128_v43  ;;  %2942 = vmatprep.mubr.f32.mxu0 %v6158_v24  ;;  %v6912_v2 = vpack.c.bf16 %v6910_v52, %v6911_v54  ;;  %v1684_v32 = vsel %vm416_vm3, %v6915_v51, %v4513_v14  ;;  %v6199_v27 = vld [vmem:[%s6692_s4 + $0x28] sm:$0xff]  ;;  %v6215_v14 = vld [vmem:[%s6692_s4 + $0x58] sm:$0xff]  ;;  %v4542_v51 = vunpack.i.l.bf16 %v5888_v37 }
 0x2b7   : > { %3951 = vmatpush3.bf16.msra.mxu1 %v6908_v39  ;;  %3126 = vmatprep.mubr.f32.mxu1 %v6826_v38  ;;  %v6914_v39 = vunpack.i.h.bf16 %v5444_v42  ;;  %v6916_v54 = vld [vmem:[#allocation18_spill] sm:$0xff]  ;;  %v6919_v42 = vunpack.i.h.bf16 %v5848_v41 }
 0x2b8   : > { %3871 = vmatpush1.bf16.msra.mxu0 %v6912_v2  ;;  %v4636_v21 = vpop.permute.xlu0 %4635  ;;  %v6186_v17 = vpop.permute.xlu1 %4670  ;;  %3953 = vmatprep.subr.bf16.mxu1 %v3952_v10  ;;  %v6202_v2 = vsel %vm448_vm4, %v4528_v11, %v4522_v15  ;;  %v6918_v53 = vpack.c.bf16 %v6916_v54, %v6917_v16  ;;  %v4552_v16 = vunpack.i.l.bf16 %v5915_v48  ;;  %v6923_v54 = vunpack.i.h.bf16 %v5665_v44  ;;  %v6249_v11 = vld [vmem:[%s6692_s4 + $0x98] sm:$0xff] }
 0x2b9   : > { %6913 = vst [vmem:[#allocation8_spill] sm:$0xff] %v6186_v17  ;;  %v1681_v31 = vsel %vm416_vm3, %v6914_v39, %v4512_v1  ;;  %v4638_v10 = vunpack.i.h.bf16 %v4636_v21  ;;  %v4637_v52 = vunpack.i.l.bf16 %v4636_v21  ;;  %v6210_v57 = vsel %vm448_vm4, %v4517_v36, %v6919_v42  ;;  %2943 = vmatmul.mubr.f32.gmra.mrb[2].mxu0 %v6199_v27  ;;  %6925 = vst [vmem:[#allocation38_spill] sm:$0xff] %v6249_v11 }
 0x2ba   : > { %3873 = vmatprep.subr.bf16.mxu0 %v6918_v53  ;;  %v6219_v1 = vsel %vm448_vm4, %v4527_v59, %v4517_v36  ;;  %v6920_v53 = vunpack.i.h.bf16 %v5868_v5  ;;  %3591 = vmatmul.mubr.msk.f32.gmra.mrb[28].mxu1 %vm2859_vm9, %v6180_v61  ;;  %v6921_v36 = vpack.c.bf16 %v5674_v19, %v5714_v8  ;;  %v6922_v59 = vunpack.i.h.bf16 %v5496_v20  ;;  %v6926_v8 = vld [vmem:[#allocation17_spill] sm:$0xff] }
 0x2bb   : > { %2948 = vmatprep.mubr.f32.mxu0 %v6215_v14  ;;  %v6924_v42 = vunpack.i.h.bf16 %v5490_v0  ;;  %v4547_v20 = vunpack.i.l.bf16 %v5930_v55  ;;  %3132 = vmatprep.mubr.f32.mxu1 %v6826_v38  ;;  %v3960_v19 = vpack.c.bf16 %v1684_v32, %v1681_v31  ;;  %v4553_v38 = vunpack.i.h.bf16 %v5915_v48  ;;  %v6944_v61 = vld [vmem:[#allocation41_spill] sm:$0xff] }
 0x2bc   : > { %v6226_v21 = vsel %vm448_vm4, %v4522_v15, %v6920_v53  ;;  %3955 = vmatpush3.bf16.msra.mxu1 %v6921_v36  ;;  %v1499_v39 = vsel %vm390_vm2, %v6922_v59, %v4637_v52  ;;  %v1502_v15 = vsel %vm390_vm2, %v6923_v54, %v4638_v10  ;;  %v6927_v52 = vld [vmem:[#allocation15_spill] sm:$0xff]  ;;  %v6256_v44 = vpop.permute.xlu0 %4640  ;;  %v6258_v10 = vpop.permute.xlu1 %4685  ;;  %v6288_v31 = vsel %vm448_vm4, %v4552_v16, %v4542_v51 }
 0x2bd   : > { %v6244_v53 = vsel %vm416_vm3, %v6924_v42, %v4537_v30  ;;  %v6928_v36 = vpack.c.bf16 %v6926_v8, %v6927_v52  ;;  %v3956_v0 = vpack.c.bf16 %v1502_v15, %v1499_v39  ;;  %v6929_v30 = vunpack.i.h.bf16 %v6863_v45  ;;  %v6267_v54 = vld [vmem:[%s6692_s4 + $0x50] sm:$0xff]  ;;  %v6930_v8 = vld [vmem:[#allocation22_spill] sm:$0xff] }
 0x2be   : > { %v6931_v52 = vld [vmem:[#allocation20_spill] sm:$0xff]  ;;  %v3884_v45 = vpack.c.bf16 %v6226_v21, %v6210_v57  ;;  %2949 = vmatmul.mubr.f32.gmra.mrb[4].mxu0 %v6267_v54  ;;  %v4557_v39 = vunpack.i.l.bf16 %v5948_v50  ;;  %v6933_v15 = vunpack.i.h.bf16 %v5888_v37  ;;  %3592 = vmatmul.mubr.msk.f32.gmra.mrb[30].mxu1 %vm2859_vm9, %v6249_v11  ;;  %v4568_v32 = vunpack.i.h.bf16 %v5932_v46  ;;  %v4789_v21 = vld [vmem:[%s6692_s4 + $0x8] sm:$0xff] }
 0x2bf   : > { %3875 = vmatpush1.bf16.msra.mxu0 %v6928_v36  ;;  %v1690_v59 = vsel %vm416_vm3, %v6929_v30, %v4538_v58  ;;  %v6932_v36 = vpack.c.bf16 %v6930_v8, %v6931_v52  ;;  %v4558_v58 = vunpack.i.h.bf16 %v5948_v50  ;;  %3957 = vmatprep.subr.bf16.mxu1 %v3956_v0  ;;  %v4577_v48 = vunpack.i.l.bf16 %v5984_v63  ;;  %v6935_v8 = vld [vmem:[#allocation21_spill] sm:$0xff]  ;;  %v6936_v52 = vld [vmem:[#allocation19_spill] sm:$0xff]  ;;  %v6943_v11 = vld [vmem:[#allocation62_spill] sm:$0xff] }
 0x2c0   : > { %v6283_v30 = vsel %vm448_vm4, %v4542_v51, %v6933_v15  ;;  %v6934_v57 = vpack.c.bf16 %v5775_v9, %v5815_v40  ;;  %v3964_v50 = vpack.c.bf16 %v1690_v59, %v6244_v53  ;;  %3203 = vmatprep.mubr.f32.mxu1 %v4789_v21  ;;  %v6300_v0 = vsel %vm448_vm4, %v4553_v38, %v4547_v20  ;;  %v6307_v9 = vpop.permute.xlu0 %4650  ;;  %v6309_v40 = vpop.permute.xlu1 %4695  ;;  %v6317_v38 = vld [vmem:[%s6692_s4 + $0x80] sm:$0xff]  ;;  %v6322_v15 = vld [vmem:[%s6692_s4 + $0x18] sm:$0xff]  ;;  %v6941_v42 = vld [vmem:[#allocation35_spill] sm:$0xff] }
 0x2c1   : > { %3877 = vmatprep.subr.bf16.mxu0 %v6932_v36  ;;  %v6937_v36 = vpack.c.bf16 %v6935_v8, %v6936_v52  ;;  %v6938_v53 = vunpack.i.h.bf16 %v5930_v55  ;;  %v4572_v21 = vunpack.i.l.bf16 %v5950_v34  ;;  %v4583_v8 = vunpack.i.h.bf16 %v5970_v6  ;;  %v6334_v52 = vld [vmem:[%s6692_s4 + $0x78] sm:$0xff]  ;;  %2954 = vmatprep.mubr.f32.mxu0 %v6317_v38 }
 0x2c2   : > { %3959 = vmatpush3.bf16.msra.mxu1 %v6934_v57  ;;  %v4573_v57 = vunpack.i.h.bf16 %v5950_v34  ;;  %v6940_v34 = vunpack.i.h.bf16 %v6864_v23  ;;  %v6942_v16 = vunpack.i.h.bf16 %v6941_v42  ;;  %2955 = vmatmul.mubr.f32.gmra.mrb[6].mxu0 %v6334_v52  ;;  %v6945_v23 = vld [vmem:[#allocation42_spill] sm:$0xff]  ;;  %v6967_v37 = vunpack.i.h.bf16 %v6873_v49 }
 0x2c3   : > { %3879 = vmatpush1.bf16.msra.mxu0 %v6937_v36  ;;  %3961 = vmatprep.subr.bf16.mxu1 %v3960_v19  ;;  %v1943_v59 = vsel %vm448_vm4, %v4547_v20, %v6938_v53  ;;  %v4562_v19 = vunpack.i.l.bf16 %v5968_v60  ;;  %v6939_v20 = vpack.c.bf16 %v6145_v25, %v6174_v7  ;;  %v4582_v53 = vunpack.i.l.bf16 %v5970_v6  ;;  %v6947_v42 = vld [vmem:[#allocation34_spill] sm:$0xff] }
 0x2c4   : > { %v1693_v51 = vsel %vm416_vm3, %v6940_v34, %v4557_v39  ;;  %v1696_v25 = vsel %vm416_vm3, %v6942_v16, %v4558_v58  ;;  %v3890_v7 = vpack.c.bf16 %v6300_v0, %v6288_v31  ;;  %v4592_v6 = vunpack.i.l.bf16 %v6943_v11  ;;  %3025 = vmatprep.mubr.f32.mxu0 %v6322_v15  ;;  %v6363_v0 = vpop.permute.xlu0 %4660 }
 0x2c5   : > { %3881 = vmatprep.subr.bf16.mxu0 %v6939_v20  ;;  %v6349_v20 = vsel %vm474_vm5, %v4583_v8, %v4577_v48  ;;  %v6946_v43 = vpack.c.bf16 %v6944_v61, %v6945_v23  ;;  %v4587_v58 = vunpack.i.l.bf16 %v6947_v42  ;;  %v4672_v16 = vunpack.i.l.bf16 %v6186_v17  ;;  %v6365_v8 = vpop.permute.xlu1 %4705 }
 0x2c6   : > { %v6948_v31 = vpack.c.bf16 %v6113_v12, %v6131_v13  ;;  %v6949_v61 = vunpack.i.h.bf16 %v5984_v63  ;;  %v1948_v34 = vsel %vm448_vm4, %v4568_v32, %v4562_v19  ;;  %v3888_v23 = vpack.c.bf16 %v1943_v59, %v6283_v30  ;;  %v6952_v32 = vld [vmem:[#allocation40_spill] sm:$0xff] }
 0x2c7   : > { %3963 = vmatpush3.bf16.msra.mxu1 %v6946_v43  ;;  %v3968_v39 = vpack.c.bf16 %v1696_v25, %v1693_v51  ;;  %v6375_v36 = vsel %vm474_vm5, %v4572_v21, %v4573_v57  ;;  %v6378_v12 = vsel %vm474_vm5, %v4582_v53, %v4572_v21  ;;  %v4588_v13 = vunpack.i.h.bf16 %v6947_v42  ;;  %v6953_v51 = vld [vmem:[#allocation45_spill] sm:$0xff]  ;;  %v6954_v59 = vld [vmem:[#allocation48_spill] sm:$0xff] }
 0x2c8   : > { %3883 = vmatpush1.bf16.msra.mxu0 %v6948_v31  ;;  %3965 = vmatprep.subr.bf16.mxu1 %v3964_v50  ;;  %v6370_v43 = vsel %vm474_vm5, %v4577_v48, %v6949_v61  ;;  %v6950_v50 = vld [vmem:[#allocation31_spill] sm:$0xff]  ;;  %v1949_v48 = vsel %vm448_vm4, %v4562_v19, %v6951_v18  ;;  %v4603_v30 = vunpack.i.h.bf16 %v6952_v32  ;;  %v6955_v25 = vpack.c.bf16 %v6953_v51, %v6954_v59  ;;  %v6959_v59 = vld [vmem:[#allocation32_spill] sm:$0xff] }
 0x2c9   : > { %3885 = vmatprep.subr.bf16.mxu0 %v3884_v45  ;;  %v4597_v31 = vunpack.i.l.bf16 %v6950_v50  ;;  %v3896_v21 = vpack.c.bf16 %v6370_v43, %v6375_v36  ;;  %v6956_v53 = vunpack.i.h.bf16 %v6943_v11  ;;  %v4602_v61 = vunpack.i.l.bf16 %v6952_v32  ;;  %v4676_v45 = vpop.permute.xlu0 %4675  ;;  %v6403_v35 = vpop.permute.xlu1 %4715 }
 0x2ca   : > { %v4598_v18 = vunpack.i.h.bf16 %v6950_v50  ;;  %v6957_v19 = vpack.c.bf16 %v6202_v2, %v6219_v1  ;;  %v6958_v51 = vunpack.i.h.bf16 %v6186_v17  ;;  %v2129_v43 = vsel %vm474_vm5, %v4573_v57, %v4587_v58 }
 0x2cb   : > { %3967 = vmatpush3.bf16.msra.mxu1 %v6955_v25  ;;  %v6396_v42 = vsel %vm474_vm5, %v4592_v6, %v6956_v53  ;;  %v4618_v25 = vunpack.i.h.bf16 %v6959_v59  ;;  %v4617_v32 = vunpack.i.l.bf16 %v6959_v59  ;;  %v4678_v53 = vunpack.i.h.bf16 %v4676_v45  ;;  %v6963_v59 = vld [vmem:[#allocation53_spill] sm:$0xff] }
 0x2cc   : > { %3887 = vmatpush1.bf16.msra.mxu0 %v6957_v19  ;;  %3969 = vmatprep.subr.bf16.mxu1 %v3968_v39  ;;  %v1946_v36 = vsel %vm448_vm4, %v4672_v16, %v6958_v51  ;;  %v4677_v50 = vunpack.i.l.bf16 %v4676_v45  ;;  %v6412_v2 = vsel %vm474_vm5, %v4603_v30, %v4597_v31  ;;  %v4613_v1 = vunpack.i.h.bf16 %v6074_v47  ;;  %v6965_v45 = vld [vmem:[#allocation47_spill] sm:$0xff] }
 0x2cd   : > { %3889 = vmatprep.subr.bf16.mxu0 %v3888_v23  ;;  %v4612_v39 = vunpack.i.l.bf16 %v6074_v47  ;;  %v6960_v19 = vunpack.i.h.bf16 %v5984_v63  ;;  %v6961_v57 = vunpack.i.l.bf16 %v5932_v46  ;;  %v6964_v60 = vpack.c.bf16 %v6962_v56, %v6963_v59 }
 0x2ce   : > { %v3892_v23 = vpack.c.bf16 %v1949_v48, %v1946_v36  ;;  %v6966_v30 = vunpack.i.h.bf16 %v6965_v45  ;;  %v1702_v47 = vsel %vm416_vm3, %v6967_v37, %v4678_v53  ;;  %v6432_v63 = vsel %vm474_vm5, %v4602_v61, %v4592_v6 }
 0x2cf   : > { %v2132_v51 = vsel %vm474_vm5, %v6960_v19, %v4588_v13  ;;  %v1945_v58 = vsel %vm448_vm4, %v6961_v57, %v4672_v16  ;;  %3971 = vmatpush3.bf16.msra.mxu1 %v6964_v60  ;;  %v6968_v13 = vld [vmem:[#allocation37_spill] sm:$0xff]  ;;  %v6435_v16 = vpop.permute.xlu0 %4680  ;;  %v6437_v19 = vpop.permute.xlu1 %4725  ;;  %v2137_v56 = vsel %vm474_vm5, %v4597_v31, %v4598_v18  ;;  %v4623_v48 = vunpack.i.h.bf16 %v6096_v29 }
 0x2d0   : > { %v1699_v17 = vsel %vm416_vm3, %v6966_v30, %v4677_v50  ;;  %v4627_v46 = vunpack.i.l.bf16 %v6968_v13  ;;  %3891 = vmatpush1.bf16.msra.mxu0 %v3890_v7  ;;  %v4622_v36 = vunpack.i.l.bf16 %v6096_v29  ;;  %v3976_v49 = vpack.c.bf16 %v2132_v51, %v2129_v43  ;;  %v6969_v31 = vld [vmem:[#allocation57_spill] sm:$0xff]  ;;  %v6970_v50 = vld [vmem:[#allocation60_spill] sm:$0xff] }
 0x2d1   : > { %v3972_v60 = vpack.c.bf16 %v1702_v47, %v1699_v17  ;;  %3893 = vmatprep.subr.bf16.mxu0 %v3892_v23  ;;  %v6443_v37 = vsel %vm474_vm5, %v4617_v32, %v4618_v25  ;;  %v3902_v6 = vpack.c.bf16 %v6412_v2, %v6432_v63  ;;  %v4633_v7 = vunpack.i.h.bf16 %v6138_v28 }
 0x2d2   : > { %v4632_v61 = vunpack.i.l.bf16 %v6138_v28  ;;  %v3894_v53 = vpack.c.bf16 %v1948_v34, %v1945_v58  ;;  %v4628_v17 = vunpack.i.h.bf16 %v6968_v13  ;;  %v6971_v57 = vpack.c.bf16 %v6969_v31, %v6970_v50 }
 0x2d3   : > { %3973 = vmatprep.subr.bf16.mxu1 %v3972_v60  ;;  %v3900_v29 = vpack.c.bf16 %v2137_v56, %v6396_v42  ;;  %v6972_v43 = vunpack.i.h.bf16 %v6943_v11  ;;  %v2138_v2 = vsel %vm474_vm5, %v4598_v18, %v4613_v1  ;;  %v6459_v59 = vsel %vm474_vm5, %v4627_v46, %v4617_v32  ;;  %v6464_v23 = vpop.permute.xlu0 %4690  ;;  %v6466_v45 = vpop.permute.xlu1 %4730  ;;  %v6974_v56 = vld [vmem:[#allocation24_spill] sm:$0xff] }
 0x2d4   : > { %3975 = vmatpush3.bf16.msra.mxu1 %v6971_v57  ;;  %v4648_v28 = vunpack.i.h.bf16 %v6076_v4  ;;  %v4658_v34 = vunpack.i.h.bf16 %v6098_v62  ;;  %v4657_v58 = vunpack.i.l.bf16 %v6098_v62  ;;  %3895 = vmatpush1.bf16.msra.mxu0 %v3894_v53  ;;  %v4647_v11 = vunpack.i.l.bf16 %v6076_v4  ;;  %v6979_v57 = vld [vmem:[#allocation25_spill] sm:$0xff] }
 0x2d5   : > { %v2135_v51 = vsel %vm474_vm5, %v6972_v43, %v4612_v39  ;;  %3977 = vmatprep.subr.bf16.mxu1 %v3976_v49  ;;  %v6470_v42 = vsel %vm474_vm5, %v4628_v17, %v4622_v36  ;;  %v4667_v18 = vunpack.i.l.bf16 %v6140_v33  ;;  %3897 = vmatprep.subr.bf16.mxu0 %v3896_v21  ;;  %v2143_v32 = vsel %vm474_vm5, %v4622_v36, %v4623_v48  ;;  %v6973_v21 = vld [vmem:[#allocation23_spill] sm:$0xff] }
 0x2d6   : > { %v4688_v1 = vunpack.i.h.bf16 %v6258_v10  ;;  %v3980_v39 = vpack.c.bf16 %v2138_v2, %v2135_v51  ;;  %v2141_v30 = vsel %vm474_vm5, %v4618_v25, %v4632_v61  ;;  %v2144_v47 = vsel %vm474_vm5, %v4623_v48, %v4633_v7 }
 0x2d7   : > { %3204 = vmatmul.mubr.f32.vlgmr.msra.gmra.mrb[32].mxu1 %v6103_v3  ;;  %v4643_v63 = vunpack.i.h.bf16 %v6256_v44  ;;  %v4642_v13 = vunpack.i.l.bf16 %v6256_v44  ;;  %v4687_v46 = vunpack.i.l.bf16 %v6258_v10  ;;  %v4728_v60 = vunpack.i.h.bf16 %v6437_v19  ;;  %v6492_v44 = vpop.permute.xlu0 %4700  ;;  %v6494_v10 = vpop.permute.xlu1 %4740 }
 0x2d8   : > { %v6975_v36 = vpack.c.bf16 %v6973_v21, %v6974_v56  ;;  %3208 = vmatprep.mubr.f32.mxu1 %v6158_v24  ;;  %v3906_v3 = vpack.c.bf16 %v6470_v42, %v6459_v59  ;;  %v4727_v25 = vunpack.i.l.bf16 %v6437_v19  ;;  %v6976_v48 = vpack.c.bf16 %v6349_v20, %v6378_v12 }
 0x2d9   : > { %v3904_v49 = vpack.c.bf16 %v2143_v32, %v6443_v37  ;;  %v6500_v24 = vsel %vm500_vm6, %v4657_v58, %v4658_v34  ;;  %v4668_v7 = vunpack.i.h.bf16 %v6140_v33  ;;  %v6504_v19 = vsel %vm500_vm6, %v4667_v18, %v4657_v58 }
 0x2da   : > { %3979 = vmatpush3.bf16.msra.mxu1 %v6975_v36  ;;  %3899 = vmatpush1.bf16.msra.mxu0 %v6976_v48  ;;  %v4653_v20 = vunpack.i.h.bf16 %v6307_v9  ;;  %v4652_v12 = vunpack.i.l.bf16 %v6307_v9  ;;  %v6977_v61 = vunpack.i.h.bf16 %v5825_v26  ;;  %v4683_v37 = vunpack.i.h.bf16 %v6435_v16 }
 0x2db   : > { %3981 = vmatprep.subr.bf16.mxu1 %v3980_v39  ;;  %3901 = vmatprep.subr.bf16.mxu0 %v3900_v29  ;;  %v4682_v17 = vunpack.i.l.bf16 %v6435_v16  ;;  %v3984_v33 = vpack.c.bf16 %v2144_v47, %v2141_v30  ;;  %v6978_v31 = vunpack.i.h.bf16 %v5723_v22  ;;  %v4698_v9 = vunpack.i.h.bf16 %v6309_v40  ;;  %v6980_v29 = vld [vmem:[#allocation26_spill] sm:$0xff]  ;;  %v4711_v22 = vpop.permute.xlu0 %4710  ;;  %v6530_v59 = vpop.permute.xlu1 %4745  ;;  %v6982_v30 = vld [vmem:[#allocation27_spill] sm:$0xff]  ;;  %v6983_v47 = vld [vmem:[#allocation28_spill] sm:$0xff] }
 0x2dc   : > { %v6511_v53 = vsel %vm448_vm4, %v6977_v61, %v4688_v1  ;;  %3209 = vmatmul.mubr.f32.gmra.mrb[34].mxu1 %v6199_v27  ;;  %v6981_v26 = vpack.c.bf16 %v6979_v57, %v6980_v29  ;;  %v2149_v43 = vsel %vm474_vm5, %v4642_v13, %v4643_v63  ;;  %v2147_v51 = vsel %vm474_vm5, %v4728_v60, %v4652_v12 }
 0x2dd   : > { %v6519_v50 = vsel %vm448_vm4, %v6978_v31, %v4687_v46  ;;  %v4697_v16 = vunpack.i.l.bf16 %v6309_v40  ;;  %v4663_v27 = vunpack.i.h.bf16 %v6363_v0  ;;  %v4662_v2 = vunpack.i.l.bf16 %v6363_v0  ;;  %3213 = vmatprep.mubr.f32.mxu1 %v6215_v14 }
 0x2de   : > { %3983 = vmatpush3.bf16.msra.mxu1 %v6981_v26  ;;  %3903 = vmatpush1.bf16.msra.mxu0 %v3902_v6  ;;  %v2146_v58 = vsel %vm474_vm5, %v4727_v25, %v4728_v60  ;;  %v4708_v42 = vunpack.i.h.bf16 %v6365_v8  ;;  %v4707_v18 = vunpack.i.l.bf16 %v6365_v8  ;;  %v4693_v32 = vunpack.i.h.bf16 %v6464_v23 }
 0x2df   : > { %3985 = vmatprep.subr.bf16.mxu1 %v3984_v33  ;;  %3905 = vmatprep.subr.bf16.mxu0 %v3904_v49  ;;  %v2150_v40 = vsel %vm474_vm5, %v4643_v63, %v4653_v20  ;;  %v2145_v0 = vsel %vm474_vm5, %v4647_v11, %v4727_v25  ;;  %v2329_v1 = vsel %vm500_vm6, %v4658_v34, %v4682_v17  ;;  %v4721_v34 = vpop.permute.xlu0 %4720  ;;  %v6557_v46 = vpop.permute.xlu1 %4755  ;;  %v4703_v56 = vunpack.i.h.bf16 %v6492_v44  ;;  %v6986_v20 = vld [vmem:[#allocation30_spill] sm:$0xff] }
 0x2e0   : > { %3214 = vmatmul.mubr.f32.gmra.mrb[36].mxu1 %v6267_v54  ;;  %v3988_v6 = vpack.c.bf16 %v2150_v40, %v2147_v51  ;;  %v2332_v39 = vsel %vm500_vm6, %v4663_v27, %v4683_v37  ;;  %v2148_v8 = vsel %vm474_vm5, %v4648_v28, %v4642_v13  ;;  %v3994_v14 = vpack.c.bf16 %v6511_v53, %v6519_v50 }
 0x2e1   : > { %v6984_v63 = vpack.c.bf16 %v6982_v30, %v6983_v47  ;;  %v3908_v11 = vpack.c.bf16 %v2149_v43, %v2146_v58  ;;  %3218 = vmatprep.mubr.f32.mxu1 %v6317_v38  ;;  %v2330_v62 = vsel %vm500_vm6, %v4668_v7, %v4662_v2  ;;  %v4692_v54 = vunpack.i.l.bf16 %v6464_v23  ;;  %v6985_v7 = vld [vmem:[#allocation29_spill] sm:$0xff] }
 0x2e2   : > { %3907 = vmatpush1.bf16.msra.mxu0 %v3906_v3  ;;  %v2331_v4 = vsel %vm500_vm6, %v4662_v2, %v4663_v27  ;;  %v2337_v28 = vsel %vm500_vm6, %v4697_v16, %v4698_v9  ;;  %v3910_v13 = vpack.c.bf16 %v2148_v8, %v2145_v0  ;;  %v3992_v60 = vpack.c.bf16 %v2332_v39, %v2329_v1 }
 0x2e3   : > { %3987 = vmatpush3.bf16.msra.mxu1 %v6984_v63  ;;  %3909 = vmatprep.subr.bf16.mxu0 %v3908_v11  ;;  %v2335_v21 = vsel %vm500_vm6, %v4693_v32, %v4707_v18  ;;  %v2338_v38 = vsel %vm500_vm6, %v4698_v9, %v4708_v42  ;;  %v4702_v23 = vunpack.i.l.bf16 %v6492_v44  ;;  %v4713_v36 = vunpack.i.h.bf16 %v4711_v22  ;;  %v4771_v26 = vpop.permute.xlu1 %4770  ;;  %v6991_v18 = vld [vmem:[#allocation59_spill] sm:$0xff] }
 0x2e4   : > { %3989 = vmatprep.subr.bf16.mxu1 %v3988_v6  ;;  %v4712_v3 = vunpack.i.l.bf16 %v4711_v22  ;;  %3219 = vmatmul.mubr.f32.gmra.mrb[38].mxu1 %v6334_v52  ;;  %v3914_v25 = vpack.c.bf16 %v2330_v62, %v6504_v19  ;;  %v4718_v48 = vunpack.i.h.bf16 %v6403_v35  ;;  %v4717_v49 = vunpack.i.l.bf16 %v6403_v35  ;;  %v4736_v52 = vpop.permute.xlu0 %4735 }
 0x2e5   : > { %v6987_v12 = vpack.c.bf16 %v6985_v7, %v6986_v20  ;;  %v3912_v61 = vpack.c.bf16 %v2331_v4, %v6500_v24  ;;  %3288 = vmatprep.mubr.f32.mxu1 %v6322_v15  ;;  %v4743_v44 = vunpack.i.h.bf16 %v6494_v10  ;;  %v4723_v53 = vunpack.i.h.bf16 %v4721_v34 }
 0x2e6   : > { %v4722_v37 = vunpack.i.l.bf16 %v4721_v34  ;;  %3911 = vmatpush1.bf16.msra.mxu0 %v3910_v13  ;;  %v2334_v19 = vsel %vm500_vm6, %v4692_v54, %v4693_v32  ;;  %v4742_v17 = vunpack.i.l.bf16 %v6494_v10  ;;  %v4738_v35 = vunpack.i.h.bf16 %v4736_v52  ;;  %v6993_v13 = vld [vmem:[#allocation43_spill] sm:$0xff] }
 0x2e7   : > { %3991 = vmatpush3.bf16.msra.mxu1 %v6987_v12  ;;  %v4737_v33 = vunpack.i.l.bf16 %v4736_v52  ;;  %3913 = vmatprep.subr.bf16.mxu0 %v3912_v61  ;;  %v3996_v31 = vpack.c.bf16 %v2338_v38, %v2335_v21  ;;  %v2333_v50 = vsel %vm500_vm6, %v4702_v23, %v4692_v54  ;;  %v2336_v24 = vsel %vm500_vm6, %v4703_v56, %v4697_v16 }
 0x2e8   : > { %3993 = vmatprep.subr.bf16.mxu1 %v3992_v60  ;;  %v6988_v15 = vunpack.i.h.bf16 %v5848_v41  ;;  %v6989_v57 = vunpack.i.h.bf16 %v5868_v5  ;;  %v3916_v43 = vpack.c.bf16 %v2337_v28, %v2334_v19  ;;  %v2340_v10 = vsel %vm500_vm6, %v4717_v49, %v4718_v48  ;;  %v4751_v5 = vpop.permute.xlu0 %4750  ;;  %v6997_v19 = vld [vmem:[#allocation8_spill] sm:$0xff] }
 0x2e9   : > { %v2341_v51 = vsel %vm500_vm6, %v4718_v48, %v4737_v33  ;;  %v2344_v27 = vsel %vm500_vm6, %v4723_v53, %v4738_v35  ;;  %v4733_v2 = vunpack.i.h.bf16 %v6466_v45  ;;  %v4732_v16 = vunpack.i.l.bf16 %v6466_v45  ;;  %v6999_v33 = vld [vmem:[#allocation61_spill] sm:$0xff] }
 0x2ea   : > { %v1935_v9 = vsel %vm448_vm4, %v6988_v15, %v4712_v3  ;;  %v1938_v29 = vsel %vm448_vm4, %v6989_v57, %v4713_v36  ;;  %v6990_v41 = vunpack.i.h.bf16 %v5930_v55  ;;  %3915 = vmatpush1.bf16.msra.mxu0 %v3914_v25  ;;  %v2343_v58 = vsel %vm500_vm6, %v4722_v37, %v4723_v53  ;;  %v6995_v25 = vld [vmem:[#allocation51_spill] sm:$0xff] }
 0x2eb   : > { %3995 = vmatpush3.bf16.msra.mxu1 %v3994_v14  ;;  %v3918_v42 = vpack.c.bf16 %v2336_v24, %v2333_v50  ;;  %v6992_v32 = vunpack.i.h.bf16 %v6991_v18  ;;  %v3998_v0 = vpack.c.bf16 %v1938_v29, %v1935_v9  ;;  %v4748_v6 = vunpack.i.h.bf16 %v6530_v59  ;;  %3917 = vmatprep.subr.bf16.mxu0 %v3916_v43  ;;  %v2601_v29 = vld [vmem:[%s6692_s4 + $0x10] sm:$0xff] }
 0x2ec   : > { %v1944_v22 = vsel %vm448_vm4, %v6990_v41, %v4743_v44  ;;  %3997 = vmatprep.subr.bf16.mxu1 %v3996_v31  ;;  %v4747_v45 = vunpack.i.l.bf16 %v6530_v59  ;;  %v4758_v55 = vunpack.i.h.bf16 %v6557_v46  ;;  %v4772_v1 = vunpack.i.l.bf16 %v4771_v26  ;;  %v4761_v62 = vpop.permute.xlu0 %4760  ;;  %v4781_v44 = vpop.permute.xlu1 %4780  ;;  %v7007_v18 = vld [vmem:[#allocation56_spill] sm:$0xff] }
 0x2ed   : > { %v1941_v40 = vsel %vm448_vm4, %v6992_v32, %v4742_v17  ;;  %v4000_v39 = vpack.c.bf16 %v2344_v27, %v2341_v51  ;;  %v2342_v8 = vsel %vm500_vm6, %v4733_v2, %v4722_v37  ;;  %v4757_v14 = vunpack.i.l.bf16 %v6557_v46  ;;  %v7001_v51 = vld [vmem:[#allocation49_spill] sm:$0xff] }
 0x2ee   : > { %v4753_v30 = vunpack.i.h.bf16 %v4751_v5  ;;  %v3920_v47 = vpack.c.bf16 %v2343_v58, %v2340_v10  ;;  %v2339_v63 = vsel %vm500_vm6, %v4732_v16, %v4717_v49  ;;  %v4773_v11 = vunpack.i.h.bf16 %v4771_v26  ;;  %3919 = vmatpush1.bf16.msra.mxu0 %v3918_v42  ;;  %v2607_v10 = vld [vmem:[%s6692_s4 + $0x40] sm:$0xff]  ;;  %v7003_v16 = vld [vmem:[#allocation55_spill] sm:$0xff] }
 0x2ef   : > { %3999 = vmatpush3.bf16.msra.mxu1 %v3998_v0  ;;  %v4002_v54 = vpack.c.bf16 %v1944_v22, %v1941_v40  ;;  %v4752_v34 = vunpack.i.l.bf16 %v4751_v5  ;;  %v4763_v59 = vunpack.i.h.bf16 %v4761_v62  ;;  %v4762_v4 = vunpack.i.l.bf16 %v4761_v62  ;;  %v7005_v5 = vld [vmem:[#allocation54_spill] sm:$0xff] }
 0x2f0   : > { %4001 = vmatprep.subr.bf16.mxu1 %v4000_v39  ;;  %3921 = vmatprep.subr.bf16.mxu0 %v3920_v47  ;;  %v3922_v28 = vpack.c.bf16 %v2342_v8, %v2339_v63  ;;  %v6994_v60 = vunpack.i.h.bf16 %v6993_v13  ;;  %v2349_v46 = vsel %vm500_vm6, %v4747_v45, %v4748_v6  ;;  %v2350_v38 = vsel %vm500_vm6, %v4748_v6, %v4758_v55  ;;  %v4766_v20 = vpop.permute.xlu0 %4765  ;;  %v2612_v39 = vld [vmem:[%s6692_s4 + $0x68] sm:$0xff] }
 0x2f1   : > { %v2348_v56 = vsel %vm500_vm6, %v4753_v30, %v4747_v45  ;;  %v2345_v23 = vsel %vm500_vm6, %v4752_v34, %v4762_v4  ;;  %v2346_v36 = vsel %vm500_vm6, %v4762_v4, %v4763_v59  ;;  %v2347_v3 = vsel %vm500_vm6, %v4763_v59, %v4757_v14  ;;  %v2606_v45 = vld [vmem:[%s6692_s4 + $0x38] sm:$0xff]  ;;  %v7011_v63 = vld [vmem:[#allocation58_spill] sm:$0xff]  ;;  %v2617_v59 = vld [vmem:[%s6692_s4 + $0x90] sm:$0xff] }
 0x2f2   : > { %v2529_v21 = vsel %vm526_vm7, %v6994_v60, %v4772_v1  ;;  %v6996_v48 = vunpack.i.h.bf16 %v6995_v25  ;;  %v3926_v7 = vpack.c.bf16 %v2348_v56, %v2345_v23  ;;  %3923 = vmatpush1.bf16.msra.mxu0 %v3922_v28  ;;  %v3924_v12 = vpack.c.bf16 %v2349_v46, %v2346_v36  ;;  %v7009_v14 = vld [vmem:[#allocation33_spill] sm:$0xff]  ;;  %v2616_v4 = vld [vmem:[%s6692_s4 + $0x88] sm:$0xff]  ;;  %v7013_v28 = vld [vmem:[#allocation36_spill] sm:$0xff] }
 0x2f3   : > { %4003 = vmatpush3.bf16.msra.mxu1 %v4002_v54  ;;  %v4004_v61 = vpack.c.bf16 %v2350_v38, %v2347_v3  ;;  %v4768_v53 = vunpack.i.h.bf16 %v4766_v20  ;;  %v4767_v37 = vunpack.i.l.bf16 %v4766_v20  ;;  %v6998_v17 = vunpack.i.h.bf16 %v6997_v19  ;;  %v2611_v54 = vld [vmem:[%s6692_s4 + $0x60] sm:$0xff] }
 0x2f4   : > { %v2532_v49 = vsel %vm526_vm7, %v6996_v48, %v4773_v11  ;;  %3925 = vmatprep.subr.bf16.mxu0 %v3924_v12  ;;  %v7000_v31 = vunpack.i.h.bf16 %v6999_v33  ;;  %v4783_v24 = vunpack.i.h.bf16 %v4781_v44  ;;  %v4782_v15 = vunpack.i.l.bf16 %v4781_v44  ;;  %v4776_v57 = vpop.permute.xlu0 %4775  ;;  %v7014_v13 = vld [vmem:[#allocation50_spill] sm:$0xff] }
 0x2f5   : > { %4005 = vmatprep.subr.bf16.mxu1 %v4004_v61  ;;  %v4008_v52 = vpack.c.bf16 %v2532_v49, %v2529_v21  ;;  %v1947_v35 = vsel %vm448_vm4, %v6998_v17, %v4767_v37  ;;  %v4778_v26 = vunpack.i.h.bf16 %v4776_v57  ;;  %v4777_v43 = vunpack.i.l.bf16 %v4776_v57  ;;  %v7015_v60 = vld [vmem:[#allocation10_spill] sm:$0xff]  ;;  %v2842_v33 = vpop.permute.xlu1 %2841 }
 0x2f6   : > { %v1950_v50 = vsel %vm448_vm4, %v7000_v31, %v4768_v53  ;;  %3927 = vmatpush1.bf16.msra.mxu0 %v3926_v7  ;;  %v7002_v27 = vunpack.i.h.bf16 %v7001_v51  ;;  %v7004_v41 = vunpack.i.h.bf16 %v7003_v16  ;;  %v7006_v58 = vunpack.i.h.bf16 %v7005_v5  ;;  %v7016_v21 = vld [vmem:[#allocation38_spill] sm:$0xff] }
 0x2f7   : > { %v4006_v9 = vpack.c.bf16 %v1950_v50, %v1947_v35  ;;  %4009 = vmatprep.subr.bf16.mxu0 %v4008_v52  ;;  %v7008_v32 = vunpack.i.h.bf16 %v7007_v18  ;;  %v7010_v30 = vunpack.i.h.bf16 %v7009_v14  ;;  %v7012_v11 = vunpack.i.h.bf16 %v7011_v63 }
 0x2f8   : > { %v2535_v2 = vsel %vm526_vm7, %v7002_v27, %v4777_v43  ;;  %v2538_v22 = vsel %vm526_vm7, %v7004_v41, %v4778_v26  ;;  %v2541_v42 = vsel %vm526_vm7, %v7006_v58, %v4782_v15  ;;  %v4786_v6 = vpop.permute.xlu0 %4785 }
 0x2f9   : > { %4007 = vmatpush3.bf16.msra.mxu1 %v4006_v9  ;;  %3026 = vmatmul.mubr.f32.vlgmr.msra.gmra.mrb[0].mxu0 %v2601_v29  ;;  %v2544_v40 = vsel %vm526_vm7, %v7008_v32, %v4783_v24  ;;  %v4012_v0 = vpack.c.bf16 %v2538_v22, %v2535_v2  ;;  %v4788_v55 = vunpack.i.h.bf16 %v4786_v6  ;;  %v4787_v1 = vunpack.i.l.bf16 %v4786_v6  ;;  %v2852_v24 = vpop.permute.xlu1 %2851 }
 0x2fa   : > { %4024 = vmatprep.subr.bf16.mxu1 %v4008_v52  ;;  %4011 = vmatpush3.bf16.msra.mxu0 %v4008_v52  ;;  %v4016_v8 = vpack.c.bf16 %v2544_v40, %v2541_v42 }
 0x2fb   : > { %3031 = vmatprep.mubr.f32.mxu0 %v2607_v10  ;;  %4013 = vmatprep.subr.bf16.mxu0 %v4012_v0  ;;  %v2547_v47 = vsel %vm526_vm7, %v7010_v30, %v4787_v1  ;;  %v2550_v62 = vsel %vm526_vm7, %v7012_v11, %v4788_v55 }
 0x2fc   : > { %3289 = vmatmul.mubr.f32.vlgmr.msra.gmra.mrb[40].mxu1 %v2601_v29  ;;  %v4020_v34 = vpack.c.bf16 %v2550_v62, %v2547_v47 }
 0x2fd   : > { %4028 = vmatpush3.bf16.msra.mxu1 %v4008_v52  ;;  %3032 = vmatmul.mubr.f32.gmra.mrb[2].mxu0 %v2606_v45  ;;  %v6670_v42 = vpop.permute.xlu1 %3412 }
 0x2fe   : > { %4025 = vmatprep.subr.bf16.mxu1 %v4012_v0  ;;  %4015 = vmatpush3.bf16.msra.mxu0 %v4012_v0 }
 0x2ff   : > { %3293 = vmatprep.mubr.f32.mxu1 %v2607_v10  ;;  %4017 = vmatprep.subr.bf16.mxu0 %v4016_v8 }
 0x300   : > { %3037 = vmatprep.mubr.f32.mxu0 %v2612_v39  ;;  %3294 = vmatmul.mubr.f32.gmra.mrb[42].mxu1 %v2606_v45 }
 0x301   : > { %3038 = vmatmul.mubr.f32.gmra.mrb[4].mxu0 %v2611_v54  ;;  %4029 = vmatpush3.bf16.msra.mxu1 %v4012_v0 }
 0x302   : > { %4026 = vmatprep.subr.bf16.mxu1 %v4016_v8  ;;  %4019 = vmatpush3.bf16.msra.mxu0 %v4016_v8 }
 0x303   : > { %3298 = vmatprep.mubr.f32.mxu1 %v2612_v39  ;;  %4021 = vmatprep.subr.bf16.mxu0 %v4020_v34 }
 0x304   : > { %3043 = vmatprep.mubr.f32.mxu0 %v2617_v59  ;;  %3299 = vmatmul.mubr.f32.gmra.mrb[44].mxu1 %v2611_v54 }
 0x305   : > { %3044 = vmatmul.mubr.f32.gmra.mrb[6].mxu0 %v2616_v4  ;;  %4030 = vmatpush3.bf16.msra.mxu1 %v4016_v8  ;;  %v2847_v31 = vpop.permute.xlu0 %2846 }
 0x306   : > { %4027 = vmatprep.subr.bf16.mxu1 %v4020_v34  ;;  %4023 = vmatpush3.bf16.msra.mxu0 %v4020_v34 }
 0x307   : > { %3303 = vmatprep.mubr.f32.mxu1 %v2617_v59  ;;  %3762 = vmatprep.mubr.msk.f32.mxu0 %vm2859_vm9, %v7013_v28 }
 0x308   : > { %3304 = vmatmul.mubr.f32.gmra.mrb[46].mxu1 %v2616_v4 }
 0x309   : > { %4031 = vmatpush3.bf16.msra.mxu1 %v4020_v34  ;;  %3763 = vmatmul.mubr.msk.f32.vlgmr.msra.gmra.mrb[8].mxu0 %vm2859_vm9, %v7014_v13  ;;  %v2857_v10 = vpop.permute.xlu0 %2856 }
 0x30a   : > { %3765 = vmatprep.mubr.msk.f32.mxu1 %vm2859_vm9, %v7015_v60 }
 0x30c   : > { %3766 = vmatmul.mubr.msk.f32.vlgmr.msra.gmra.mrb[48].mxu1 %vm2859_vm9, %v7016_v21 }
 0x30d   : > { %v3418_v47 = vpop.permute.xlu0 %3417 }
 0x385   : > { %v3116_v46 = vpop.f32.mrb[24].mxu1 }
 0x386   : > { %v3118_v38 = vpop.f32.mrb[25].mxu1 }
 0x389   : > { %v3122_v56 = vpop.f32.mrb[26].mxu1 }
 0x38a   : > { %v3124_v23 = vpop.f32.mrb[27].mxu1 }
 0x38d   : > { %v3128_v36 = vpop.f32.mrb[28].mxu1 }
 0x38e   : > { %v3130_v3 = vpop.f32.mrb[29].mxu1 }
 0x391   : > { %v6666_v25 = vpop.f32.mrb[30].mxu1 }
 0x392   : > { %v6668_v48 = vpop.f32.mrb[31].mxu1 }
 0x3aa   : > { %v3648_v49 = vpop.f32.mrb[32].mxu1 }
 0x3ab   : > { %v3649_v7 = vpop.f32.mrb[33].mxu1 }
 0x3ac   : > { %v3650_v20 = vadd.f32 %v3649_v7, %v3648_v49 }
 0x3ae   : > { %v3206_v51 = vadd.f32 %v3650_v20, %v2842_v33 }
 0x3af   : > { %v3651_v12 = vpop.f32.mrb[34].mxu1 }
 0x3b0   : > { %v3652_v61 = vpop.f32.mrb[35].mxu1 }
 0x3b1   : > { %v3653_v44 = vadd.f32 %v3652_v61, %v3651_v12  ;;  %v3423_v12 = vpop.permute.xlu1 %3422 }
 0x3b3   : > { %v3654_v53 = vpop.f32.mrb[36].mxu1  ;;  %v3211_v1 = vadd.f32 %v3653_v44, %v2847_v31 }
 0x3b4   : > { %v3655_v37 = vpop.f32.mrb[37].mxu1 }
 0x3b5   : > { %v3656_v52 = vadd.f32 %v3655_v37, %v3654_v53 }
 0x3b7   : > { %v3657_v19 = vpop.f32.mrb[38].mxu1  ;;  %v3216_v28 = vadd.f32 %v3656_v52, %v2852_v24 }
 0x3b8   : > { %v3658_v17 = vpop.f32.mrb[39].mxu1 }
 0x3b9   : > { %v3659_v35 = vadd.f32 %v3658_v17, %v3657_v19 }
 0x3bb   : > { %v3221_v17 = vadd.f32 %v3659_v35, %v2857_v10 }
 0x3cc   : > { %v3027_v50 = vpop.f32.mrb[0].mxu0 }
 0x3cd   : > { %v4032_v15 = vadd.f32 %v3027_v50, %v2842_v33  ;;  %v3029_v9 = vpop.f32.mrb[1].mxu0 }
 0x3ce   : > { %v4034_v57 = vadd.f32 %v3029_v9, %v2842_v33 }
 0x3cf   : > { %v3692_v29 = vpop.f32.mrb[40].mxu1  ;;  %v4033_v26 = vadd.f32 %v4032_v15, %v3116_v46 }
 0x3d0   : > { %v3693_v43 = vpop.f32.mrb[41].mxu1  ;;  %v4035_v27 = vadd.f32 %v4034_v57, %v3118_v38  ;;  %v3033_v2 = vpop.f32.mrb[2].mxu0 }
 0x3d1   : > { %v3694_v16 = vadd.f32 %v3693_v43, %v3692_v29  ;;  %v4036_v41 = vadd.f32 %v3033_v2, %v2847_v31  ;;  %v3035_v22 = vpop.f32.mrb[3].mxu0  ;;  %v3394_v18 = vmax.f32 %v4033_v26, 0.0  ;;  %v3428_v26 = vpop.permute.xlu0 %3427 }
 0x3d2   : > { %v4038_v5 = vadd.f32 %v3035_v22, %v2847_v31  ;;  %v3395_v0 = vmax.f32 %v4035_v27, 0.0 }
 0x3d3   : > { %v3291_v58 = vadd.f32 %v3694_v16, %v3206_v51  ;;  %v4037_v32 = vadd.f32 %v4036_v41, %v3122_v56  ;;  %v3695_v40 = vpop.f32.mrb[42].mxu1  ;;  %v3430_v62 = vmul.f32 %v6670_v42, %v3394_v18 }
 0x3d4   : > { %v4039_v6 = vadd.f32 %v4038_v5, %v3124_v23  ;;  %v3039_v45 = vpop.f32.mrb[4].mxu0  ;;  %v3696_v55 = vpop.f32.mrb[43].mxu1  ;;  %v3431_v13 = vmul.f32 %v6670_v42, %v3395_v0 }
 0x3d5   : > { %v3397_v39 = vmax.f32 %v4037_v32, 0.0  ;;  %v4040_v8 = vadd.f32 %v3039_v45, %v2852_v24  ;;  %v3697_v14 = vadd.f32 %v3696_v55, %v3695_v40  ;;  %v3041_v30 = vpop.f32.mrb[5].mxu0 }
 0x3d6   : > { %v3398_v63 = vmax.f32 %v4039_v6, 0.0  ;;  %v4042_v11 = vadd.f32 %v3041_v30, %v2852_v24 }
 0x3d7   : > { %v3433_v54 = vmul.f32 %v3418_v47, %v3397_v39  ;;  %v4041_v34 = vadd.f32 %v4040_v8, %v3128_v36  ;;  %v3698_v59 = vpop.f32.mrb[44].mxu1  ;;  %v3296_v4 = vadd.f32 %v3697_v14, %v3211_v1 }
 0x3d8   : > { %v3434_v60 = vmul.f32 %v3418_v47, %v3398_v63  ;;  %v4043_v21 = vadd.f32 %v4042_v11, %v3130_v3  ;;  %v3045_v46 = vpop.f32.mrb[6].mxu0  ;;  %v3699_v38 = vpop.f32.mrb[45].mxu1 }
 0x3d9   : > { %v3442_v56 = vadd.f32 %v3433_v54, %v3430_v62  ;;  %v3400_v23 = vmax.f32 %v4041_v34, 0.0  ;;  %v4044_v49 = vadd.f32 %v3045_v46, %v2857_v10  ;;  %v3700_v7 = vadd.f32 %v3699_v38, %v3698_v59  ;;  %v3047_v20 = vpop.f32.mrb[7].mxu0 }
 0x3da   : > { %v3451_v61 = vadd.f32 %v3434_v60, %v3431_v13  ;;  %v3401_v44 = vmax.f32 %v4043_v21, 0.0  ;;  %v4046_v53 = vadd.f32 %v3047_v20, %v2857_v10  ;;  %v4808_v38 = vmov 1966171168  }
 0x3db   : > { %v3436_v37 = vmul.f32 %v3423_v12, %v3400_v23  ;;  %v4045_v36 = vadd.f32 %v4044_v49, %v6666_v25  ;;  %v3701_v19 = vpop.f32.mrb[46].mxu1  ;;  %v3301_v52 = vadd.f32 %v3700_v7, %v3216_v28 }
 0x3dc   : > { %v3437_v33 = vmul.f32 %v3423_v12, %v3401_v44  ;;  %v4047_v3 = vadd.f32 %v4046_v53, %v6668_v48  ;;  %v3702_v31 = vpop.f32.mrb[47].mxu1  ;;  %v3764_v50 = vpop.f32.mrb[8].mxu0 }
 0x3dd   : > { %v3443_v24 = vadd.f32 %v3442_v56, %v3436_v37  ;;  %v3403_v15 = vmax.f32 %v4045_v36, 0.0  ;;  %v3703_v9 = vadd.f32 %v3702_v31, %v3701_v19  ;;  %v3381_v57 = vadd.f32 %v3764_v50, %v3296_v4  ;;  %v3375_v29 = vpop.f32.mrb[9].mxu0 }
 0x3de   : > { %v3452_v43 = vadd.f32 %v3451_v61, %v3437_v33  ;;  %v3404_v51 = vmax.f32 %v4047_v3, 0.0  ;;  %v3376_v27 = vadd.f32 %v3375_v29, %v3291_v58  ;;  %v3487_v56 = vunpack.c.l.s4 %v4808_v38 }
 0x3df   : > { %v3439_v2 = vmul.f32 %v3428_v26, %v3403_v15  ;;  %v3399_v16 = vmax.f32 %v3381_v57, 0.0  ;;  %v3306_v25 = vadd.f32 %v3703_v9, %v3221_v17  ;;  %v3767_v41 = vpop.f32.mrb[48].mxu1  ;;  %v7019_v31 = vlaneseq }
 0x3e0   : > { %v3440_v22 = vmul.f32 %v3428_v26, %v3404_v51  ;;  %v3396_v35 = vmax.f32 %v3376_v27, 0.0  ;;  %v3385_v10 = vpop.f32.mrb[49].mxu1  ;;  %v3488_v61 = vunpack.c.0.s8 %v3487_v56 }
 0x3e1   : > { %v3444_v5 = vadd.f32 %v3443_v24, %v3439_v2  ;;  %v3435_v48 = vmul.f32 %v3418_v47, %v3399_v16  ;;  %v3391_v18 = vadd.f32 %v3767_v41, %v3306_v25  ;;  %v3386_v32 = vadd.f32 %v3385_v10, %v3301_v52  ;;  %v3473_v47 = vpop.permute.xlu1 %3472 }
 0x3e2   : > { %v3453_v40 = vadd.f32 %v3452_v43, %v3440_v22  ;;  %v3432_v0 = vmul.f32 %v6670_v42, %v3396_v35  ;;  %v7017_v42 = vld [vmem:[#allocation6_spill] sm:$0xff]  ;;  %vm3511_vm10 = vcmp.lt.s32.totalorder %v7019_v31, 384 }
 0x3e3   : > { %v3445_v6 = vrot.slane %v3444_v5, 4  ;;  %v3405_v45 = vmax.f32 %v3391_v18, 0.0  ;;  %v3402_v55 = vmax.f32 %v3386_v32, 0.0  ;;  %v7018_v60 = vsub.s32 0, %v7017_v42 }
 0x3e4   : > { %v3454_v1 = vrot.slane %v3453_v40, 4  ;;  %v3460_v39 = vadd.f32 %v3435_v48, %v3432_v0  ;;  %v3491_v36 = vsub.s32 %v3488_v61, %v7017_v42 }
 0x3e5   : > { %v3446_v58 = vadd.f32 %v3445_v6, %v3444_v5  ;;  %v3438_v8 = vmul.f32 %v3423_v12, %v3402_v55  ;;  %v3441_v63 = vmul.f32 %v3428_v26, %v3405_v45  ;;  %v3478_v21 = vrot.slane %v3473_v47, %v7018_v60 }
 0x3e6   : > { %v3455_v14 = vadd.f32 %v3454_v1, %v3453_v40 }
 0x3e7   : > { %v3447_v30 = vrot.slane %v3446_v58, 2  ;;  %v3461_v11 = vadd.f32 %v3460_v39, %v3438_v8 }
 0x3e8   : > { %v3456_v62 = vrot.slane %v3455_v14, 2 }
 0x3e9   : > { %v3448_v54 = vadd.f32 %v3447_v30, %v3446_v58  ;;  %v3462_v34 = vadd.f32 %v3461_v11, %v3441_v63 }
 0x3ea   : > { %v3457_v59 = vadd.f32 %v3456_v62, %v3455_v14 }
 0x3eb   : > { %v3449_v4 = vrot.slane %v3448_v54, 1  ;;  %v3463_v28 = vrot.slane %v3462_v34, 4 }
 0x3ec   : > { %v3458_v13 = vrot.slane %v3457_v59, 1 }
 0x3ed   : > { %v3450_v46 = vadd.f32 %v3449_v4, %v3448_v54  ;;  %v3464_v23 = vadd.f32 %v3463_v28, %v3462_v34 }
 0x3ee   : > { %v3459_v49 = vadd.f32 %v3458_v13, %v3457_v59 }
 0x3ef   : > { %v3479_v7 = vadd.f32 %v3478_v21, %v3450_v46  ;;  %v3465_v20 = vrot.slane %v3464_v23, 2 }
 0x3f0   : > { %v3480_v12 = vadd.f32 %v3478_v21, %v3459_v49 }
 0x3f1   : > { %v3466_v44 = vadd.f32 %v3465_v20, %v3464_v23 }
 0x3f2   : > { %v3485_v53 = vcombine.low %v3479_v7, %v3480_v12 }
 0x3f3   : > { %v3467_v37 = vrot.slane %v3466_v44, 1 }
 0x3f4   : > { %v3492_v17 = vrot.slane %v3485_v53, %v3491_v36 }
 0x3f5   : > { %v3468_v19 = vadd.f32 %v3467_v37, %v3466_v44 }
 0x3f7   : > { %v3481_v52 = vadd.f32 %v3478_v21, %v3468_v19 }
 0x3f9   : > { %v3499_v33 = vrot.slane %v3481_v52, %v3491_v36 }
 0x3fb   : > { %v3500_v3 = vcombine.low %v3492_v17, %v3499_v33 }
 0x3fd   : > { %v3507_v50 = vrot.slane %v3500_v3, %v3491_v36 }
 0x3ff   : > { %3513 = vst.msk [vmem:[%s305_s26] sm:$0x7] %vm3511_vm10, %v3507_v50 }
 0x400 PF: > { %s20_s29 = sadd.s32 1, %s4796_s29  }
 0x401   : > { %p17_p4 = scmp.ge.s32.totalorder %s20_s29, 4  }
 0x403   :  { %19 = sbr.rel (!%p17_p4) target bundleno = 3 (0x3), region = 82 }

</bundles_post_ra>
